<compile_context>
chip_gen: v5e
topology: v5e:2x2
jax: 0.10.0
libtpu: 0.0.40
codegen_flags: <defaults>
</compile_context>

<pallas_src>
import functools

import jax
import jax.numpy as jnp
from jax import lax
from jax.experimental import pallas as pl
from jax.experimental.pallas import tpu as pltpu

LANE = 128


def _round_up(v, m):
    return (v + m - 1) // m * m


# --------------------------------------------------------------------------
# Kernel
# --------------------------------------------------------------------------
def _bottleneck_kernel(TH, W, w_valid, cin_p, cmid_p, cout_p,
                       xt_ref, xm_ref, xb_ref,
                       w1_ref, b1_ref, w2_ref, b2_ref, w3_ref, b3_ref,
                       o_ref, tcat_ref):
    """One grid step = one (image, row-tile): TH output rows; the 3x3 conv's
    one-row halo above/below comes from xt_ref / xb_ref (clamped index maps)."""
    r = pl.program_id(1)
    n_r = pl.num_programs(1)
    C = cmid_p

    w1 = w1_ref[...]
    b1 = b1_ref[...]

    # Column index along W (sublane axis); used to zero conv2's width padding.
    widx = lax.broadcasted_iota(jnp.int32, (1, W, 1), 1)

    def conv1(x2d, rows):
        """1x1 conv + folded BN1 + ReLU on (rows*W, Cin) -> (rows, W, C) f32."""
        t = jnp.dot(x2d, w1, preferred_element_type=jnp.float32) + b1
        t = jnp.maximum(t, 0.0).reshape(rows, W, C)
        if w_valid != W:                      # static branch: padded W columns
            t = jnp.where(widx < w_valid, t, 0.0)
        return t

    def taps(t):
        """(rows, W, C) f32 -> (rows, W, 3C) bf16: the three kw taps laid side
        by side along lanes [x[w-1] | x[w] | x[w+1]] with borders zeroed.
        W-shifts run on the XLU via pltpu.roll; one lane-dense concat replaces
        the former sublane-shifted partial stores."""
        left = jnp.where(widx == 0, 0.0, pltpu.roll(t, shift=1, axis=1))
        right = jnp.where(widx == W - 1, 0.0, pltpu.roll(t, shift=W - 1, axis=1))
        return jnp.concatenate([left.astype(jnp.bfloat16),
                                t.astype(jnp.bfloat16),
                                right.astype(jnp.bfloat16)], axis=-1)

    # ---- conv1 + BN1 + ReLU: body rows + the two 1-row halos ---------------
    x_mid = xm_ref[0, :, :, :].reshape(TH * W, cin_p)        # (TH*W, Cin) bf16
    tcat_ref[1:TH + 1, :, :] = taps(conv1(x_mid, TH))
    tcat_ref[0:1, :, :] = taps(conv1(xt_ref[0, 0, :, :], 1))
    tcat_ref[TH + 1:TH + 2, :, :] = taps(conv1(xb_ref[0, 0, :, :], 1))

    # Halo rows outside the image are conv2's zero padding: only the two edge
    # tiles pay, with a tiny 1-row store (no per-step full-tile where-mask).
    @pl.when(r == 0)
    def _():
        tcat_ref[0:1, :, :] = jnp.zeros((1, W, 3 * C), jnp.bfloat16)

    @pl.when(r == n_r - 1)
    def _():
        tcat_ref[TH + 1:TH + 2, :, :] = jnp.zeros((1, W, 3 * C), jnp.bfloat16)

    # ---- conv2 (3x3, pad 1) = 3 deep matmuls with K = 3*C, f32 accumulate ---
    # Kept as three kh taps (a 9*C-deep tcat would triple the scratch and only
    # helps on MRF parts; on v7x the MXU result buffer accumulates in place).
    acc = jnp.dot(tcat_ref[0:TH, :, :].reshape(TH * W, 3 * C),
                  w2_ref[0, :, :], preferred_element_type=jnp.float32)
    acc = acc + jnp.dot(tcat_ref[1:TH + 1, :, :].reshape(TH * W, 3 * C),
                        w2_ref[1, :, :], preferred_element_type=jnp.float32)
    acc = acc + jnp.dot(tcat_ref[2:TH + 2, :, :].reshape(TH * W, 3 * C),
                        w2_ref[2, :, :], preferred_element_type=jnp.float32)
    t2 = jnp.maximum(acc + b2_ref[...], 0.0).astype(jnp.bfloat16)

    # ---- conv3 (1x1) + folded BN3 + residual + ReLU -------------------------
    t3 = jnp.dot(t2, w3_ref[...], preferred_element_type=jnp.float32) + b3_ref[...]
    out = jnp.maximum(t3 + x_mid.astype(jnp.float32), 0.0)
    o_ref[...] = out.reshape(1, TH, W, cout_p).astype(o_ref.dtype)


# --------------------------------------------------------------------------
# Parameter preparation (fold eval-mode BN into conv weights, pad channels)
# --------------------------------------------------------------------------
def fold_and_pack_params(tparams, eps=1e-5):
    """PyTorch-layout params -> kernel params.

    Returns bf16 effective weights (BN scale folded in, channels zero-padded
    to multiples of 128) and f32 biases:
      w1k: (Cin_p, Cmid_p)           b1k: (1, Cmid_p)
      w2k: (3, 3*Cmid_p, Cmid_p)     b2k: (1, Cmid_p)   (taps: kw-major, ci-minor)
      w3k: (Cmid_p, Cout_p)          b3k: (1, Cout_p)
    """
    (w1, g1, be1, m1, v1,
     w2, g2, be2, m2, v2,
     w3, g3, be3, m3, v3) = tparams

    cmid, cin = w1.shape[0], w1.shape[1]
    cout = w3.shape[0]
    assert cout == cin, "residual path (downsample=None) requires Cout == Cin"
    cin_p = _round_up(cin, LANE)
    cmid_p = _round_up(cmid, LANE)
    cout_p = _round_up(cout, LANE)

    def fold(w_oihw, g, b, m, v):
        s = g / jnp.sqrt(v + eps)
        return w_oihw * s[:, None, None, None], b - m * s

    w1e, b1 = fold(w1, g1, be1, m1, v1)          # (cmid, cin, 1, 1)
    w2e, b2 = fold(w2, g2, be2, m2, v2)          # (cmid, cmid, 3, 3)
    w3e, b3 = fold(w3, g3, be3, m3, v3)          # (cout, cmid, 1, 1)

    w1k = jnp.zeros((cin_p, cmid_p), jnp.float32)
    w1k = w1k.at[:cin, :cmid].set(jnp.transpose(w1e[:, :, 0, 0], (1, 0)))

    w2_hwio = jnp.transpose(w2e, (2, 3, 1, 0))   # (kh, kw, ci, co)
    w2k = jnp.zeros((3, 3, cmid_p, cmid_p), jnp.float32)
    w2k = w2k.at[:, :, :cmid, :cmid].set(w2_hwio)
    w2k = w2k.reshape(3, 3 * cmid_p, cmid_p)     # merge (kw, ci) -> kw*C + ci

    w3k = jnp.zeros((cmid_p, cout_p), jnp.float32)
    w3k = w3k.at[:cmid, :cout].set(jnp.transpose(w3e[:, :, 0, 0], (1, 0)))

    b1k = jnp.zeros((1, cmid_p), jnp.float32).at[0, :cmid].set(b1)
    b2k = jnp.zeros((1, cmid_p), jnp.float32).at[0, :cmid].set(b2)
    b3k = jnp.zeros((1, cout_p), jnp.float32).at[0, :cout].set(b3)

    return (w1k.astype(jnp.bfloat16), b1k,
            w2k.astype(jnp.bfloat16), b2k,
            w3k.astype(jnp.bfloat16), b3k)


# --------------------------------------------------------------------------
# Tiling / VMEM policy helpers (generation aware)
# --------------------------------------------------------------------------
def _vmem_limit_bytes():
    """Scoped-VMEM limit with ~25% headroom (v7x: 64 MiB/TC; v5e/v6e: 128 MiB)."""
    phys = None
    try:
        info = pltpu.get_tpu_info()
        phys = getattr(info, "vmem_capacity_bytes", None)
    except Exception:
        phys = None
    if not phys:
        phys = 64 * 1024 * 1024            # conservative default: v7x per-TC
    return int(min(96 * 1024 * 1024, (phys * 3) // 4))


def _est_vmem_bytes(TH, W, cin_p, cmid_p, cout_p, out_itemsize):
    """Rough per-grid-step VMEM footprint used to cap the row tile."""
    in_body = 2 * TH * W * cin_p * 2                 # double-buffered bf16 body
    in_halo = 2 * 2 * W * cin_p * 2                  # two 1-row halos
    out_blk = 2 * TH * W * cout_p * out_itemsize     # double-buffered output
    weights = (cin_p * cmid_p + 9 * cmid_p * cmid_p + cmid_p * cout_p) * 2  # 1-buf
    tcat = (TH + 2) * W * 3 * cmid_p * 2
    temps = TH * W * (cmid_p * 4 + cout_p * 4 + 3 * cmid_p * 2)
    return in_body + in_halo + out_blk + weights + tcat + temps


def _pick_row_tile(H, W, cin_p, cmid_p, cout_p, out_itemsize,
                   vmem_limit, row_tile_max, n_images):
    """Largest divisor of H that is <= row_tile_max and fits the VMEM budget
    (so there is never a TH=H fallback that blows the limit or kills the grid)."""
    cap = min(row_tile_max, H)
    if n_images == 1 and H > 1:
        cap = min(cap, max(H // 2, 1))     # keep >= 2 grid steps for v7x megacore
    budget = int(vmem_limit * 0.6)
    best = 1
    for d in range(1, H + 1):
        if H % d == 0 and d <= cap and \
                _est_vmem_bytes(d, W, cin_p, cmid_p, cout_p, out_itemsize) <= budget:
            best = d
    return best


def _const_spec(shape):
    """Grid-invariant operand: index_map always returns block 0 (never re-DMA'd);
    Buffered(1) additionally drops the wasted second VMEM buffer."""
    idx = lambda n, r: (0,) * len(shape)
    if hasattr(pl, "Buffered"):
        return pl.BlockSpec(shape, idx, pipeline_mode=pl.Buffered(1))
    return pl.BlockSpec(shape, idx)


# --------------------------------------------------------------------------
# Pallas wrapper
# --------------------------------------------------------------------------
def bottleneck_forward_nhwc(x_nhwc, kparams, *, row_tile=32, out_dtype=jnp.float32):
    """x_nhwc: (N, H, W, Cin) f32.  Returns (N, H, W, Cin) in out_dtype.

    Pass out_dtype=jnp.bfloat16 when the consumer accepts bf16 — it halves the
    HBM write traffic of this memory-bound kernel."""
    w1k, b1k, w2k, b2k, w3k, b3k = kparams
    N, H, W, cin = x_nhwc.shape
    cin_p, cmid_p = w1k.shape
    cout_p = w3k.shape[1]
    assert cin_p == cout_p, "residual add requires padded Cin == padded Cout"

    W_p = _round_up(W, 8)            # keep (TH, W) -> TH*W reshapes tile-aligned
    vmem_limit = _vmem_limit_bytes()
    out_itemsize = jnp.dtype(out_dtype).itemsize
    TH = _pick_row_tile(H, W_p, cin_p, cmid_p, cout_p, out_itemsize,
                        vmem_limit, row_tile, N)
    n_r = H // TH

    x_p = x_nhwc
    if cin_p != cin or W_p != W:
        x_p = jnp.pad(x_nhwc, ((0, 0), (0, 0), (0, W_p - W), (0, cin_p - cin)))
    x_p = x_p.astype(jnp.bfloat16)

    kernel = functools.partial(_bottleneck_kernel, TH, W_p, W,
                               cin_p, cmid_p, cout_p)

    out = pl.pallas_call(
        kernel,
        out_shape=jax.ShapeDtypeStruct((N, H, W_p, cout_p), out_dtype),
        grid_spec=pltpu.PrefetchScalarGridSpec(
            num_scalar_prefetch=0,
            grid=(N, n_r),
            in_specs=[
                # 1-row halo above (row r*TH - 1, clamped; zeroed in-kernel at r==0)
                pl.BlockSpec((1, 1, W_p, cin_p),
                             lambda n, r: (n, jnp.maximum(r * TH - 1, 0), 0, 0)),
                # TH-row body
                pl.BlockSpec((1, TH, W_p, cin_p), lambda n, r: (n, r, 0, 0)),
                # 1-row halo below (row (r+1)*TH, clamped; zeroed at last tile)
                pl.BlockSpec((1, 1, W_p, cin_p),
                             lambda n, r: (n, jnp.minimum((r + 1) * TH, H - 1), 0, 0)),
                _const_spec((cin_p, cmid_p)),          # w1 (single-buffered)
                _const_spec((1, cmid_p)),              # b1
                _const_spec((3, 3 * cmid_p, cmid_p)),  # w2
                _const_spec((1, cmid_p)),              # b2
                _const_spec((cmid_p, cout_p)),         # w3
                _const_spec((1, cout_p)),              # b3
            ],
            out_specs=pl.BlockSpec((1, TH, W_p, cout_p), lambda n, r: (n, r, 0, 0)),
            scratch_shapes=[pltpu.VMEM((TH + 2, W_p, 3 * cmid_p), jnp.bfloat16)],
        ),
        compiler_params=pltpu.CompilerParams(
            dimension_semantics=("parallel", "parallel"),
            vmem_limit_bytes=vmem_limit),
    )(x_p, x_p, x_p, w1k, b1k, w2k, b2k, w3k, b3k)

    if cout_p != cin or W_p != W:     # skip the extra HBM pass when already dense
        out = out[:, :, :W, :cin]
    return out


def bottleneck_forward_nchw(x_nchw, kparams, **kw):
    """Convenience adapter matching the PyTorch NCHW interface (adds two HBM
    transposes; prefer the NHWC entry point)."""
    y = bottleneck_forward_nhwc(jnp.transpose(x_nchw, (0, 2, 3, 1)), kparams, **kw)
    return jnp.transpose(y, (0, 3, 1, 2))


# --------------------------------------------------------------------------
# Synthetic parameters (PyTorch layouts) and pure-JAX f32 reference
# --------------------------------------------------------------------------
def make_params(key, inplanes, planes):
    cout = planes * 4
    ks = jax.random.split(key, 15)
    w1 = jax.random.normal(ks[0], (planes, inplanes, 1, 1), jnp.float32) * 0.2
    w2 = jax.random.normal(ks[1], (planes, planes, 3, 3), jnp.float32) * 0.2
    w3 = jax.random.normal(ks[2], (cout, planes, 1, 1), jnp.float32) * 0.2

    def bn(k0, k1, k2, k3, c):
        g = 0.5 + jax.random.uniform(k0, (c,), jnp.float32)
        b = jax.random.normal(k1, (c,), jnp.float32) * 0.1
        m = jax.random.normal(k2, (c,), jnp.float32) * 0.1
        v = 0.5 + jax.random.uniform(k3, (c,), jnp.float32)
        return g, b, m, v

    g1, be1, m1, v1 = bn(ks[3], ks[4], ks[5], ks[6], planes)
    g2, be2, m2, v2 = bn(ks[7], ks[8], ks[9], ks[10], planes)
    g3, be3, m3, v3 = bn(ks[11], ks[12], ks[13], ks[14], cout)
    return (w1, g1, be1, m1, v1, w2, g2, be2, m2, v2, w3, g3, be3, m3, v3)


def reference_forward_nhwc(x, tparams, eps=1e-5):
    """f32 reference mirroring the PyTorch Bottleneck (eval-mode BN)."""
    (w1, g1, be1, m1, v1,
     w2, g2, be2, m2, v2,
     w3, g3, be3, m3, v3) = tparams
    dn = ('NHWC', 'OIHW', 'NHWC')
    hp = lax.Precision.HIGHEST

    def bn(y, g, b, m, v):
        return (y - m) / jnp.sqrt(v + eps) * g + b

    relu = lambda v: jnp.maximum(v, 0.0)
    out = lax.conv_general_dilated(x, w1, (1, 1), 'VALID',
                                   dimension_numbers=dn, precision=hp)
    out = relu(bn(out, g1, be1, m1, v1))
    out = lax.conv_general_dilated(out, w2, (1, 1), ((1, 1), (1, 1)),
                                   dimension_numbers=dn, precision=hp)
    out = relu(bn(out, g2, be2, m2, v2))
    out = lax.conv_general_dilated(out, w3, (1, 1), 'VALID',
                                   dimension_numbers=dn, precision=hp)
    out = bn(out, g3, be3, m3, v3)
    return relu(out + x)


# --------------------------------------------------------------------------
if __name__ == "__main__":
    key = jax.random.PRNGKey(0)
    kx, kp = jax.random.split(key)

    N, planes = 2, 8
    inplanes = planes * 4      # residual path requires inplanes == planes * expansion
    H = W = 16

    x = jax.random.normal(kx, (N, H, W, inplanes), jnp.float32)   # NHWC
    tparams = make_params(kp, inplanes, planes)
    kparams = fold_and_pack_params(tparams)

    fwd = jax.jit(bottleneck_forward_nhwc)
    out = jax.block_until_ready(fwd(x, kparams))

    ref = reference_forward_nhwc(x, tparams)
    assert out.shape == (N, H, W, inplanes)
    max_err = float(jnp.max(jnp.abs(out - ref)))
    assert jnp.allclose(out, ref, rtol=3e-2, atol=3e-2), f"max abs err {max_err}"

    print("KERNEL_OK")
</pallas_src>

<mosaic_0001>
module attributes {stable_mosaic.version = 11 : i64} {
  func.func @_bottleneck_kernel(%arg0: i32, %arg1: i32, %arg2: memref<1x1x16x128xbf16, #tpu.memory_space<vmem>>, %arg3: memref<1x16x16x128xbf16, #tpu.memory_space<vmem>>, %arg4: memref<1x1x16x128xbf16, #tpu.memory_space<vmem>>, %arg5: memref<128x128xbf16, #tpu.memory_space<vmem>>, %arg6: memref<1x128xf32, #tpu.memory_space<vmem>>, %arg7: memref<3x384x128xbf16, #tpu.memory_space<vmem>>, %arg8: memref<1x128xf32, #tpu.memory_space<vmem>>, %arg9: memref<128x128xbf16, #tpu.memory_space<vmem>>, %arg10: memref<1x128xf32, #tpu.memory_space<vmem>>, %arg11: memref<1x16x16x128xf32, #tpu.memory_space<vmem>>, %arg12: memref<18x16x384xbf16, #tpu.memory_space<vmem>>) attributes {dimension_semantics = [#tpu.dimension_semantics<parallel>, #tpu.dimension_semantics<parallel>], iteration_bounds = array<i64: 2, 1>, scalar_prefetch = 0 : i64, scratch_operands = 1 : i64, tpu.core_type = #tpu.core_type<tc>, window_params = [{transform_indices = @transform_0, window_bounds = array<i64: 1, 1, 16, 128>}, {transform_indices = @transform_1, window_bounds = array<i64: 1, 16, 16, 128>}, {transform_indices = @transform_2, window_bounds = array<i64: 1, 1, 16, 128>}, {pipeline_mode = #tpu.pipeline_mode<synchronous>, transform_indices = @transform_3, window_bounds = array<i64: 128, 128>}, {pipeline_mode = #tpu.pipeline_mode<synchronous>, transform_indices = @transform_4, window_bounds = array<i64: 1, 128>}, {pipeline_mode = #tpu.pipeline_mode<synchronous>, transform_indices = @transform_5, window_bounds = array<i64: 3, 384, 128>}, {pipeline_mode = #tpu.pipeline_mode<synchronous>, transform_indices = @transform_6, window_bounds = array<i64: 1, 128>}, {pipeline_mode = #tpu.pipeline_mode<synchronous>, transform_indices = @transform_7, window_bounds = array<i64: 128, 128>}, {pipeline_mode = #tpu.pipeline_mode<synchronous>, transform_indices = @transform_8, window_bounds = array<i64: 1, 128>}, {transform_indices = @transform_9, window_bounds = array<i64: 1, 16, 16, 128>}]} {
    %c0 = arith.constant 0 : index
    %c0_0 = arith.constant 0 : index
    %0 = vector.load %arg5[%c0, %c0_0] : memref<128x128xbf16, #tpu.memory_space<vmem>>, vector<128x128xbf16>
    %c0_1 = arith.constant 0 : index
    %c0_2 = arith.constant 0 : index
    %1 = vector.load %arg6[%c0_1, %c0_2] : memref<1x128xf32, #tpu.memory_space<vmem>>, vector<1x128xf32>
    %2 = tpu.iota {dimensions = array<i32: 1>} : vector<1x16x1xi32>
    %c0_3 = arith.constant 0 : index
    %c0_4 = arith.constant 0 : index
    %c0_5 = arith.constant 0 : index
    %c0_6 = arith.constant 0 : index
    %3 = vector.load %arg3[%c0_3, %c0_4, %c0_5, %c0_6] : memref<1x16x16x128xbf16, #tpu.memory_space<vmem>>, vector<1x16x16x128xbf16>
    %4 = vector.shape_cast %3 : vector<1x16x16x128xbf16> to vector<16x16x128xbf16>
    %5 = vector.shape_cast %4 : vector<16x16x128xbf16> to vector<256x128xbf16>
    %cst = arith.constant dense<0.000000e+00> : vector<256x128xf32>
    %6 = tpu.matmul %5, %0, %cst {dimension_numbers = #tpu.dot_dimension_numbers<[1], [0], [0], [1], [0, 0, 1, 1], [], []>} : vector<256x128xbf16>, vector<128x128xbf16>, vector<256x128xf32> -> vector<256x128xf32>
    %7 = vector.broadcast %1 : vector<1x128xf32> to vector<256x128xf32>
    %8 = arith.addf %6, %7 : vector<256x128xf32>
    %cst_7 = arith.constant 0.000000e+00 : f32
    %9 = vector.broadcast %cst_7 : f32 to vector<256x128xf32>
    %10 = arith.maximumf %8, %9 : vector<256x128xf32>
    %11 = vector.shape_cast %10 : vector<256x128xf32> to vector<16x16x128xf32>
    %c0_i32 = arith.constant 0 : i32
    %12 = vector.broadcast %c0_i32 : i32 to vector<1x16x1xi32>
    %13 = arith.cmpi eq, %2, %12 : vector<1x16x1xi32>
    %c1_i32 = arith.constant 1 : i32
    %14 = tpu.dynamic_rotate %11 by %c1_i32 dim 1 : vector<16x16x128xf32>, i32 -> vector<16x16x128xf32>
    %cst_8 = arith.constant 0.000000e+00 : f32
    %15 = vector.shape_cast %13 : vector<1x16x1xi1> to vector<1x16x1xi1>
    %16 = vector.broadcast %15 : vector<1x16x1xi1> to vector<16x16x128xi1>
    %17 = vector.broadcast %cst_8 : f32 to vector<16x16x128xf32>
    %18 = arith.select %16, %17, %14 : vector<16x16x128xi1>, vector<16x16x128xf32>
    %c15_i32 = arith.constant 15 : i32
    %19 = vector.broadcast %c15_i32 : i32 to vector<1x16x1xi32>
    %20 = arith.cmpi eq, %2, %19 : vector<1x16x1xi32>
    %c15_i32_9 = arith.constant 15 : i32
    %21 = tpu.dynamic_rotate %11 by %c15_i32_9 dim 1 : vector<16x16x128xf32>, i32 -> vector<16x16x128xf32>
    %cst_10 = arith.constant 0.000000e+00 : f32
    %22 = vector.shape_cast %20 : vector<1x16x1xi1> to vector<1x16x1xi1>
    %23 = vector.broadcast %22 : vector<1x16x1xi1> to vector<16x16x128xi1>
    %24 = vector.broadcast %cst_10 : f32 to vector<16x16x128xf32>
    %25 = arith.select %23, %24, %21 : vector<16x16x128xi1>, vector<16x16x128xf32>
    %26 = arith.truncf %18 : vector<16x16x128xf32> to vector<16x16x128xbf16>
    %27 = arith.truncf %11 : vector<16x16x128xf32> to vector<16x16x128xbf16>
    %28 = arith.truncf %25 : vector<16x16x128xf32> to vector<16x16x128xbf16>
    %29 = tpu.concatenate %26, %27, %28 in 2 : vector<16x16x128xbf16>, vector<16x16x128xbf16>, vector<16x16x128xbf16> -> vector<16x16x384xbf16>
    %c1 = arith.constant 1 : index
    %c0_11 = arith.constant 0 : index
    %c0_12 = arith.constant 0 : index
    %30 = vector.load %arg12[%c1, %c0_11, %c0_12] : memref<18x16x384xbf16, #tpu.memory_space<vmem>>, vector<16x16x384xbf16>
    tpu.vector_store %arg12[%c1, %c0_11, %c0_12], %29 {strides = array<i32>} : memref<18x16x384xbf16, #tpu.memory_space<vmem>>, vector<16x16x384xbf16>,
    %c0_13 = arith.constant 0 : index
    %c0_14 = arith.constant 0 : index
    %c0_15 = arith.constant 0 : index
    %c0_16 = arith.constant 0 : index
    %31 = vector.load %arg2[%c0_13, %c0_14, %c0_15, %c0_16] : memref<1x1x16x128xbf16, #tpu.memory_space<vmem>>, vector<1x1x16x128xbf16>
    %32 = vector.shape_cast %31 : vector<1x1x16x128xbf16> to vector<16x128xbf16>
    %cst_17 = arith.constant dense<0.000000e+00> : vector<16x128xf32>
    %33 = tpu.matmul %32, %0, %cst_17 {dimension_numbers = #tpu.dot_dimension_numbers<[1], [0], [0], [1], [0, 0, 1, 1], [], []>} : vector<16x128xbf16>, vector<128x128xbf16>, vector<16x128xf32> -> vector<16x128xf32>
    %34 = vector.broadcast %1 : vector<1x128xf32> to vector<16x128xf32>
    %35 = arith.addf %33, %34 : vector<16x128xf32>
    %cst_18 = arith.constant 0.000000e+00 : f32
    %36 = vector.broadcast %cst_18 : f32 to vector<16x128xf32>
    %37 = arith.maximumf %35, %36 : vector<16x128xf32>
    %38 = vector.shape_cast %37 : vector<16x128xf32> to vector<1x16x128xf32>
    %c0_i32_19 = arith.constant 0 : i32
    %39 = vector.broadcast %c0_i32_19 : i32 to vector<1x16x1xi32>
    %40 = arith.cmpi eq, %2, %39 : vector<1x16x1xi32>
    %c1_i32_20 = arith.constant 1 : i32
    %41 = tpu.dynamic_rotate %38 by %c1_i32_20 dim 1 : vector<1x16x128xf32>, i32 -> vector<1x16x128xf32>
    %cst_21 = arith.constant 0.000000e+00 : f32
    %42 = vector.shape_cast %40 : vector<1x16x1xi1> to vector<1x16x1xi1>
    %43 = vector.broadcast %42 : vector<1x16x1xi1> to vector<1x16x128xi1>
    %44 = vector.broadcast %cst_21 : f32 to vector<1x16x128xf32>
    %45 = arith.select %43, %44, %41 : vector<1x16x128xi1>, vector<1x16x128xf32>
    %c15_i32_22 = arith.constant 15 : i32
    %46 = vector.broadcast %c15_i32_22 : i32 to vector<1x16x1xi32>
    %47 = arith.cmpi eq, %2, %46 : vector<1x16x1xi32>
    %c15_i32_23 = arith.constant 15 : i32
    %48 = tpu.dynamic_rotate %38 by %c15_i32_23 dim 1 : vector<1x16x128xf32>, i32 -> vector<1x16x128xf32>
    %cst_24 = arith.constant 0.000000e+00 : f32
    %49 = vector.shape_cast %47 : vector<1x16x1xi1> to vector<1x16x1xi1>
    %50 = vector.broadcast %49 : vector<1x16x1xi1> to vector<1x16x128xi1>
    %51 = vector.broadcast %cst_24 : f32 to vector<1x16x128xf32>
    %52 = arith.select %50, %51, %48 : vector<1x16x128xi1>, vector<1x16x128xf32>
    %53 = arith.truncf %45 : vector<1x16x128xf32> to vector<1x16x128xbf16>
    %54 = arith.truncf %38 : vector<1x16x128xf32> to vector<1x16x128xbf16>
    %55 = arith.truncf %52 : vector<1x16x128xf32> to vector<1x16x128xbf16>
    %56 = tpu.concatenate %53, %54, %55 in 2 : vector<1x16x128xbf16>, vector<1x16x128xbf16>, vector<1x16x128xbf16> -> vector<1x16x384xbf16>
    %c0_25 = arith.constant 0 : index
    %c0_26 = arith.constant 0 : index
    %c0_27 = arith.constant 0 : index
    %57 = vector.load %arg12[%c0_25, %c0_26, %c0_27] : memref<18x16x384xbf16, #tpu.memory_space<vmem>>, vector<1x16x384xbf16>
    tpu.vector_store %arg12[%c0_25, %c0_26, %c0_27], %56 {strides = array<i32>} : memref<18x16x384xbf16, #tpu.memory_space<vmem>>, vector<1x16x384xbf16>,
    %c0_28 = arith.constant 0 : index
    %c0_29 = arith.constant 0 : index
    %c0_30 = arith.constant 0 : index
    %c0_31 = arith.constant 0 : index
    %58 = vector.load %arg4[%c0_28, %c0_29, %c0_30, %c0_31] : memref<1x1x16x128xbf16, #tpu.memory_space<vmem>>, vector<1x1x16x128xbf16>
    %59 = vector.shape_cast %58 : vector<1x1x16x128xbf16> to vector<16x128xbf16>
    %cst_32 = arith.constant dense<0.000000e+00> : vector<16x128xf32>
    %60 = tpu.matmul %59, %0, %cst_32 {dimension_numbers = #tpu.dot_dimension_numbers<[1], [0], [0], [1], [0, 0, 1, 1], [], []>} : vector<16x128xbf16>, vector<128x128xbf16>, vector<16x128xf32> -> vector<16x128xf32>
    %61 = vector.broadcast %1 : vector<1x128xf32> to vector<16x128xf32>
    %62 = arith.addf %60, %61 : vector<16x128xf32>
    %cst_33 = arith.constant 0.000000e+00 : f32
    %63 = vector.broadcast %cst_33 : f32 to vector<16x128xf32>
    %64 = arith.maximumf %62, %63 : vector<16x128xf32>
    %65 = vector.shape_cast %64 : vector<16x128xf32> to vector<1x16x128xf32>
    %c0_i32_34 = arith.constant 0 : i32
    %66 = vector.broadcast %c0_i32_34 : i32 to vector<1x16x1xi32>
    %67 = arith.cmpi eq, %2, %66 : vector<1x16x1xi32>
    %c1_i32_35 = arith.constant 1 : i32
    %68 = tpu.dynamic_rotate %65 by %c1_i32_35 dim 1 : vector<1x16x128xf32>, i32 -> vector<1x16x128xf32>
    %cst_36 = arith.constant 0.000000e+00 : f32
    %69 = vector.shape_cast %67 : vector<1x16x1xi1> to vector<1x16x1xi1>
    %70 = vector.broadcast %69 : vector<1x16x1xi1> to vector<1x16x128xi1>
    %71 = vector.broadcast %cst_36 : f32 to vector<1x16x128xf32>
    %72 = arith.select %70, %71, %68 : vector<1x16x128xi1>, vector<1x16x128xf32>
    %c15_i32_37 = arith.constant 15 : i32
    %73 = vector.broadcast %c15_i32_37 : i32 to vector<1x16x1xi32>
    %74 = arith.cmpi eq, %2, %73 : vector<1x16x1xi32>
    %c15_i32_38 = arith.constant 15 : i32
    %75 = tpu.dynamic_rotate %65 by %c15_i32_38 dim 1 : vector<1x16x128xf32>, i32 -> vector<1x16x128xf32>
    %cst_39 = arith.constant 0.000000e+00 : f32
    %76 = vector.shape_cast %74 : vector<1x16x1xi1> to vector<1x16x1xi1>
    %77 = vector.broadcast %76 : vector<1x16x1xi1> to vector<1x16x128xi1>
    %78 = vector.broadcast %cst_39 : f32 to vector<1x16x128xf32>
    %79 = arith.select %77, %78, %75 : vector<1x16x128xi1>, vector<1x16x128xf32>
    %80 = arith.truncf %72 : vector<1x16x128xf32> to vector<1x16x128xbf16>
    %81 = arith.truncf %65 : vector<1x16x128xf32> to vector<1x16x128xbf16>
    %82 = arith.truncf %79 : vector<1x16x128xf32> to vector<1x16x128xbf16>
    %83 = tpu.concatenate %80, %81, %82 in 2 : vector<1x16x128xbf16>, vector<1x16x128xbf16>, vector<1x16x128xbf16> -> vector<1x16x384xbf16>
    %c17 = arith.constant 17 : index
    %c0_40 = arith.constant 0 : index
    %c0_41 = arith.constant 0 : index
    %84 = vector.load %arg12[%c17, %c0_40, %c0_41] : memref<18x16x384xbf16, #tpu.memory_space<vmem>>, vector<1x16x384xbf16>
    tpu.vector_store %arg12[%c17, %c0_40, %c0_41], %83 {strides = array<i32>} : memref<18x16x384xbf16, #tpu.memory_space<vmem>>, vector<1x16x384xbf16>,
    %c0_i32_42 = arith.constant 0 : i32
    %85 = arith.cmpi eq, %arg1, %c0_i32_42 : i32
    %86 = arith.extui %85 : i1 to i32
    %c0_i32_43 = arith.constant 0 : i32
    %87 = arith.cmpi ne, %86, %c0_i32_43 : i32
    scf.if %87 {
      %cst_79 = arith.constant 0.000000e+00 : bf16
      %125 = vector.broadcast %cst_79 : bf16 to vector<1x16x384xbf16>
      %c0_80 = arith.constant 0 : index
      %c0_81 = arith.constant 0 : index
      %c0_82 = arith.constant 0 : index
      %126 = vector.load %arg12[%c0_80, %c0_81, %c0_82] : memref<18x16x384xbf16, #tpu.memory_space<vmem>>, vector<1x16x384xbf16>
      tpu.vector_store %arg12[%c0_80, %c0_81, %c0_82], %125 {strides = array<i32>} : memref<18x16x384xbf16, #tpu.memory_space<vmem>>, vector<1x16x384xbf16>,
    } else {
    }
    %c0_i32_44 = arith.constant 0 : i32
    %88 = arith.cmpi eq, %arg1, %c0_i32_44 : i32
    %89 = arith.extui %88 : i1 to i32
    %c0_i32_45 = arith.constant 0 : i32
    %90 = arith.cmpi ne, %89, %c0_i32_45 : i32
    scf.if %90 {
      %cst_79 = arith.constant 0.000000e+00 : bf16
      %125 = vector.broadcast %cst_79 : bf16 to vector<1x16x384xbf16>
      %c17_80 = arith.constant 17 : index
      %c0_81 = arith.constant 0 : index
      %c0_82 = arith.constant 0 : index
      %126 = vector.load %arg12[%c17_80, %c0_81, %c0_82] : memref<18x16x384xbf16, #tpu.memory_space<vmem>>, vector<1x16x384xbf16>
      tpu.vector_store %arg12[%c17_80, %c0_81, %c0_82], %125 {strides = array<i32>} : memref<18x16x384xbf16, #tpu.memory_space<vmem>>, vector<1x16x384xbf16>,
    } else {
    }
    %c0_46 = arith.constant 0 : index
    %c0_47 = arith.constant 0 : index
    %c0_48 = arith.constant 0 : index
    %91 = vector.load %arg12[%c0_46, %c0_47, %c0_48] : memref<18x16x384xbf16, #tpu.memory_space<vmem>>, vector<16x16x384xbf16>
    %92 = vector.shape_cast %91 : vector<16x16x384xbf16> to vector<256x384xbf16>
    %c0_49 = arith.constant 0 : index
    %c0_50 = arith.constant 0 : index
    %c0_51 = arith.constant 0 : index
    %93 = vector.load %arg7[%c0_49, %c0_50, %c0_51] : memref<3x384x128xbf16, #tpu.memory_space<vmem>>, vector<1x384x128xbf16>
    %94 = vector.shape_cast %93 : vector<1x384x128xbf16> to vector<384x128xbf16>
    %cst_52 = arith.constant dense<0.000000e+00> : vector<256x128xf32>
    %95 = tpu.matmul %92, %94, %cst_52 {dimension_numbers = #tpu.dot_dimension_numbers<[1], [0], [0], [1], [0, 0, 1, 1], [], []>} : vector<256x384xbf16>, vector<384x128xbf16>, vector<256x128xf32> -> vector<256x128xf32>
    %c1_53 = arith.constant 1 : index
    %c0_54 = arith.constant 0 : index
    %c0_55 = arith.constant 0 : index
    %96 = vector.load %arg12[%c1_53, %c0_54, %c0_55] : memref<18x16x384xbf16, #tpu.memory_space<vmem>>, vector<16x16x384xbf16>
    %97 = vector.shape_cast %96 : vector<16x16x384xbf16> to vector<256x384xbf16>
    %c1_56 = arith.constant 1 : index
    %c0_57 = arith.constant 0 : index
    %c0_58 = arith.constant 0 : index
    %98 = vector.load %arg7[%c1_56, %c0_57, %c0_58] : memref<3x384x128xbf16, #tpu.memory_space<vmem>>, vector<1x384x128xbf16>
    %99 = vector.shape_cast %98 : vector<1x384x128xbf16> to vector<384x128xbf16>
    %cst_59 = arith.constant dense<0.000000e+00> : vector<256x128xf32>
    %100 = tpu.matmul %97, %99, %cst_59 {dimension_numbers = #tpu.dot_dimension_numbers<[1], [0], [0], [1], [0, 0, 1, 1], [], []>} : vector<256x384xbf16>, vector<384x128xbf16>, vector<256x128xf32> -> vector<256x128xf32>
    %101 = arith.addf %95, %100 : vector<256x128xf32>
    %c2 = arith.constant 2 : index
    %c0_60 = arith.constant 0 : index
    %c0_61 = arith.constant 0 : index
    %102 = vector.load %arg12[%c2, %c0_60, %c0_61] : memref<18x16x384xbf16, #tpu.memory_space<vmem>>, vector<16x16x384xbf16>
    %103 = vector.shape_cast %102 : vector<16x16x384xbf16> to vector<256x384xbf16>
    %c2_62 = arith.constant 2 : index
    %c0_63 = arith.constant 0 : index
    %c0_64 = arith.constant 0 : index
    %104 = vector.load %arg7[%c2_62, %c0_63, %c0_64] : memref<3x384x128xbf16, #tpu.memory_space<vmem>>, vector<1x384x128xbf16>
    %105 = vector.shape_cast %104 : vector<1x384x128xbf16> to vector<384x128xbf16>
    %cst_65 = arith.constant dense<0.000000e+00> : vector<256x128xf32>
    %106 = tpu.matmul %103, %105, %cst_65 {dimension_numbers = #tpu.dot_dimension_numbers<[1], [0], [0], [1], [0, 0, 1, 1], [], []>} : vector<256x384xbf16>, vector<384x128xbf16>, vector<256x128xf32> -> vector<256x128xf32>
    %107 = arith.addf %101, %106 : vector<256x128xf32>
    %c0_66 = arith.constant 0 : index
    %c0_67 = arith.constant 0 : index
    %108 = vector.load %arg8[%c0_66, %c0_67] : memref<1x128xf32, #tpu.memory_space<vmem>>, vector<1x128xf32>
    %109 = vector.broadcast %108 : vector<1x128xf32> to vector<256x128xf32>
    %110 = arith.addf %107, %109 : vector<256x128xf32>
    %cst_68 = arith.constant 0.000000e+00 : f32
    %111 = vector.broadcast %cst_68 : f32 to vector<256x128xf32>
    %112 = arith.maximumf %110, %111 : vector<256x128xf32>
    %113 = arith.truncf %112 : vector<256x128xf32> to vector<256x128xbf16>
    %c0_69 = arith.constant 0 : index
    %c0_70 = arith.constant 0 : index
    %114 = vector.load %arg9[%c0_69, %c0_70] : memref<128x128xbf16, #tpu.memory_space<vmem>>, vector<128x128xbf16>
    %cst_71 = arith.constant dense<0.000000e+00> : vector<256x128xf32>
    %115 = tpu.matmul %113, %114, %cst_71 {dimension_numbers = #tpu.dot_dimension_numbers<[1], [0], [0], [1], [0, 0, 1, 1], [], []>} : vector<256x128xbf16>, vector<128x128xbf16>, vector<256x128xf32> -> vector<256x128xf32>
    %c0_72 = arith.constant 0 : index
    %c0_73 = arith.constant 0 : index
    %116 = vector.load %arg10[%c0_72, %c0_73] : memref<1x128xf32, #tpu.memory_space<vmem>>, vector<1x128xf32>
    %117 = vector.broadcast %116 : vector<1x128xf32> to vector<256x128xf32>
    %118 = arith.addf %115, %117 : vector<256x128xf32>
    %119 = arith.extf %5 : vector<256x128xbf16> to vector<256x128xf32>
    %120 = arith.addf %118, %119 : vector<256x128xf32>
    %cst_74 = arith.constant 0.000000e+00 : f32
    %121 = vector.broadcast %cst_74 : f32 to vector<256x128xf32>
    %122 = arith.maximumf %120, %121 : vector<256x128xf32>
    %123 = vector.shape_cast %122 : vector<256x128xf32> to vector<1x16x16x128xf32>
    %c0_75 = arith.constant 0 : index
    %c0_76 = arith.constant 0 : index
    %c0_77 = arith.constant 0 : index
    %c0_78 = arith.constant 0 : index
    %124 = vector.load %arg11[%c0_75, %c0_76, %c0_77, %c0_78] : memref<1x16x16x128xf32, #tpu.memory_space<vmem>>, vector<1x16x16x128xf32>
    tpu.vector_store %arg11[%c0_75, %c0_76, %c0_77, %c0_78], %123 {strides = array<i32>} : memref<1x16x16x128xf32, #tpu.memory_space<vmem>>, vector<1x16x16x128xf32>,
    return
  }
  func.func @transform_0(%arg0: i32, %arg1: i32) -> (i32, i32, i32, i32) {
    %c16_i32 = arith.constant 16 : i32
    %0 = arith.muli %arg1, %c16_i32 : i32
    %c1_i32 = arith.constant 1 : i32
    %1 = arith.subi %0, %c1_i32 : i32
    %c0_i32 = arith.constant 0 : i32
    %2 = arith.maxsi %1, %c0_i32 : i32
    %c0_i32_0 = arith.constant 0 : i32
    %c0_i32_1 = arith.constant 0 : i32
    %c0_i32_2 = arith.constant 0 : i32
    return %arg0, %2, %c0_i32_0, %c0_i32_1 : i32, i32, i32, i32
  }
  func.func @transform_1(%arg0: i32, %arg1: i32) -> (i32, i32, i32, i32) {
    %c0_i32 = arith.constant 0 : i32
    %c0_i32_0 = arith.constant 0 : i32
    %c0_i32_1 = arith.constant 0 : i32
    return %arg0, %arg1, %c0_i32, %c0_i32_0 : i32, i32, i32, i32
  }
  func.func @transform_2(%arg0: i32, %arg1: i32) -> (i32, i32, i32, i32) {
    %c1_i32 = arith.constant 1 : i32
    %0 = arith.addi %arg1, %c1_i32 : i32
    %c16_i32 = arith.constant 16 : i32
    %1 = arith.muli %0, %c16_i32 : i32
    %c15_i32 = arith.constant 15 : i32
    %2 = arith.minsi %1, %c15_i32 : i32
    %c0_i32 = arith.constant 0 : i32
    %c0_i32_0 = arith.constant 0 : i32
    %c0_i32_1 = arith.constant 0 : i32
    return %arg0, %2, %c0_i32, %c0_i32_0 : i32, i32, i32, i32
  }
  func.func @transform_3(%arg0: i32, %arg1: i32) -> (i32, i32) {
    %c0_i32 = arith.constant 0 : i32
    %c0_i32_0 = arith.constant 0 : i32
    %c0_i32_1 = arith.constant 0 : i32
    return %c0_i32, %c0_i32_0 : i32, i32
  }
  func.func @transform_4(%arg0: i32, %arg1: i32) -> (i32, i32) {
    %c0_i32 = arith.constant 0 : i32
    %c0_i32_0 = arith.constant 0 : i32
    %c0_i32_1 = arith.constant 0 : i32
    return %c0_i32, %c0_i32_0 : i32, i32
  }
  func.func @transform_5(%arg0: i32, %arg1: i32) -> (i32, i32, i32) {
    %c0_i32 = arith.constant 0 : i32
    %c0_i32_0 = arith.constant 0 : i32
    %c0_i32_1 = arith.constant 0 : i32
    %c0_i32_2 = arith.constant 0 : i32
    return %c0_i32, %c0_i32_0, %c0_i32_1 : i32, i32, i32
  }
  func.func @transform_6(%arg0: i32, %arg1: i32) -> (i32, i32) {
    %c0_i32 = arith.constant 0 : i32
    %c0_i32_0 = arith.constant 0 : i32
    %c0_i32_1 = arith.constant 0 : i32
    return %c0_i32, %c0_i32_0 : i32, i32
  }
  func.func @transform_7(%arg0: i32, %arg1: i32) -> (i32, i32) {
    %c0_i32 = arith.constant 0 : i32
    %c0_i32_0 = arith.constant 0 : i32
    %c0_i32_1 = arith.constant 0 : i32
    return %c0_i32, %c0_i32_0 : i32, i32
  }
  func.func @transform_8(%arg0: i32, %arg1: i32) -> (i32, i32) {
    %c0_i32 = arith.constant 0 : i32
    %c0_i32_0 = arith.constant 0 : i32
    %c0_i32_1 = arith.constant 0 : i32
    return %c0_i32, %c0_i32_0 : i32, i32
  }
  func.func @transform_9(%arg0: i32, %arg1: i32) -> (i32, i32, i32, i32) {
    %c0_i32 = arith.constant 0 : i32
    %c0_i32_0 = arith.constant 0 : i32
    %c0_i32_1 = arith.constant 0 : i32
    return %arg0, %arg1, %c0_i32, %c0_i32_0 : i32, i32, i32, i32
  }
}

</mosaic_0001>

<bundles_post_ra>
// kernel: bottleneck_forward_nhwc.1
= control target key start
LH: loop header
LB: loop body
LE: loop exit
PB: predicated region body
PF: predicated region fallthrough
CT: control target
= control target key end

     0   :  { %s7377_s0 = inlined_call_operand.vmem [shape: bf16[2,16,16,128], index: 0, kind: input, shape index: {}, may-alias: {0,1,2}]   ;;  %s7378_s1 = inlined_call_operand.vmem [shape: bf16[2,16,16,128], index: 1, kind: input, shape index: {}, may-alias: {0,1,2}]   ;;  %s7379_s2 = inlined_call_operand.vmem [shape: bf16[2,16,16,128], index: 2, kind: input, shape index: {}, may-alias: {0,1,2}]   ;;  %s7380_s3 = inlined_call_operand.vmem [shape: bf16[128,128], index: 3, kind: input, shape index: {}]   ;;  %s7381_s4 = inlined_call_operand.vmem [shape: f32[1,128], index: 4, kind: input, shape index: {}]   ;;  %s7382_s5 = inlined_call_operand.vmem [shape: bf16[3,384,128], index: 5, kind: input, shape index: {}]   ;;  %s7383_s6 = inlined_call_operand.vmem [shape: f32[1,128], index: 6, kind: input, shape index: {}]   ;;  %s7384_s7 = inlined_call_operand.vmem [shape: bf16[128,128], index: 7, kind: input, shape index: {}]   ;;  %s7385_s8 = inlined_call_operand.vmem [shape: f32[1,128], index: 8, kind: input, shape index: {}]   ;;  %s7386_s9 = inlined_call_operand.hbm [shape: f32[2,16,16,128], index: 9, kind: output, shape index: {}]  }
   0x1   :  { %7387 = sst [smem:[#allocation26_spill]] %s7377_s0 }
   0x2   :  { %7388 = sst [smem:[#allocation27_spill]] %s7378_s1 }
   0x3   :  { %14 = vsyncpa [#allocation4], 0 }
   0x4   :  { %16 = vsyncpa [#allocation4 + $0x1], 0  ;;  %s6115_s30 = smov 0   ;;  %s6117_s10 = smov 0  }
   0x5   :  { %s6119_s11 = smov 0   ;;  %s6121_s12 = smov 0  }
   0x6   :  { %s6123_s13 = smov 0   ;;  %s6125_s14 = smov 0  }
   0x7 LB: > { %s4526_s15 = sadd.s32 4294967295, %s6060_s14   ;;  %s4527_s16 = sadd.s32 4294967294, %s6060_s14   ;;  %s6060_s14 = sphi %s6125_s14, %s22_s14   ;;  %s6056_s13 = sphi %s6123_s13, %s7455_s13   ;;  %s6052_s12 = sphi %s6121_s12, %s7454_s12   ;;  %s6048_s11 = sphi %s6119_s11, %s7453_s11   ;;  %s6044_s10 = sphi %s6117_s10, %s7452_s10   ;;  %s6040_s30 = sphi %s6115_s30, %s7451_s30  }
   0x8   : > { %s34_s17 = sadd.s32 1, %s6056_s13  ;;  %s269_s18 = sadd.s32 1, %s6048_s11 }
   0x9   : > { %p36_p0 = scmp.ge.s32.totalorder %s34_s17, 2  ;;  %p279_p1 = scmp.ne.s32.totalorder %s6048_s11, %s6044_s10 }
   0xa   : > { %p280_p2 = scmp.eq.s32.totalorder %s4526_s15, 1  ;;  %p285_p3 = scmp.ne.s32.totalorder %s6044_s10, %s6040_s30 }
   0xb   : > { %s7457_s17 = smov (%p36_p0, %s34_s17), 0  ;;  %p286_p5 = scmp.eq.s32.totalorder %s4527_s16, 1 }
   0xc   : > { %p6155_p4 = por %p280_p2, %p279_p1  ;;  %s264_s20 = ssub.s32 %s6056_s13, %s7457_s17 }
   0xd   : > { %p4530_p6 = scmp.ge.s32.totalorder %s6060_s14, 1  ;;  %p267_p7 = scmp.eq.s32.totalorder %s264_s20, 0 }
   0xe   : > { %p6162_p8 = por %p286_p5, %p285_p3  ;;  %p376_p9 = scmp.lt.s32.totalorder %s6060_s14, 3 }
   0xf   : > { %s6168_s22 = scalar_select %p267_p7, %s6048_s11, %s269_s18  }
  0x10   : > { %p377_p10 = pnand %p4530_p6, %p376_p9 }
  0x12   : > { %380 = sbr.rel (%p377_p10) target bundleno = 1264 (0x4f0), region = 56 }
  0x17   : > { %v5650_v0 = vld [vmem:[%s7380_s3 + $0x38] sm:$0xff]  ;;  %v5649_v1 = vld [vmem:[%s7380_s3 + $0x30] sm:$0xff]  ;;  %v5648_v2 = vld [vmem:[%s7380_s3 + $0x28] sm:$0xff]  ;;  %p447_p11 = scmp.lt.s32.totalorder %s6052_s12, 1  ;;  %s7391_s1 = sld [smem:[#allocation27_spill]]  ;;  %v507_v39 = vlaneseq }
  0x18   : > { %689 = vmatpush.bf16.msra.mxu0 %v5650_v0  ;;  %1505 = vmatpush.bf16.msra.mxu1 %v5650_v0  ;;  %v5647_v3 = vld [vmem:[%s7380_s3 + $0x20] sm:$0xff]  ;;  %v5646_v4 = vld [vmem:[%s7380_s3 + $0x18] sm:$0xff]  ;;  %v5645_v5 = vld [vmem:[%s7380_s3 + $0x10] sm:$0xff]  ;;  %s7392_s0 = sld [smem:[#allocation26_spill]]  ;;  %s440_s16 = sand.u32 1, %s6044_s10  }
  0x19   : > { %5895 = vmatpush.bf16.msra.mxu2 %v5650_v0  ;;  %s448_s24 = scalar_select %p447_p11, %s6052_s12, 1  ;;  %v5644_v6 = vld [vmem:[%s7380_s3 + $0x8] sm:$0xff]  ;;  %v5643_v7 = vld [vmem:[%s7380_s3] sm:$0xff]  ;;  %v5796_v19 = vld [vmem:[%s7382_s5 + $0xf8] sm:$0xff]  ;;  %v6286_v41 = vshrl.u32 %v507_v39, 7 }
  0x1a   : > { %v5804_v20 = vld [vmem:[%s7382_s5 + $0x138] sm:$0xff]  ;;  %5903 = vmatpush.bf16.msra.mxu3 %v5796_v19  ;;  %v5795_v21 = vld [vmem:[%s7382_s5 + $0xf0] sm:$0xff]  ;;  %v5794_v23 = vld [vmem:[%s7382_s5 + $0xe8] sm:$0xff]  ;;  %s4531_s20 = sshll.u32 %s440_s16, 8 }
  0x1b   : > { %s6193_s27 = sshll.u32 %s448_s24, 7  ;;  %v5803_v22 = vld [vmem:[%s7382_s5 + $0x130] sm:$0xff]  ;;  %v5802_v24 = vld [vmem:[%s7382_s5 + $0x128] sm:$0xff]  ;;  %v5793_v25 = vld [vmem:[%s7382_s5 + $0xe0] sm:$0xff]  ;;  %v6290_v43 = vadd.s32 8, %v6286_v41  ;;  %vm810_vm0 = vcmp.eq.s32.totalorder %v6286_v41, 0 }
  0x1c   : > { %690 = vmatpush.bf16.msra.mxu0 %v5649_v1  ;;  %1506 = vmatpush.bf16.msra.mxu1 %v5649_v1  ;;  %s5642_s29 = sadd.s32 120, %s6193_s27  ;;  %v5801_v26 = vld [vmem:[%s7382_s5 + $0x120] sm:$0xff]  ;;  %v5792_v29 = vld [vmem:[%s7382_s5 + $0xd8] sm:$0xff]  ;;  %v5791_v31 = vld [vmem:[%s7382_s5 + $0xd0] sm:$0xff]  ;;  %vm844_vm1 = vcmp.lt.s32.totalorder %v6286_v41, 1  ;;  %vm947_vm3 = vcmp.lt.s32.totalorder %v6286_v41, 7 }
  0x1d   : > { %5896 = vmatpush.bf16.msra.mxu2 %v5649_v1  ;;  %s6202_s18 = scalar_lea.vmem %s7391_s1, %s6193_s27  ;;  %v5800_v30 = vld [vmem:[%s7382_s5 + $0x118] sm:$0xff]  ;;  %v6259_v32 = vld [vmem:[%s7382_s5 + $0x110] sm:$0xff]  ;;  %v5790_v33 = vld [vmem:[%s7382_s5 + $0xc8] sm:$0xff]  ;;  %vm914_vm2 = vcmp.eq.s32.totalorder %v6290_v43, 15  ;;  %s7218_s23 = scalar_lea.vmem [#allocation3], %s4531_s20 }
  0x1e   : > { %v5651_v8 = vld [vmem:[%s6202_s18] sm:$0xff]  ;;  %v5652_v9 = vld [vmem:[%s6202_s18 + $0x8] sm:$0xff]  ;;  %s455_s24 = scalar_lea.vmem %s7392_s0, %s6193_s27  ;;  %v5653_v11 = vld [vmem:[%s6202_s18 + $0x10] sm:$0xff]  ;;  %5904 = vmatpush.bf16.msra.mxu3 %v5795_v21  ;;  %s6002_s20 = scalar_lea.hbm %s7386_s9, 512 }
  0x1f   : > { %v5667_v10 = vld [vmem:[%s455_s24] sm:$0xff]  ;;  %v5654_v12 = vld [vmem:[%s6202_s18 + $0x18] sm:$0xff]  ;;  %v5664_v13 = vld [vmem:[%s6202_s18 + $0x68] sm:$0xff]  ;;  %s483_s24 = scalar_lea.vmem %s7379_s2, %s5642_s29 }
  0x20   : > { %691 = vmatpush.bf16.msra.mxu0 %v5648_v2  ;;  %1507 = vmatpush.bf16.msra.mxu1 %v5648_v2  ;;  %v5655_v14 = vld [vmem:[%s6202_s18 + $0x20] sm:$0xff]  ;;  %v5665_v15 = vld [vmem:[%s6202_s18 + $0x70] sm:$0xff]  ;;  %v5656_v16 = vld [vmem:[%s6202_s18 + $0x28] sm:$0xff] }
  0x21   : > { %5897 = vmatpush.bf16.msra.mxu2 %v5648_v2  ;;  %v5657_v17 = vld [vmem:[%s6202_s18 + $0x30] sm:$0xff]  ;;  %v5666_v18 = vld [vmem:[%s6202_s18 + $0x78] sm:$0xff]  ;;  %v5668_v28 = vld [vmem:[%s483_s24] sm:$0xff]  ;;  %s5893_s24 = sshll.u32 %s6052_s12, 8  ;;  %s4384_s12 = scalar_lea.sflag [#allocation4], %s440_s16 }
  0x22   : > { %5905 = vmatpush.bf16.msra.mxu3 %v5794_v23  ;;  %v5658_v27 = vld [vmem:[%s6202_s18 + $0x38] sm:$0xff]  ;;  %v6268_v34 = vld [vmem:[%s7382_s5 + $0x108] sm:$0xff]  ;;  %v5789_v35 = vld [vmem:[%s7382_s5 + $0xc0] sm:$0xff]  ;;  %s4398_s26 = scalar_lea.hbm %s7386_s9, %s5893_s24 }
  0x23   : > { %v6277_v36 = vld [vmem:[%s7382_s5 + $0x100] sm:$0xff]  ;;  %v5660_v58 = vld [vmem:[%s6202_s18 + $0x48] sm:$0xff]  ;;  %s4401_s28 = sshll.u32 %s4398_s26, 4  ;;  %s4402_s28 = int_to_ptr.hbm [resolvable:$true] %s4401_s28 }
  0x24   : > { %692 = vmatpush.bf16.msra.mxu0 %v5647_v3  ;;  %1508 = vmatpush.bf16.msra.mxu1 %v5647_v3  ;;  %v5659_v37 = vld [vmem:[%s6202_s18 + $0x40] sm:$0xff]  ;;  %v5726_v41 = vld [vmem:[%s7382_s5 + $0x48] sm:$0xff]  ;;  %s5996_s0 = sshra.s32 %s4402_s28, 4  ;;  %s5997_s0 = int_to_ptr.hbm [resolvable:$true] %s5996_s0 }
  0x25   : > { %5898 = vmatpush.bf16.msra.mxu2 %v5647_v3  ;;  %v6284_v40 = vld [vmem:[%s7381_s4] ss:$0 sm:$0xff]  ;;  %s5998_s1 = scalar_lea.hbm %s5997_s0, 256  ;;  %p6003_p1 = scmp.lt.s32.totalorder %s5997_s0, %s7386_s9 }
  0x26   : > { %5906 = vmatpush.bf16.msra.mxu3 %v5793_v25  ;;  %p5999_p12 = scmp.ne.s32.totalorder %s5997_s0, %s5998_s1  ;;  %p6004_p2 = scmp.lt.s32.totalorder %s6002_s20, %s5998_s1 }
  0x28   : > { %693 = vmatpush.bf16.msra.mxu0 %v5646_v4  ;;  %1509 = vmatpush.bf16.msra.mxu1 %v5646_v4  ;;  %p6000_p13 = pnand %p5999_p12, %p6155_p4  ;;  %p6005_p3 = por %p6004_p2, %p6003_p1 }
  0x29   : > { %5899 = vmatpush.bf16.msra.mxu2 %v5646_v4 }
  0x2a   : > { %5907 = vmatpush.bf16.msra.mxu3 %v5792_v29  ;;  %p6001_p0 = pneg %p6000_p13 }
  0x2c   : > { %694 = vmatpush.bf16.msra.mxu0 %v5645_v5  ;;  %1510 = vmatpush.bf16.msra.mxu1 %v5645_v5  ;;  %p6006_p5 = pnand %p6005_p3, %p6001_p0 }
  0x2d   : > { %5900 = vmatpush.bf16.msra.mxu2 %v5645_v5 }
  0x2e   : > { %5908 = vmatpush.bf16.msra.mxu3 %v5791_v31 }
  0x30   : > { %695 = vmatpush.bf16.msra.mxu0 %v5644_v6  ;;  %1511 = vmatpush.bf16.msra.mxu1 %v5644_v6 }
  0x31   : > { %5901 = vmatpush.bf16.msra.mxu2 %v5644_v6 }
  0x32   : > { %5909 = vmatpush.bf16.msra.mxu3 %v5790_v33 }
  0x34   : > { %696 = vmatpush.bf16.msra.mxu0 %v5643_v7  ;;  %1512 = vmatpush.bf16.msra.mxu1 %v5643_v7 }
  0x35   : > { %5902 = vmatpush.bf16.msra.mxu2 %v5643_v7 }
  0x36   : > { %5910 = vmatpush.bf16.msra.mxu3 %v5789_v35 }
  0x37   : > { %697 = vmatmul.bf16.vlgmr.msra.gmra.mxu0 %v5651_v8  ;;  %1513 = vmatmul.bf16.vlgmr.msra.gmra.mxu1 %v5667_v10 }
  0x38   : > { %762 = vmatmul.bf16.vlgmr.msra.gmra.mxu2 %v5664_v13  ;;  %2356 = vmatpush.bf16.msrb.mxu1 %v5804_v20  ;;  %v5724_v13 = vld [vmem:[%s7382_s5 + $0x38] sm:$0xff] }
  0x39   : > { %1571 = vmatpush.bf16.msrb.mxu2 %v5650_v0  ;;  %2934 = vmatpush.bf16.msrb.mxu0 %v5724_v13 }
  0x3c   : > { %2357 = vmatpush.bf16.msrb.mxu1 %v5803_v22 }
  0x3d   : > { %1572 = vmatpush.bf16.msrb.mxu2 %v5649_v1 }
  0x40   : > { %2358 = vmatpush.bf16.msrb.mxu1 %v5802_v24 }
  0x41   : > { %1573 = vmatpush.bf16.msrb.mxu2 %v5648_v2 }
  0x44   : > { %2359 = vmatpush.bf16.msrb.mxu1 %v5801_v26 }
  0x45   : > { %1574 = vmatpush.bf16.msrb.mxu2 %v5647_v3 }
  0x47   : > { %702 = vmatmul.bf16.gmra.mxu0 %v5652_v9 }
  0x48   : > { %767 = vmatmul.bf16.gmra.mxu2 %v5665_v15  ;;  %2360 = vmatpush.bf16.msrb.mxu1 %v5800_v30 }
  0x49   : > { %1575 = vmatpush.bf16.msrb.mxu2 %v5646_v4 }
  0x4c   : > { %2361 = vmatpush.bf16.msrb.mxu1 %v6259_v32 }
  0x4d   : > { %1576 = vmatpush.bf16.msrb.mxu2 %v5645_v5 }
  0x50   : > { %2362 = vmatpush.bf16.msrb.mxu1 %v6268_v34 }
  0x51   : > { %1577 = vmatpush.bf16.msrb.mxu2 %v5644_v6 }
  0x54   : > { %2363 = vmatpush.bf16.msrb.mxu1 %v6277_v36 }
  0x55   : > { %1578 = vmatpush.bf16.msrb.mxu2 %v5643_v7 }
  0x57   : > { %707 = vmatmul.bf16.gmra.mxu0 %v5653_v11 }
  0x58   : > { %772 = vmatmul.bf16.gmra.mxu2 %v5666_v18 }
  0x59   : > { %2267 = vmatpush.bf16.msra.mxu2 %v5796_v19 }
  0x5d   : > { %2268 = vmatpush.bf16.msra.mxu2 %v5795_v21 }
  0x61   : > { %2269 = vmatpush.bf16.msra.mxu2 %v5794_v23 }
  0x65   : > { %2270 = vmatpush.bf16.msra.mxu2 %v5793_v25 }
  0x67   : > { %712 = vmatmul.bf16.gmra.mxu0 %v5654_v12 }
  0x68   : > { %1579 = vmatmul.bf16.vlgmr.msrb.gmra.mxu2 %v5668_v28 }
  0x69   : > { %2271 = vmatpush.bf16.msra.mxu2 %v5792_v29 }
  0x6d   : > { %2272 = vmatpush.bf16.msra.mxu2 %v5791_v31 }
  0x71   : > { %2273 = vmatpush.bf16.msra.mxu2 %v5790_v33 }
  0x75   : > { %2274 = vmatpush.bf16.msra.mxu2 %v5789_v35 }
  0x77   : > { %717 = vmatmul.bf16.gmra.mxu0 %v5655_v14 }
  0x79   : > { %5911 = vmatpush.bf16.msrb.mxu2 %v5804_v20 }
  0x7d   : > { %5912 = vmatpush.bf16.msrb.mxu2 %v5803_v22 }
  0x81   : > { %5913 = vmatpush.bf16.msrb.mxu2 %v5802_v24  ;;  %v5722_v24 = vld [vmem:[%s7382_s5 + $0x28] sm:$0xff] }
  0x85   : > { %5914 = vmatpush.bf16.msrb.mxu2 %v5801_v26 }
  0x87   : > { %722 = vmatmul.bf16.gmra.mxu0 %v5656_v16 }
  0x89   : > { %5915 = vmatpush.bf16.msrb.mxu2 %v5800_v30 }
  0x8d   : > { %5916 = vmatpush.bf16.msrb.mxu2 %v6259_v32 }
  0x91   : > { %5917 = vmatpush.bf16.msrb.mxu2 %v6268_v34 }
  0x95   : > { %5918 = vmatpush.bf16.msrb.mxu2 %v6277_v36 }
  0x97   : > { %727 = vmatmul.bf16.gmra.mxu0 %v5657_v17  ;;  %v5723_v17 = vld [vmem:[%s7382_s5 + $0x30] sm:$0xff] }
  0x98   : > { %2935 = vmatpush.bf16.msrb.mxu0 %v5723_v17 }
  0x9c   : > { %2936 = vmatpush.bf16.msrb.mxu0 %v5722_v24 }
  0xa7   : > { %732 = vmatmul.bf16.gmra.mxu0 %v5658_v27  ;;  %v5661_v27 = vld [vmem:[%s6202_s18 + $0x50] sm:$0xff] }
  0xb4   : > { %v698_v38 = vpop.f32.mrf.mxu0  ;;  %v1514_v35 = vpop.f32.mrf.mxu1 }
  0xb5   : > { %v699_v42 = vadd.f32 %v6284_v40, %v698_v38 }
  0xb7   : > { %737 = vmatmul.bf16.gmra.mxu0 %v5659_v37  ;;  %v778_v45 = vmax.f32 %v699_v42, 0.0 }
  0xb9   : > { %v812_v48 = vrot.slane %v778_v45, 7  ;;  %v915_v49 = vrot.slane %v778_v45, 1  ;;  %v1048_v52 = vpack.c.bf16 %v778_v45, %v778_v45 }
  0xbb   : > { %v1208_v5 = vunpack.c.l.b16 %v1048_v52 }
  0xbc   : > { %v700_v44 = vpop.f32.mrf.mxu0 }
  0xbd   : > { %v701_v46 = vadd.f32 %v6284_v40, %v700_v44 }
  0xbf   : > { %v779_v47 = vmax.f32 %v701_v46, 0.0 }
  0xc1   : > { %v828_v50 = vrot.slane %v779_v47, 7  ;;  %v931_v51 = vrot.slane %v779_v47, 1  ;;  %v1049_v53 = vpack.c.bf16 %v779_v47, %v779_v47 }
  0xc3   : > { %v845_v54 = vsel %vm844_vm1, %v812_v48, %v828_v50  ;;  %v861_v55 = vsel %vm844_vm1, %v828_v50, %v812_v48  ;;  %v948_v56 = vsel %vm947_vm3, %v915_v49, %v931_v51  ;;  %v964_v57 = vsel %vm947_vm3, %v931_v51, %v915_v49  ;;  %v5721_v48 = vld [vmem:[%s7382_s5 + $0x20] sm:$0xff] }
  0xc4   : > { %v881_v59 = vsel %vm810_vm0, 0.0, %v861_v55  ;;  %v985_v60 = vsel %vm914_vm2, 0.0, %v964_v57  ;;  %v1017_v61 = vpack.c.bf16 %v845_v54, %v845_v54  ;;  %v1080_v62 = vpack.c.bf16 %v948_v56, %v948_v56  ;;  %v703_v63 = vpop.f32.mrf.mxu0  ;;  %2937 = vmatpush.bf16.msrb.mxu0 %v5721_v48 }
  0xc5   : > { %v1016_v0 = vpack.c.bf16 %v881_v59, %v881_v59  ;;  %v1081_v1 = vpack.c.bf16 %v985_v60, %v985_v60  ;;  %v1209_v3 = vunpack.c.l.b16 %v1049_v53  ;;  %v704_v10 = vadd.f32 %v6284_v40, %v703_v63  ;;  %v5720_v60 = vld [vmem:[%s7382_s5 + $0x18] sm:$0xff] }
  0xc6   : > { %v1145_v2 = vunpack.c.l.b16 %v1017_v61  ;;  %v1272_v4 = vunpack.c.l.b16 %v1080_v62  ;;  %v1515_v62 = vadd.f32 %v6284_v40, %v1514_v35  ;;  %v5717_v35 = vld [vmem:[%s7382_s5] sm:$0xff] }
  0xc7   : > { %v1144_v6 = vunpack.c.l.b16 %v1016_v0  ;;  %v1273_v7 = vunpack.c.l.b16 %v1081_v1  ;;  %742 = vmatmul.bf16.gmra.mxu0 %v5660_v58  ;;  %v780_v14 = vmax.f32 %v704_v10, 0.0  ;;  %v1516_v1 = vpop.f32.mrf.mxu1 }
  0xc8   : > { %v1305_v8 = vpack.c.b16 %v1272_v4, %v1272_v4  ;;  %v1306_v9 = vpack.c.b16 %v1209_v3, %v1145_v2  ;;  %2938 = vmatpush.bf16.msrb.mxu0 %v5720_v60  ;;  %v5719_v2 = vld [vmem:[%s7382_s5 + $0x10] sm:$0xff]  ;;  %v1519_v4 = vmax.f32 %v1515_v62, 0.0 }
  0xc9   : > { %v1304_v11 = vpack.c.b16 %v1208_v5, %v1144_v6  ;;  %v1307_v12 = vpack.c.b16 %v1273_v7, %v1273_v7  ;;  %v813_v19 = vrot.slane %v780_v14, 7  ;;  %v916_v20 = vrot.slane %v780_v14, 1 }
  0xca   : > { %1434 = vst [vmem:[#allocation2 + $0x20] sm:$0xf] %v1305_v8  ;;  %v1050_v25 = vpack.c.bf16 %v780_v14, %v780_v14  ;;  %v1517_v5 = vadd.f32 %v6284_v40, %v1516_v1  ;;  %v6062_v6 = vmov 0   ;;  %v5718_v14 = vld [vmem:[%s7382_s5 + $0x8] sm:$0xff] }
  0xcb   : > { %1433 = vst [vmem:[#allocation2 + $0x18] sm:$0xff] %v1304_v11 }
  0xcc   : > { %1435 = vst [vmem:[#allocation2 + $0x24] sm:$0xff] %v1306_v9  ;;  %v705_v15 = vpop.f32.mrf.mxu0  ;;  %v1210_v53 = vunpack.c.l.b16 %v1050_v25  ;;  %v1520_v9 = vmax.f32 %v1517_v5, 0.0  ;;  %2939 = vmatpush.bf16.msrb.mxu0 %v5719_v2  ;;  %v5663_v5 = vld [vmem:[%s6202_s18 + $0x60] sm:$0xff] }
  0xcd   : > { %1436 = vst [vmem:[#allocation2 + $0x2c] sm:$0xf] %v1307_v12  ;;  %v706_v16 = vadd.f32 %v6284_v40, %v705_v15 }
  0xce   : > { %1634 = vst [vmem:[#allocation2] sm:$0xff] %v6062_v6 }
  0xcf   : > { %v781_v18 = vmax.f32 %v706_v16, 0.0  ;;  %1636 = vst [vmem:[#allocation2 + $0xc] sm:$0xff] %v6062_v6  ;;  %v1527_v16 = vrot.slane %v1519_v4, 1 }
  0xd0   : > { %1638 = vst [vmem:[#allocation2 + $0x198] sm:$0xff] %v6062_v6  ;;  %2940 = vmatpush.bf16.msrb.mxu0 %v5718_v14 }
  0xd1   : > { %v829_v21 = vrot.slane %v781_v18, 7  ;;  %v932_v22 = vrot.slane %v781_v18, 1  ;;  %v1051_v23 = vpack.c.bf16 %v781_v18, %v781_v18  ;;  %1640 = vst [vmem:[#allocation2 + $0x1a4] sm:$0xff] %v6062_v6  ;;  %v5662_v18 = vld [vmem:[%s6202_s18 + $0x58] sm:$0xff] }
  0xd2   : > { %v4692_v26 = vld [vmem:[#allocation2 + $0x18] sm:$0xf]  ;;  %v5741_v33 = vld [vmem:[#allocation2 + $0x1c] sm:$0xf] }
  0xd3   : > { %v846_v28 = vsel %vm844_vm1, %v813_v19, %v829_v21  ;;  %v862_v29 = vsel %vm844_vm1, %v829_v21, %v813_v19  ;;  %v949_v30 = vsel %vm947_vm3, %v916_v20, %v932_v22  ;;  %v965_v31 = vsel %vm947_vm3, %v932_v22, %v916_v20  ;;  %v5742_v32 = vld [vmem:[#allocation2 + $0x20] sm:$0xf0]  ;;  %v4694_v34 = vld [vmem:[#allocation2 + $0x24] sm:$0xf0] }
  0xd4   : > { %v883_v36 = vsel %vm810_vm0, 0.0, %v862_v29  ;;  %v987_v37 = vsel %vm914_vm2, 0.0, %v965_v31  ;;  %v1019_v38 = vpack.c.bf16 %v846_v28, %v846_v28  ;;  %v1082_v39 = vpack.c.bf16 %v949_v30, %v949_v30  ;;  %v708_v42 = vpop.f32.mrf.mxu0  ;;  %2941 = vmatpush.bf16.msrb.mxu0 %v5717_v35 }
  0xd5   : > { %v1018_v44 = vpack.c.bf16 %v883_v36, %v883_v36  ;;  %v1083_v45 = vpack.c.bf16 %v987_v37, %v987_v37  ;;  %v1211_v46 = vunpack.c.l.b16 %v1051_v23  ;;  %v709_v47 = vadd.f32 %v6284_v40, %v708_v42 }
  0xd6   : > { %v1147_v49 = vunpack.c.l.b16 %v1019_v38  ;;  %v1274_v50 = vunpack.c.l.b16 %v1082_v39  ;;  %v4693_v51 = vor.u32 %v5742_v32, %v4692_v26  ;;  %v4697_v52 = vor.u32 %v5741_v33, %v4694_v34 }
  0xd7   : > { %v1146_v54 = vunpack.c.l.b16 %v1018_v44  ;;  %v1275_v55 = vunpack.c.l.b16 %v1083_v45  ;;  %747 = vmatmul.bf16.gmra.mxu0 %v5661_v27  ;;  %v782_v61 = vmax.f32 %v709_v47, 0.0  ;;  %v1528_v34 = vrot.slane %v1520_v9, 1 }
  0xd8   : > { %v1309_v56 = vpack.c.b16 %v1274_v50, %v1274_v50  ;;  %v1310_v57 = vpack.c.b16 %v1211_v46, %v1147_v49  ;;  %2275 = vmatmul.bf16.vlgmr.msra.gmra.mxu2 %v4693_v51  ;;  %2364 = vmatmul.bf16.vlgmr.msrb.gmra.mxu1 %v4697_v52 }
  0xd9   : > { %v1308_v58 = vpack.c.b16 %v1210_v53, %v1146_v54  ;;  %v1311_v59 = vpack.c.b16 %v1275_v55, %v1275_v55  ;;  %v1052_v3 = vpack.c.bf16 %v782_v61, %v782_v61  ;;  %v814_v8 = vrot.slane %v782_v61, 7 }
  0xda   : > { %1438 = vst [vmem:[#allocation2 + $0x38] sm:$0xf] %v1309_v56  ;;  %v917_v10 = vrot.slane %v782_v61, 1  ;;  %v1529_v50 = vsel %vm947_vm3, %v1527_v16, %v1528_v34  ;;  %v1530_v51 = vsel %vm947_vm3, %v1528_v34, %v1527_v16 }
  0xdb   : > { %1437 = vst [vmem:[#allocation2 + $0x30] sm:$0xff] %v1308_v58  ;;  %v1212_v15 = vunpack.c.l.b16 %v1052_v3  ;;  %v1532_v52 = vsel %vm914_vm2, 0.0, %v1530_v51  ;;  %v1537_v53 = vpack.c.bf16 %v1529_v50, %v1529_v50 }
  0xdc   : > { %1439 = vst [vmem:[#allocation2 + $0x3c] sm:$0xff] %v1310_v57  ;;  %v710_v63 = vpop.f32.mrf.mxu0  ;;  %v1538_v56 = vpack.c.bf16 %v1532_v52, %v1532_v52 }
  0xdd   : > { %1440 = vst [vmem:[#allocation2 + $0x44] sm:$0xf] %v1311_v59  ;;  %v711_v0 = vadd.f32 %v6284_v40, %v710_v63  ;;  %v1549_v58 = vunpack.c.l.b16 %v1537_v53  ;;  %v5732_v59 = vld [vmem:[%s7382_s5 + $0x78] sm:$0xff] }
  0xde   : > { %v1550_v60 = vunpack.c.l.b16 %v1538_v56  ;;  %3023 = vmatpush.bf16.msrb.mxu3 %v5732_v59 }
  0xdf   : > { %v783_v7 = vmax.f32 %v711_v0, 0.0  ;;  %v1552_v62 = vpack.c.b16 %v1549_v58, %v1549_v58 }
  0xe0   : > { %v1554_v0 = vpack.c.b16 %v1550_v60, %v1550_v60 }
  0xe1   : > { %v830_v11 = vrot.slane %v783_v7, 7  ;;  %v933_v12 = vrot.slane %v783_v7, 1  ;;  %v1053_v13 = vpack.c.bf16 %v783_v7, %v783_v7  ;;  %1560 = vst [vmem:[#allocation2 + $0x8] sm:$0xf] %v1552_v62 }
  0xe2   : > { %v4704_v17 = vld [vmem:[#allocation2 + $0x30] sm:$0xf]  ;;  %v5744_v24 = vld [vmem:[#allocation2 + $0x34] sm:$0xf]  ;;  %1562 = vst [vmem:[#allocation2 + $0x14] sm:$0xf] %v1554_v0 }
  0xe3   : > { %v847_v19 = vsel %vm844_vm1, %v814_v8, %v830_v11  ;;  %v863_v20 = vsel %vm844_vm1, %v830_v11, %v814_v8  ;;  %v950_v21 = vsel %vm947_vm3, %v917_v10, %v933_v12  ;;  %v966_v22 = vsel %vm947_vm3, %v933_v12, %v917_v10  ;;  %v5745_v23 = vld [vmem:[#allocation2 + $0x38] sm:$0xf0]  ;;  %v4706_v25 = vld [vmem:[#allocation2 + $0x3c] sm:$0xf0]  ;;  %1635 = vst [vmem:[#allocation2 + $0x8] sm:$0xf] %v6062_v6 }
  0xe4   : > { %v885_v26 = vsel %vm810_vm0, 0.0, %v863_v20  ;;  %v989_v27 = vsel %vm914_vm2, 0.0, %v966_v22  ;;  %v1021_v28 = vpack.c.bf16 %v847_v19, %v847_v19  ;;  %v1084_v29 = vpack.c.bf16 %v950_v21, %v950_v21  ;;  %v713_v30 = vpop.f32.mrf.mxu0  ;;  %1637 = vst [vmem:[#allocation2 + $0x14] sm:$0xf] %v6062_v6 }
  0xe5   : > { %v1020_v31 = vpack.c.bf16 %v885_v26, %v885_v26  ;;  %v1085_v32 = vpack.c.bf16 %v989_v27, %v989_v27  ;;  %v1213_v33 = vunpack.c.l.b16 %v1053_v13  ;;  %v4705_v38 = vor.u32 %v5745_v23, %v4704_v17 }
  0xe6   : > { %v1149_v36 = vunpack.c.l.b16 %v1021_v28  ;;  %v1276_v37 = vunpack.c.l.b16 %v1084_v29  ;;  %v4709_v39 = vor.u32 %v5744_v24, %v4706_v25  ;;  %v714_v45 = vadd.f32 %v6284_v40, %v713_v30 }
  0xe7   : > { %v1148_v42 = vunpack.c.l.b16 %v1020_v31  ;;  %v1277_v44 = vunpack.c.l.b16 %v1085_v32  ;;  %752 = vmatmul.bf16.gmra.mxu0 %v5662_v18 }
  0xe8   : > { %v1313_v46 = vpack.c.b16 %v1276_v37, %v1276_v37  ;;  %v1314_v47 = vpack.c.b16 %v1213_v33, %v1149_v36  ;;  %2280 = vmatmul.bf16.gmra.mxu2 %v4705_v38  ;;  %2369 = vmatmul.bf16.gmra.mxu1 %v4709_v39  ;;  %v784_v54 = vmax.f32 %v714_v45, 0.0  ;;  %v763_v37 = vpop.f32.mrf.mxu2 }
  0xe9   : > { %v1312_v48 = vpack.c.b16 %v1212_v15, %v1148_v42  ;;  %v1315_v49 = vpack.c.b16 %v1277_v44, %v1277_v44  ;;  %v4980_v42 = vld [vmem:[#allocation2] sm:$0xf]  ;;  %v5670_v44 = vld [vmem:[#allocation2 + $0x8] sm:$0xf0] }
  0xea   : > { %1442 = vst [vmem:[#allocation2 + $0x50] sm:$0xf] %v1313_v46  ;;  %v815_v63 = vrot.slane %v784_v54, 7  ;;  %v918_v1 = vrot.slane %v784_v54, 1  ;;  %v1054_v7 = vpack.c.bf16 %v784_v54, %v784_v54  ;;  %v4981_v52 = vor.u32 %v5670_v44, %v4980_v42 }
  0xeb   : > { %1441 = vst [vmem:[#allocation2 + $0x48] sm:$0xff] %v1312_v48 }
  0xec   : > { %1443 = vst [vmem:[#allocation2 + $0x54] sm:$0xff] %v1314_v47  ;;  %v715_v55 = vpop.f32.mrf.mxu0  ;;  %v1214_v28 = vunpack.c.l.b16 %v1054_v7 }
  0xed   : > { %1444 = vst [vmem:[#allocation2 + $0x5c] sm:$0xf] %v1315_v49  ;;  %v716_v57 = vadd.f32 %v6284_v40, %v715_v55 }
  0xef   : > { %v785_v61 = vmax.f32 %v716_v57, 0.0 }
  0xf1   : > { %v831_v2 = vrot.slane %v785_v61, 7  ;;  %v934_v3 = vrot.slane %v785_v61, 1  ;;  %v1055_v4 = vpack.c.bf16 %v785_v61, %v785_v61 }
  0xf2   : > { %v4716_v8 = vld [vmem:[#allocation2 + $0x48] sm:$0xf]  ;;  %v5747_v9 = vld [vmem:[#allocation2 + $0x4c] sm:$0xf] }
  0xf3   : > { %v848_v10 = vsel %vm844_vm1, %v815_v63, %v831_v2  ;;  %v864_v11 = vsel %vm844_vm1, %v831_v2, %v815_v63  ;;  %v951_v12 = vsel %vm947_vm3, %v918_v1, %v934_v3  ;;  %v967_v13 = vsel %vm947_vm3, %v934_v3, %v918_v1  ;;  %v5748_v14 = vld [vmem:[#allocation2 + $0x50] sm:$0xf0]  ;;  %v4718_v15 = vld [vmem:[#allocation2 + $0x54] sm:$0xf0]  ;;  %v765_v1 = vpop.f32.mrf.mxu2 }
  0xf4   : > { %v887_v16 = vsel %vm810_vm0, 0.0, %v864_v11  ;;  %v991_v17 = vsel %vm914_vm2, 0.0, %v967_v13  ;;  %v1023_v18 = vpack.c.bf16 %v848_v10, %v848_v10  ;;  %v1086_v19 = vpack.c.bf16 %v951_v12, %v951_v12  ;;  %v718_v20 = vpop.f32.mrf.mxu0 }
  0xf5   : > { %v1022_v21 = vpack.c.bf16 %v887_v16, %v887_v16  ;;  %v1087_v22 = vpack.c.bf16 %v991_v17, %v991_v17  ;;  %v1215_v23 = vunpack.c.l.b16 %v1055_v4  ;;  %v4717_v26 = vor.u32 %v5748_v14, %v4716_v8 }
  0xf6   : > { %v1151_v24 = vunpack.c.l.b16 %v1023_v18  ;;  %v1278_v25 = vunpack.c.l.b16 %v1086_v19  ;;  %v4721_v27 = vor.u32 %v5747_v9, %v4718_v15  ;;  %v719_v33 = vadd.f32 %v6284_v40, %v718_v20 }
  0xf7   : > { %v1150_v29 = vunpack.c.l.b16 %v1022_v21  ;;  %v1279_v30 = vunpack.c.l.b16 %v1087_v22  ;;  %757 = vmatmul.bf16.gmra.mxu0 %v5663_v5  ;;  %v764_v16 = vadd.f32 %v6284_v40, %v763_v37  ;;  %v4992_v21 = vld [vmem:[#allocation2 + $0x18] sm:$0xf]  ;;  %v5673_v22 = vld [vmem:[#allocation2 + $0x20] sm:$0xf0] }
  0xf8   : > { %v1317_v31 = vpack.c.b16 %v1278_v25, %v1278_v25  ;;  %v1318_v32 = vpack.c.b16 %v1215_v23, %v1151_v24  ;;  %2285 = vmatmul.bf16.gmra.mxu2 %v4717_v26  ;;  %2374 = vmatmul.bf16.gmra.mxu1 %v4721_v27  ;;  %v786_v35 = vmax.f32 %v719_v33, 0.0  ;;  %v766_v25 = vadd.f32 %v6284_v40, %v765_v1  ;;  %v5731_v26 = vld [vmem:[%s7382_s5 + $0x70] sm:$0xff] }
  0xf9   : > { %v1316_v34 = vpack.c.b16 %v1214_v28, %v1150_v29  ;;  %v1319_v6 = vpack.c.b16 %v1279_v30, %v1279_v30  ;;  %v6415_v23 = vmax.f32 %v764_v16, 0.0  ;;  %v4993_v30 = vor.u32 %v5673_v22, %v4992_v21  ;;  %3024 = vmatpush.bf16.msrb.mxu3 %v5731_v26 }
  0xfa   : > { %1446 = vst [vmem:[#allocation2 + $0x68] sm:$0xf] %v1317_v31  ;;  %v816_v45 = vrot.slane %v786_v35, 7  ;;  %v919_v46 = vrot.slane %v786_v35, 1  ;;  %v1056_v50 = vpack.c.bf16 %v786_v35, %v786_v35  ;;  %v805_v31 = vmax.f32 %v766_v25, 0.0 }
  0xfb   : > { %1445 = vst [vmem:[#allocation2 + $0x60] sm:$0xff] %v1316_v34  ;;  %v768_v28 = vpop.f32.mrf.mxu2  ;;  %v825_v33 = vrot.slane %v6415_v23, 7  ;;  %v928_v34 = vrot.slane %v6415_v23, 1 }
  0xfc   : > { %1447 = vst [vmem:[#allocation2 + $0x6c] sm:$0xff] %v1318_v32  ;;  %v720_v36 = vpop.f32.mrf.mxu0  ;;  %v1216_v11 = vunpack.c.l.b16 %v1056_v50  ;;  %v841_v44 = vrot.slane %v805_v31, 7 }
  0xfd   : > { %1448 = vst [vmem:[#allocation2 + $0x74] sm:$0xf] %v1319_v6  ;;  %v721_v38 = vadd.f32 %v6284_v40, %v720_v36  ;;  %v1074_v6 = vpack.c.bf16 %v6415_v23, %v6415_v23 }
  0xff   : > { %v787_v39 = vmax.f32 %v721_v38, 0.0 }
 0x101   : > { %v832_v47 = vrot.slane %v787_v39, 7  ;;  %v935_v48 = vrot.slane %v787_v39, 1  ;;  %v1057_v49 = vpack.c.bf16 %v787_v39, %v787_v39 }
 0x102   : > { %v4728_v51 = vld [vmem:[#allocation2 + $0x60] sm:$0xf]  ;;  %v5750_v58 = vld [vmem:[#allocation2 + $0x64] sm:$0xf] }
 0x103   : > { %v849_v53 = vsel %vm844_vm1, %v816_v45, %v832_v47  ;;  %v865_v54 = vsel %vm844_vm1, %v832_v47, %v816_v45  ;;  %v952_v55 = vsel %vm947_vm3, %v919_v46, %v935_v48  ;;  %v968_v56 = vsel %vm947_vm3, %v935_v48, %v919_v46  ;;  %v5751_v57 = vld [vmem:[#allocation2 + $0x68] sm:$0xf0]  ;;  %v4730_v59 = vld [vmem:[#allocation2 + $0x6c] sm:$0xf0] }
 0x104   : > { %v889_v60 = vsel %vm810_vm0, 0.0, %v865_v54  ;;  %v993_v61 = vsel %vm914_vm2, 0.0, %v968_v56  ;;  %v1025_v62 = vpack.c.bf16 %v849_v53, %v849_v53  ;;  %v1088_v63 = vpack.c.bf16 %v952_v55, %v952_v55  ;;  %v723_v0 = vpop.f32.mrf.mxu0 }
 0x105   : > { %v1024_v2 = vpack.c.bf16 %v889_v60, %v889_v60  ;;  %v1089_v3 = vpack.c.bf16 %v993_v61, %v993_v61  ;;  %v1217_v4 = vunpack.c.l.b16 %v1057_v49  ;;  %v724_v5 = vadd.f32 %v6284_v40, %v723_v0 }
 0x106   : > { %v1153_v7 = vunpack.c.l.b16 %v1025_v62  ;;  %v1280_v8 = vunpack.c.l.b16 %v1088_v63  ;;  %v4729_v9 = vor.u32 %v5751_v57, %v4728_v51  ;;  %v4733_v10 = vor.u32 %v5750_v58, %v4730_v59 }
 0x107   : > { %v1152_v12 = vunpack.c.l.b16 %v1024_v2  ;;  %v1281_v13 = vunpack.c.l.b16 %v1089_v3  ;;  %2942 = vmatmul.bf16.vlgmr.msrb.gmra.mxu0 %v4981_v52  ;;  %v788_v19 = vmax.f32 %v724_v5, 0.0  ;;  %v944_v45 = vrot.slane %v805_v31, 1 }
 0x108   : > { %v1321_v14 = vpack.c.b16 %v1280_v8, %v1280_v8  ;;  %v1322_v15 = vpack.c.b16 %v1217_v4, %v1153_v7  ;;  %2290 = vmatmul.bf16.vlgmr.msra.gmra.mxu3 %v4729_v9  ;;  %2379 = vmatmul.bf16.gmra.mxu1 %v4733_v10  ;;  %v769_v46 = vadd.f32 %v6284_v40, %v768_v28 }
 0x109   : > { %v1320_v17 = vpack.c.b16 %v1216_v11, %v1152_v12  ;;  %v1323_v18 = vpack.c.b16 %v1281_v13, %v1281_v13  ;;  %v1058_v27 = vpack.c.bf16 %v788_v19, %v788_v19  ;;  %v817_v32 = vrot.slane %v788_v19, 7  ;;  %v770_v11 = vpop.f32.mrf.mxu2 }
 0x10a   : > { %1450 = vst [vmem:[#allocation2 + $0x80] sm:$0xf] %v1321_v14  ;;  %v920_v35 = vrot.slane %v788_v19, 1  ;;  %v1075_v62 = vpack.c.bf16 %v805_v31, %v805_v31  ;;  %v858_v7 = vsel %vm844_vm1, %v825_v33, %v841_v44  ;;  %v874_v10 = vsel %vm844_vm1, %v841_v44, %v825_v33  ;;  %v5730_v31 = vld [vmem:[%s7382_s5 + $0x68] sm:$0xff] }
 0x10b   : > { %1449 = vst [vmem:[#allocation2 + $0x78] sm:$0xff] %v1320_v17  ;;  %v1218_v39 = vunpack.c.l.b16 %v1058_v27  ;;  %v1234_v14 = vunpack.c.l.b16 %v1074_v6  ;;  %v907_v16 = vsel %vm810_vm0, 0.0, %v874_v10  ;;  %v961_v17 = vsel %vm947_vm3, %v928_v34, %v944_v45  ;;  %3025 = vmatpush.bf16.msrb.mxu3 %v5730_v31 }
 0x10c   : > { %1451 = vst [vmem:[#allocation2 + $0x84] sm:$0xff] %v1322_v15  ;;  %v725_v20 = vpop.f32.mrf.mxu0  ;;  %v6444_v15 = vmax.f32 %v769_v46, 0.0  ;;  %v1235_v19 = vunpack.c.l.b16 %v1075_v62  ;;  %v1042_v21 = vpack.c.bf16 %v907_v16, %v907_v16  ;;  %v1043_v22 = vpack.c.bf16 %v858_v7, %v858_v7 }
 0x10d   : > { %1452 = vst [vmem:[#allocation2 + $0x8c] sm:$0xf] %v1323_v18  ;;  %v726_v24 = vadd.f32 %v6284_v40, %v725_v20  ;;  %v977_v18 = vsel %vm947_vm3, %v944_v45, %v928_v34  ;;  %v1106_v23 = vpack.c.bf16 %v961_v17, %v961_v17  ;;  %v771_v34 = vadd.f32 %v6284_v40, %v770_v11 }
 0x10e   : > { %v1011_v20 = vsel %vm914_vm2, 0.0, %v977_v18  ;;  %v1170_v28 = vunpack.c.l.b16 %v1042_v21  ;;  %v826_v33 = vrot.slane %v6444_v15, 7 }
 0x10f   : > { %v789_v29 = vmax.f32 %v726_v24, 0.0  ;;  %v1107_v26 = vpack.c.bf16 %v1011_v20, %v1011_v20  ;;  %v807_v46 = vmax.f32 %v771_v34, 0.0 }
 0x111   : > { %v833_v36 = vrot.slane %v789_v29, 7  ;;  %v936_v37 = vrot.slane %v789_v29, 1  ;;  %v1059_v38 = vpack.c.bf16 %v789_v29, %v789_v29  ;;  %v1171_v29 = vunpack.c.l.b16 %v1043_v22 }
 0x112   : > { %v4740_v42 = vld [vmem:[#allocation2 + $0x78] sm:$0xf]  ;;  %v5753_v52 = vld [vmem:[#allocation2 + $0x7c] sm:$0xf]  ;;  %v842_v18 = vrot.slane %v807_v46, 7  ;;  %v945_v21 = vrot.slane %v807_v46, 1 }
 0x113   : > { %v850_v47 = vsel %vm844_vm1, %v817_v32, %v833_v36  ;;  %v866_v48 = vsel %vm844_vm1, %v833_v36, %v817_v32  ;;  %v953_v49 = vsel %vm947_vm3, %v920_v35, %v936_v37  ;;  %v969_v50 = vsel %vm947_vm3, %v936_v37, %v920_v35  ;;  %v5754_v51 = vld [vmem:[#allocation2 + $0x80] sm:$0xf0]  ;;  %v4742_v53 = vld [vmem:[#allocation2 + $0x84] sm:$0xf0] }
 0x114   : > { %v891_v54 = vsel %vm810_vm0, 0.0, %v866_v48  ;;  %v995_v55 = vsel %vm914_vm2, 0.0, %v969_v50  ;;  %v1027_v56 = vpack.c.bf16 %v850_v47, %v850_v47  ;;  %v1090_v57 = vpack.c.bf16 %v953_v49, %v953_v49  ;;  %v728_v58 = vpop.f32.mrf.mxu0  ;;  %v773_v47 = vpop.f32.mrf.mxu2 }
 0x115   : > { %v1026_v59 = vpack.c.bf16 %v891_v54, %v891_v54  ;;  %v1091_v60 = vpack.c.bf16 %v995_v55, %v995_v55  ;;  %v1219_v61 = vunpack.c.l.b16 %v1059_v38  ;;  %v4741_v1 = vor.u32 %v5754_v51, %v4740_v42  ;;  %v5004_v38 = vld [vmem:[#allocation2 + $0x30] sm:$0xf] }
 0x116   : > { %v1155_v63 = vunpack.c.l.b16 %v1027_v56  ;;  %v1282_v0 = vunpack.c.l.b16 %v1090_v57  ;;  %v4745_v2 = vor.u32 %v5753_v52, %v4742_v53  ;;  %v729_v5 = vadd.f32 %v6284_v40, %v728_v58 }
 0x117   : > { %v1154_v3 = vunpack.c.l.b16 %v1026_v59  ;;  %v1283_v4 = vunpack.c.l.b16 %v1091_v60  ;;  %2947 = vmatmul.bf16.gmra.mxu0 %v4993_v30  ;;  %v1298_v30 = vunpack.c.l.b16 %v1106_v23  ;;  %v1299_v32 = vunpack.c.l.b16 %v1107_v26 }
 0x118   : > { %v1325_v8 = vpack.c.b16 %v1282_v0, %v1282_v0  ;;  %v1326_v9 = vpack.c.b16 %v1219_v61, %v1155_v63  ;;  %2295 = vmatmul.bf16.gmra.mxu3 %v4741_v1  ;;  %2384 = vmatmul.bf16.gmra.mxu1 %v4745_v2  ;;  %v790_v24 = vmax.f32 %v729_v5, 0.0  ;;  %v1356_v35 = vpack.c.b16 %v1234_v14, %v1170_v28 }
 0x119   : > { %v1324_v12 = vpack.c.b16 %v1218_v39, %v1154_v3  ;;  %v1327_v13 = vpack.c.b16 %v1283_v4, %v1283_v4  ;;  %v1357_v36 = vpack.c.b16 %v1298_v30, %v1298_v30  ;;  %v1358_v37 = vpack.c.b16 %v1235_v19, %v1171_v29  ;;  %v5676_v39 = vld [vmem:[#allocation2 + $0x38] sm:$0xf0] }
 0x11a   : > { %1454 = vst [vmem:[#allocation2 + $0x98] sm:$0xf] %v1325_v8  ;;  %v818_v42 = vrot.slane %v790_v24, 7  ;;  %v921_v44 = vrot.slane %v790_v24, 1  ;;  %v1359_v45 = vpack.c.b16 %v1299_v32, %v1299_v32  ;;  %v929_v51 = vrot.slane %v6444_v15, 1 }
 0x11b   : > { %1453 = vst [vmem:[#allocation2 + $0x90] sm:$0xff] %v1324_v12  ;;  %v1060_v52 = vpack.c.bf16 %v790_v24, %v790_v24  ;;  %v5005_v55 = vor.u32 %v5676_v39, %v5004_v38  ;;  %v1076_v56 = vpack.c.bf16 %v6444_v15, %v6444_v15  ;;  %v1077_v57 = vpack.c.bf16 %v807_v46, %v807_v46 }
 0x11c   : > { %1455 = vst [vmem:[#allocation2 + $0x9c] sm:$0xff] %v1326_v9  ;;  %v730_v25 = vpop.f32.mrf.mxu0  ;;  %v774_v22 = vadd.f32 %v6284_v40, %v773_v47  ;;  %v775_v26 = vpop.f32.mrf.mxu2  ;;  %v875_v28 = vsel %vm844_vm1, %v842_v18, %v826_v33  ;;  %v962_v29 = vsel %vm947_vm3, %v929_v51, %v945_v21  ;;  %v978_v32 = vsel %vm947_vm3, %v945_v21, %v929_v51 }
 0x11d   : > { %1456 = vst [vmem:[#allocation2 + $0xa4] sm:$0xf] %v1327_v13  ;;  %v731_v27 = vadd.f32 %v6284_v40, %v730_v25  ;;  %v1220_v14 = vunpack.c.l.b16 %v1060_v52  ;;  %v1237_v30 = vunpack.c.l.b16 %v1077_v57  ;;  %v909_v31 = vsel %vm810_vm0, 0.0, %v875_v28 }
 0x11e   : > { %1485 = vst [vmem:[#allocation2 + $0x150] sm:$0xff] %v1356_v35  ;;  %v1236_v35 = vunpack.c.l.b16 %v1076_v56  ;;  %v1013_v15 = vsel %vm914_vm2, 0.0, %v978_v32 }
 0x11f   : > { %v791_v6 = vmax.f32 %v731_v27, 0.0  ;;  %1486 = vst [vmem:[#allocation2 + $0x158] sm:$0xf] %v1357_v36  ;;  %v859_v27 = vsel %vm844_vm1, %v826_v33, %v842_v18  ;;  %v1044_v33 = vpack.c.bf16 %v909_v31, %v909_v31  ;;  %v1109_v39 = vpack.c.bf16 %v1013_v15, %v1013_v15 }
 0x120   : > { %1487 = vst [vmem:[#allocation2 + $0x15c] sm:$0xff] %v1358_v37  ;;  %v1045_v34 = vpack.c.bf16 %v859_v27, %v859_v27  ;;  %v6493_v37 = vmax.f32 %v774_v22, 0.0 }
 0x121   : > { %v834_v48 = vrot.slane %v791_v6, 7  ;;  %v937_v49 = vrot.slane %v791_v6, 1  ;;  %v1061_v50 = vpack.c.bf16 %v791_v6, %v791_v6  ;;  %1488 = vst [vmem:[#allocation2 + $0x164] sm:$0xf] %v1359_v45  ;;  %v1108_v6 = vpack.c.bf16 %v962_v29, %v962_v29 }
 0x122   : > { %v4752_v53 = vld [vmem:[#allocation2 + $0x90] sm:$0xf]  ;;  %v5756_v54 = vld [vmem:[#allocation2 + $0x94] sm:$0xf]  ;;  %v827_v56 = vrot.slane %v6493_v37, 7  ;;  %v930_v57 = vrot.slane %v6493_v37, 1 }
 0x123   : > { %v851_v58 = vsel %vm844_vm1, %v818_v42, %v834_v48  ;;  %v867_v59 = vsel %vm844_vm1, %v834_v48, %v818_v42  ;;  %v954_v60 = vsel %vm947_vm3, %v921_v44, %v937_v49  ;;  %v970_v61 = vsel %vm947_vm3, %v937_v49, %v921_v44  ;;  %v5757_v62 = vld [vmem:[#allocation2 + $0x98] sm:$0xf0]  ;;  %v4754_v63 = vld [vmem:[#allocation2 + $0x9c] sm:$0xf0] }
 0x124   : > { %v893_v0 = vsel %vm810_vm0, 0.0, %v867_v59  ;;  %v997_v1 = vsel %vm914_vm2, 0.0, %v970_v61  ;;  %v1029_v2 = vpack.c.bf16 %v851_v58, %v851_v58  ;;  %v1092_v3 = vpack.c.bf16 %v954_v60, %v954_v60  ;;  %v733_v4 = vpop.f32.mrf.mxu0 }
 0x125   : > { %v1028_v5 = vpack.c.bf16 %v893_v0, %v893_v0  ;;  %v1093_v7 = vpack.c.bf16 %v997_v1, %v997_v1  ;;  %v1221_v8 = vunpack.c.l.b16 %v1061_v50  ;;  %v734_v9 = vadd.f32 %v6284_v40, %v733_v4 }
 0x126   : > { %v1157_v10 = vunpack.c.l.b16 %v1029_v2  ;;  %v1284_v11 = vunpack.c.l.b16 %v1092_v3  ;;  %v4753_v12 = vor.u32 %v5757_v62, %v4752_v53  ;;  %v4757_v13 = vor.u32 %v5756_v54, %v4754_v63  ;;  %v5016_v53 = vld [vmem:[#allocation2 + $0x48] sm:$0xf]  ;;  %v5679_v54 = vld [vmem:[#allocation2 + $0x50] sm:$0xf0] }
 0x127   : > { %v1156_v16 = vunpack.c.l.b16 %v1028_v5  ;;  %v1285_v17 = vunpack.c.l.b16 %v1093_v7  ;;  %2952 = vmatmul.bf16.gmra.mxu0 %v5005_v55  ;;  %v792_v25 = vmax.f32 %v734_v9, 0.0  ;;  %v1173_v42 = vunpack.c.l.b16 %v1045_v34 }
 0x128   : > { %v1329_v19 = vpack.c.b16 %v1284_v11, %v1284_v11  ;;  %v1330_v20 = vpack.c.b16 %v1221_v8, %v1157_v10  ;;  %2300 = vmatmul.bf16.gmra.mxu3 %v4753_v12  ;;  %2389 = vmatmul.bf16.gmra.mxu1 %v4757_v13  ;;  %v1300_v44 = vunpack.c.l.b16 %v1108_v6  ;;  %v1172_v48 = vunpack.c.l.b16 %v1044_v33  ;;  %v1580_v12 = vpop.f32.mrf.mxu2 }
 0x129   : > { %v1328_v23 = vpack.c.b16 %v1220_v14, %v1156_v16  ;;  %v1331_v24 = vpack.c.b16 %v1285_v17, %v1285_v17  ;;  %v819_v45 = vrot.slane %v792_v25, 7  ;;  %v922_v46 = vrot.slane %v792_v25, 1 }
 0x12a   : > { %1458 = vst [vmem:[#allocation2 + $0xb0] sm:$0xf] %v1329_v19  ;;  %v1062_v47 = vpack.c.bf16 %v792_v25, %v792_v25  ;;  %v1301_v50 = vunpack.c.l.b16 %v1109_v39  ;;  %v1361_v51 = vpack.c.b16 %v1300_v44, %v1300_v44  ;;  %v1362_v52 = vpack.c.b16 %v1237_v30, %v1173_v42 }
 0x12b   : > { %1457 = vst [vmem:[#allocation2 + $0xa8] sm:$0xff] %v1328_v23  ;;  %v1360_v55 = vpack.c.b16 %v1236_v35, %v1172_v48  ;;  %v776_v58 = vadd.f32 %v6284_v40, %v775_v26  ;;  %v5017_v2 = vor.u32 %v5679_v54, %v5016_v53  ;;  %v1078_v3 = vpack.c.bf16 %v6493_v37, %v6493_v37 }
 0x12c   : > { %1459 = vst [vmem:[#allocation2 + $0xb4] sm:$0xff] %v1330_v20  ;;  %v735_v36 = vpop.f32.mrf.mxu0  ;;  %v1363_v62 = vpack.c.b16 %v1301_v50, %v1301_v50  ;;  %v1222_v63 = vunpack.c.l.b16 %v1062_v47 }
 0x12d   : > { %1460 = vst [vmem:[#allocation2 + $0xbc] sm:$0xf] %v1331_v24  ;;  %v736_v38 = vadd.f32 %v6284_v40, %v735_v36  ;;  %v809_v4 = vmax.f32 %v776_v58, 0.0  ;;  %v1238_v15 = vunpack.c.l.b16 %v1078_v3  ;;  %v5682_v3 = vld [vmem:[#allocation2 + $0x68] sm:$0xf0] }
 0x12e   : > { %1490 = vst [vmem:[#allocation2 + $0x170] sm:$0xf] %v1361_v51 }
 0x12f   : > { %v793_v49 = vmax.f32 %v736_v38, 0.0  ;;  %1489 = vst [vmem:[#allocation2 + $0x168] sm:$0xff] %v1360_v55  ;;  %v843_v30 = vrot.slane %v809_v4, 7  ;;  %v946_v34 = vrot.slane %v809_v4, 1  ;;  %v1079_v6 = vpack.c.bf16 %v809_v4, %v809_v4  ;;  %v6525_v38 = vld [vmem:[%s7381_s4] ss:$0 sm:$0xff] }
 0x130   : > { %1491 = vst [vmem:[#allocation2 + $0x174] sm:$0xff] %v1362_v52  ;;  %v1581_v39 = vadd.f32 %v6525_v38, %v1580_v12 }
 0x131   : > { %v835_v59 = vrot.slane %v793_v49, 7  ;;  %v938_v60 = vrot.slane %v793_v49, 1  ;;  %v1063_v61 = vpack.c.bf16 %v793_v49, %v793_v49  ;;  %1492 = vst [vmem:[#allocation2 + $0x17c] sm:$0xf] %v1363_v62  ;;  %v876_v33 = vsel %vm844_vm1, %v843_v30, %v827_v56 }
 0x132   : > { %v4764_v0 = vld [vmem:[#allocation2 + $0xa8] sm:$0xf]  ;;  %v5759_v1 = vld [vmem:[#allocation2 + $0xac] sm:$0xf]  ;;  %v963_v37 = vsel %vm947_vm3, %v930_v57, %v946_v34  ;;  %v911_v42 = vsel %vm810_vm0, 0.0, %v876_v33  ;;  %v979_v44 = vsel %vm947_vm3, %v946_v34, %v930_v57  ;;  %v1239_v51 = vunpack.c.l.b16 %v1079_v6  ;;  %v5729_v57 = vld [vmem:[%s7382_s5 + $0x60] sm:$0xff] }
 0x133   : > { %v852_v5 = vsel %vm844_vm1, %v819_v45, %v835_v59  ;;  %v868_v7 = vsel %vm844_vm1, %v835_v59, %v819_v45  ;;  %v955_v8 = vsel %vm947_vm3, %v922_v46, %v938_v60  ;;  %v971_v9 = vsel %vm947_vm3, %v938_v60, %v922_v46  ;;  %v5760_v10 = vld [vmem:[#allocation2 + $0xb0] sm:$0xf0]  ;;  %v4766_v11 = vld [vmem:[#allocation2 + $0xb4] sm:$0xf0]  ;;  %3026 = vmatpush.bf16.msrb.mxu3 %v5729_v57 }
 0x134   : > { %v895_v13 = vsel %vm810_vm0, 0.0, %v868_v7  ;;  %v999_v14 = vsel %vm914_vm2, 0.0, %v971_v9  ;;  %v1031_v16 = vpack.c.bf16 %v852_v5, %v852_v5  ;;  %v1094_v17 = vpack.c.bf16 %v955_v8, %v955_v8  ;;  %v738_v18 = vpop.f32.mrf.mxu0 }
 0x135   : > { %v1030_v19 = vpack.c.bf16 %v895_v13, %v895_v13  ;;  %v1095_v20 = vpack.c.bf16 %v999_v14, %v999_v14  ;;  %v1223_v21 = vunpack.c.l.b16 %v1063_v61  ;;  %v739_v22 = vadd.f32 %v6284_v40, %v738_v18 }
 0x136   : > { %v1159_v23 = vunpack.c.l.b16 %v1031_v16  ;;  %v1286_v24 = vunpack.c.l.b16 %v1094_v17  ;;  %v4765_v25 = vor.u32 %v5760_v10, %v4764_v0  ;;  %v4769_v26 = vor.u32 %v5759_v1, %v4766_v11 }
 0x137   : > { %v1158_v27 = vunpack.c.l.b16 %v1030_v19  ;;  %v1287_v28 = vunpack.c.l.b16 %v1095_v20  ;;  %v6514_v29 = vmax.f32 %v739_v22, 0.0  ;;  %2957 = vmatmul.bf16.gmra.mxu0 %v5017_v2  ;;  %v860_v40 = vsel %vm844_vm1, %v827_v56, %v843_v30  ;;  %v1582_v56 = vpop.f32.mrf.mxu2  ;;  %v5028_v2 = vld [vmem:[#allocation2 + $0x60] sm:$0xf] }
 0x138   : > { %v1333_v31 = vpack.c.b16 %v1286_v24, %v1286_v24  ;;  %v1334_v32 = vpack.c.b16 %v1223_v21, %v1159_v23  ;;  %2305 = vmatmul.bf16.gmra.mxu3 %v4765_v25  ;;  %2394 = vmatmul.bf16.gmra.mxu1 %v4769_v26  ;;  %v1047_v45 = vpack.c.bf16 %v860_v40, %v860_v40  ;;  %v1015_v49 = vsel %vm914_vm2, 0.0, %v979_v44 }
 0x139   : > { %v1332_v35 = vpack.c.b16 %v1222_v63, %v1158_v27  ;;  %v1335_v36 = vpack.c.b16 %v1287_v28, %v1287_v28  ;;  %v1110_v46 = vpack.c.bf16 %v963_v37, %v963_v37  ;;  %v820_v47 = vrot.slane %v6514_v29, 7 }
 0x13a   : > { %1462 = vst [vmem:[#allocation2 + $0xc8] sm:$0xf] %v1333_v31  ;;  %v1046_v50 = vpack.c.bf16 %v911_v42, %v911_v42  ;;  %v1111_v53 = vpack.c.bf16 %v1015_v49, %v1015_v49  ;;  %v1175_v54 = vunpack.c.l.b16 %v1047_v45  ;;  %v1064_v58 = vpack.c.bf16 %v6514_v29, %v6514_v29 }
 0x13b   : > { %1461 = vst [vmem:[#allocation2 + $0xc0] sm:$0xff] %v1332_v35  ;;  %v1302_v55 = vunpack.c.l.b16 %v1110_v46  ;;  %v1585_v60 = vmax.f32 %v1581_v39, 0.0  ;;  %v1583_v61 = vadd.f32 %v6525_v38, %v1582_v56  ;;  %v923_v4 = vrot.slane %v6514_v29, 1 }
 0x13c   : > { %1463 = vst [vmem:[#allocation2 + $0xcc] sm:$0xff] %v1334_v32  ;;  %v740_v48 = vpop.f32.mrf.mxu0  ;;  %v1174_v59 = vunpack.c.l.b16 %v1046_v50  ;;  %v1303_v63 = vunpack.c.l.b16 %v1111_v53  ;;  %v1366_v1 = vpack.c.b16 %v1239_v51, %v1175_v54  ;;  %v1224_v12 = vunpack.c.l.b16 %v1064_v58  ;;  %v5740_v54 = vld [vmem:[%s7382_s5 + $0xb8] sm:$0xff] }
 0x13d   : > { %1464 = vst [vmem:[#allocation2 + $0xd4] sm:$0xf] %v1335_v36  ;;  %v741_v52 = vadd.f32 %v6525_v38, %v740_v48  ;;  %v1365_v0 = vpack.c.b16 %v1302_v55, %v1302_v55  ;;  %v1586_v7 = vmax.f32 %v1583_v61, 0.0  ;;  %v5029_v16 = vor.u32 %v5682_v3, %v5028_v2  ;;  %3112 = vmatpush.bf16.msra.mxu1 %v5740_v54  ;;  %v5685_v61 = vld [vmem:[#allocation2 + $0x80] sm:$0xf0] }
 0x13e   : > { %v1364_v5 = vpack.c.b16 %v1238_v15, %v1174_v59  ;;  %v1367_v11 = vpack.c.b16 %v1303_v63, %v1303_v63  ;;  %1495 = vst [vmem:[#allocation2 + $0x18c] sm:$0xff] %v1366_v1  ;;  %v1593_v31 = vrot.slane %v1585_v60, 1  ;;  %v5040_v60 = vld [vmem:[#allocation2 + $0x78] sm:$0xf] }
 0x13f   : > { %v795_v62 = vmax.f32 %v741_v52, 0.0  ;;  %1494 = vst [vmem:[#allocation2 + $0x188] sm:$0xf] %v1365_v0  ;;  %v1594_v39 = vrot.slane %v1586_v7, 1 }
 0x140   : > { %1493 = vst [vmem:[#allocation2 + $0x180] sm:$0xff] %v1364_v5 }
 0x141   : > { %v836_v8 = vrot.slane %v795_v62, 7  ;;  %v939_v9 = vrot.slane %v795_v62, 1  ;;  %v1065_v10 = vpack.c.bf16 %v795_v62, %v795_v62  ;;  %1496 = vst [vmem:[#allocation2 + $0x194] sm:$0xf] %v1367_v11  ;;  %v1595_v45 = vsel %vm947_vm3, %v1593_v31, %v1594_v39  ;;  %v5739_v62 = vld [vmem:[%s7382_s5 + $0xb0] sm:$0xff]  ;;  %v5981_v11 = vld [vmem:[#allocation2] sm:$0xff] }
 0x142   : > { %v4776_v13 = vld [vmem:[#allocation2 + $0xc0] sm:$0xf]  ;;  %v5762_v14 = vld [vmem:[#allocation2 + $0xc4] sm:$0xf]  ;;  %v1596_v46 = vsel %vm947_vm3, %v1594_v39, %v1593_v31  ;;  %v1603_v48 = vpack.c.bf16 %v1595_v45, %v1595_v45  ;;  %3113 = vmatpush.bf16.msra.mxu1 %v5739_v62  ;;  %v5728_v45 = vld [vmem:[%s7382_s5 + $0x58] sm:$0xff] }
 0x143   : > { %v853_v17 = vsel %vm844_vm1, %v820_v47, %v836_v8  ;;  %v869_v18 = vsel %vm844_vm1, %v836_v8, %v820_v47  ;;  %v956_v19 = vsel %vm947_vm3, %v923_v4, %v939_v9  ;;  %v972_v20 = vsel %vm947_vm3, %v939_v9, %v923_v4  ;;  %v5763_v21 = vld [vmem:[#allocation2 + $0xc8] sm:$0xf0]  ;;  %v4778_v22 = vld [vmem:[#allocation2 + $0xcc] sm:$0xf0]  ;;  %3027 = vmatpush.bf16.msrb.mxu3 %v5728_v45 }
 0x144   : > { %v897_v23 = vsel %vm810_vm0, 0.0, %v869_v18  ;;  %v1001_v24 = vsel %vm914_vm2, 0.0, %v972_v20  ;;  %v1033_v25 = vpack.c.bf16 %v853_v17, %v853_v17  ;;  %v1096_v26 = vpack.c.bf16 %v956_v19, %v956_v19  ;;  %v743_v27 = vpop.f32.mrf.mxu0 }
 0x145   : > { %v1032_v28 = vpack.c.bf16 %v897_v23, %v897_v23  ;;  %v1097_v29 = vpack.c.bf16 %v1001_v24, %v1001_v24  ;;  %v1225_v30 = vunpack.c.l.b16 %v1065_v10  ;;  %v4777_v6 = vor.u32 %v5763_v21, %v4776_v13 }
 0x146   : > { %v1161_v32 = vunpack.c.l.b16 %v1033_v25  ;;  %v1288_v34 = vunpack.c.l.b16 %v1096_v26  ;;  %v4781_v35 = vor.u32 %v5762_v14, %v4778_v22  ;;  %v744_v40 = vadd.f32 %v6525_v38, %v743_v27 }
 0x147   : > { %v1160_v36 = vunpack.c.l.b16 %v1032_v28  ;;  %v1289_v15 = vunpack.c.l.b16 %v1097_v29  ;;  %2962 = vmatmul.bf16.gmra.mxu0 %v5029_v16  ;;  %v1598_v47 = vsel %vm914_vm2, 0.0, %v1596_v46  ;;  %v1615_v53 = vunpack.c.l.b16 %v1603_v48  ;;  %v5737_v46 = vld [vmem:[%s7382_s5 + $0xa0] sm:$0xff]  ;;  %v5736_v48 = vld [vmem:[%s7382_s5 + $0x98] sm:$0xff] }
 0x148   : > { %v1337_v33 = vpack.c.b16 %v1288_v34, %v1288_v34  ;;  %v1338_v37 = vpack.c.b16 %v1225_v30, %v1161_v32  ;;  %2310 = vmatmul.bf16.gmra.mxu3 %v4777_v6  ;;  %2399 = vmatmul.bf16.gmra.mxu1 %v4781_v35  ;;  %v796_v49 = vmax.f32 %v744_v40, 0.0  ;;  %v1604_v51 = vpack.c.bf16 %v1598_v47, %v1598_v47 }
 0x149   : > { %v1336_v42 = vpack.c.b16 %v1224_v12, %v1160_v36  ;;  %v1339_v44 = vpack.c.b16 %v1289_v15, %v1289_v15  ;;  %v1618_v57 = vpack.c.b16 %v1615_v53, %v1615_v53  ;;  %v5041_v24 = vor.u32 %v5685_v61, %v5040_v60  ;;  %v5738_v15 = vld [vmem:[%s7382_s5 + $0xa8] sm:$0xff] }
 0x14a   : > { %1466 = vst [vmem:[#allocation2 + $0xe0] sm:$0xf] %v1337_v33  ;;  %v1616_v55 = vunpack.c.l.b16 %v1604_v51  ;;  %v821_v58 = vrot.slane %v796_v49, 7  ;;  %v924_v63 = vrot.slane %v796_v49, 1  ;;  %v1066_v3 = vpack.c.bf16 %v796_v49, %v796_v49  ;;  %3114 = vmatpush.bf16.msra.mxu1 %v5738_v15 }
 0x14b   : > { %1465 = vst [vmem:[#allocation2 + $0xd8] sm:$0xff] %v1336_v42 }
 0x14c   : > { %1467 = vst [vmem:[#allocation2 + $0xe4] sm:$0xff] %v1338_v37  ;;  %v745_v50 = vpop.f32.mrf.mxu0  ;;  %v1620_v59 = vpack.c.b16 %v1616_v55, %v1616_v55  ;;  %v1226_v29 = vunpack.c.l.b16 %v1066_v3  ;;  %v5052_v55 = vld [vmem:[#allocation2 + $0x90] sm:$0xf] }
 0x14d   : > { %1468 = vst [vmem:[#allocation2 + $0xec] sm:$0xf] %v1339_v44  ;;  %v746_v52 = vadd.f32 %v6525_v38, %v745_v50 }
 0x14e   : > { %1627 = vst [vmem:[#allocation2 + $0x1a0] sm:$0xf] %v1618_v57  ;;  %3115 = vmatpush.bf16.msra.mxu1 %v5737_v46 }
 0x14f   : > { %v797_v56 = vmax.f32 %v746_v52, 0.0  ;;  %1629 = vst [vmem:[#allocation2 + $0x1ac] sm:$0xf] %v1620_v59 }
 0x150   : > { %1639 = vst [vmem:[#allocation2 + $0x1a0] sm:$0xf] %v5981_v11 }
 0x151   : > { %v837_v0 = vrot.slane %v797_v56, 7  ;;  %v940_v1 = vrot.slane %v797_v56, 1  ;;  %v1067_v2 = vpack.c.bf16 %v797_v56, %v797_v56  ;;  %1641 = vst [vmem:[#allocation2 + $0x1ac] sm:$0xf] %v5981_v11  ;;  %v5688_v56 = vld [vmem:[#allocation2 + $0x98] sm:$0xf0] }
 0x152   : > { %v4788_v4 = vld [vmem:[#allocation2 + $0xd8] sm:$0xf]  ;;  %v5765_v5 = vld [vmem:[#allocation2 + $0xdc] sm:$0xf]  ;;  %3116 = vmatpush.bf16.msra.mxu1 %v5736_v48  ;;  %v5064_v48 = vld [vmem:[#allocation2 + $0xa8] sm:$0xf] }
 0x153   : > { %v854_v7 = vsel %vm844_vm1, %v821_v58, %v837_v0  ;;  %v870_v8 = vsel %vm844_vm1, %v837_v0, %v821_v58  ;;  %v957_v9 = vsel %vm947_vm3, %v924_v63, %v940_v1  ;;  %v973_v10 = vsel %vm947_vm3, %v940_v1, %v924_v63  ;;  %v5766_v12 = vld [vmem:[#allocation2 + $0xe0] sm:$0xf0]  ;;  %v4790_v13 = vld [vmem:[#allocation2 + $0xe4] sm:$0xf0]  ;;  %v5735_v0 = vld [vmem:[%s7382_s5 + $0x90] sm:$0xff] }
 0x154   : > { %v899_v14 = vsel %vm810_vm0, 0.0, %v870_v8  ;;  %v1003_v16 = vsel %vm914_vm2, 0.0, %v973_v10  ;;  %v1035_v17 = vpack.c.bf16 %v854_v7, %v854_v7  ;;  %v1098_v18 = vpack.c.bf16 %v957_v9, %v957_v9  ;;  %v748_v19 = vpop.f32.mrf.mxu0 }
 0x155   : > { %v1034_v20 = vpack.c.bf16 %v899_v14, %v899_v14  ;;  %v1099_v21 = vpack.c.bf16 %v1003_v16, %v1003_v16  ;;  %v1227_v22 = vunpack.c.l.b16 %v1067_v2  ;;  %v2365_v23 = vpop.f32.mrf.mxu1  ;;  %v4789_v27 = vor.u32 %v5766_v12, %v4788_v4 }
 0x156   : > { %v1163_v25 = vunpack.c.l.b16 %v1035_v17  ;;  %v1290_v26 = vunpack.c.l.b16 %v1098_v18  ;;  %v4793_v28 = vor.u32 %v5765_v5, %v4790_v13  ;;  %v749_v36 = vadd.f32 %v6525_v38, %v748_v19  ;;  %3117 = vmatpush.bf16.msra.mxu1 %v5735_v0 }
 0x157   : > { %v1162_v30 = vunpack.c.l.b16 %v1034_v20  ;;  %v1291_v31 = vunpack.c.l.b16 %v1099_v21  ;;  %2967 = vmatmul.bf16.gmra.mxu0 %v5041_v24  ;;  %v5053_v12 = vor.u32 %v5688_v56, %v5052_v55 }
 0x158   : > { %v1341_v32 = vpack.c.b16 %v1290_v26, %v1290_v26  ;;  %v1342_v34 = vpack.c.b16 %v1227_v22, %v1163_v25  ;;  %2315 = vmatmul.bf16.gmra.mxu3 %v4789_v27  ;;  %2404 = vmatmul.bf16.gmra.mxu1 %v4793_v28  ;;  %v798_v39 = vmax.f32 %v749_v36, 0.0  ;;  %v5734_v27 = vld [vmem:[%s7382_s5 + $0x88] sm:$0xff]  ;;  %v5727_v36 = vld [vmem:[%s7382_s5 + $0x50] sm:$0xff] }
 0x159   : > { %v1340_v6 = vpack.c.b16 %v1226_v29, %v1162_v30  ;;  %v1343_v35 = vpack.c.b16 %v1291_v31, %v1291_v31  ;;  %3028 = vmatpush.bf16.msrb.mxu3 %v5727_v36 }
 0x15a   : > { %1470 = vst [vmem:[#allocation2 + $0xf8] sm:$0xf] %v1341_v32  ;;  %v822_v49 = vrot.slane %v798_v39, 7  ;;  %v925_v50 = vrot.slane %v798_v39, 1  ;;  %v1068_v53 = vpack.c.bf16 %v798_v39, %v798_v39  ;;  %3118 = vmatpush.bf16.msra.mxu1 %v5734_v27 }
 0x15b   : > { %1469 = vst [vmem:[#allocation2 + $0xf0] sm:$0xff] %v1340_v6  ;;  %v2276_v40 = vpop.f32.mrf.mxu2  ;;  %v5733_v6 = vld [vmem:[%s7382_s5 + $0x80] sm:$0xff] }
 0x15c   : > { %1471 = vst [vmem:[#allocation2 + $0xfc] sm:$0xff] %v1342_v34  ;;  %v6585_v33 = vadd.f32 %v2365_v23, %v2276_v40  ;;  %v750_v37 = vpop.f32.mrf.mxu0  ;;  %v1228_v18 = vunpack.c.l.b16 %v1068_v53  ;;  %v5811_v40 = vld [vmem:[%s7382_s5 + $0x170] sm:$0xff] }
 0x15d   : > { %1472 = vst [vmem:[#allocation2 + $0x104] sm:$0xf] %v1343_v35  ;;  %v6587_v42 = vpop.f32.mrf.mxu1  ;;  %v751_v44 = vadd.f32 %v6525_v38, %v750_v37  ;;  %v5812_v35 = vld [vmem:[%s7382_s5 + $0x178] sm:$0xff]  ;;  %3029 = vmatpush.bf16.msrb.mxu3 %v5726_v41 }
 0x15e   : > { %3119 = vmatpush.bf16.msra.mxu1 %v5733_v6  ;;  %2445 = vmatpush.bf16.msra.mxu2 %v5812_v35 }
 0x15f   : > { %v799_v47 = vmax.f32 %v751_v44, 0.0 }
 0x161   : > { %v838_v51 = vrot.slane %v799_v47, 7  ;;  %v941_v52 = vrot.slane %v799_v47, 1  ;;  %v1069_v54 = vpack.c.bf16 %v799_v47, %v799_v47 }
 0x162   : > { %v4800_v62 = vld [vmem:[#allocation2 + $0xf0] sm:$0xf]  ;;  %v5768_v7 = vld [vmem:[#allocation2 + $0xf4] sm:$0xf]  ;;  %2446 = vmatpush.bf16.msra.mxu2 %v5811_v40 }
 0x163   : > { %v855_v57 = vsel %vm844_vm1, %v822_v49, %v838_v51  ;;  %v871_v58 = vsel %vm844_vm1, %v838_v51, %v822_v49  ;;  %v958_v59 = vsel %vm947_vm3, %v925_v50, %v941_v52  ;;  %v974_v60 = vsel %vm947_vm3, %v941_v52, %v925_v50  ;;  %v6607_v61 = vpop.f32.mrf.mxu2  ;;  %v5769_v63 = vld [vmem:[#allocation2 + $0xf8] sm:$0xf0]  ;;  %v4802_v8 = vld [vmem:[#allocation2 + $0xfc] sm:$0xf0]  ;;  %v5691_v49 = vld [vmem:[#allocation2 + $0xb0] sm:$0xf0] }
 0x164   : > { %v901_v1 = vsel %vm810_vm0, 0.0, %v871_v58  ;;  %v1005_v2 = vsel %vm914_vm2, 0.0, %v974_v60  ;;  %v1037_v3 = vpack.c.bf16 %v855_v57, %v855_v57  ;;  %v1100_v4 = vpack.c.bf16 %v958_v59, %v958_v59  ;;  %v753_v5 = vpop.f32.mrf.mxu0 }
 0x165   : > { %v1036_v9 = vpack.c.bf16 %v901_v1, %v901_v1  ;;  %v1101_v10 = vpack.c.bf16 %v1005_v2, %v1005_v2  ;;  %v2370_v11 = vpop.f32.mrf.mxu1  ;;  %v1229_v14 = vunpack.c.l.b16 %v1069_v54  ;;  %v4801_v17 = vor.u32 %v5769_v63, %v4800_v62 }
 0x166   : > { %v1165_v13 = vunpack.c.l.b16 %v1037_v3  ;;  %v1292_v16 = vunpack.c.l.b16 %v1100_v4  ;;  %v4805_v21 = vor.u32 %v5768_v7, %v4802_v8  ;;  %v754_v26 = vadd.f32 %v6525_v38, %v753_v5 }
 0x167   : > { %v1164_v19 = vunpack.c.l.b16 %v1036_v9  ;;  %v1293_v20 = vunpack.c.l.b16 %v1101_v10  ;;  %2972 = vmatmul.bf16.gmra.mxu0 %v5053_v12  ;;  %v5065_v4 = vor.u32 %v5691_v49, %v5064_v48 }
 0x168   : > { %v1345_v22 = vpack.c.b16 %v1292_v16, %v1292_v16  ;;  %v1346_v23 = vpack.c.b16 %v1229_v14, %v1165_v13  ;;  %2320 = vmatmul.bf16.gmra.mxu3 %v4801_v17  ;;  %2409 = vmatmul.bf16.gmra.mxu1 %v4805_v21  ;;  %v800_v31 = vmax.f32 %v754_v26, 0.0 }
 0x169   : > { %v1344_v24 = vpack.c.b16 %v1228_v18, %v1164_v19  ;;  %v1347_v25 = vpack.c.b16 %v1293_v20, %v1293_v20 }
 0x16a   : > { %1474 = vst [vmem:[#allocation2 + $0x110] sm:$0xf] %v1345_v22  ;;  %v823_v37 = vrot.slane %v800_v31, 7  ;;  %v926_v39 = vrot.slane %v800_v31, 1  ;;  %v1070_v46 = vpack.c.bf16 %v800_v31, %v800_v31 }
 0x16b   : > { %1473 = vst [vmem:[#allocation2 + $0x108] sm:$0xff] %v1344_v24  ;;  %v2281_v28 = vpop.f32.mrf.mxu2  ;;  %v5810_v24 = vld [vmem:[%s7382_s5 + $0x168] sm:$0xff] }
 0x16c   : > { %1475 = vst [vmem:[#allocation2 + $0x114] sm:$0xff] %v1346_v23  ;;  %v6620_v29 = vadd.f32 %v2370_v11, %v2281_v28  ;;  %v755_v30 = vpop.f32.mrf.mxu0  ;;  %v1230_v10 = vunpack.c.l.b16 %v1070_v46  ;;  %2447 = vmatpush.bf16.msra.mxu2 %v5810_v24  ;;  %v5076_v28 = vld [vmem:[#allocation2 + $0xc0] sm:$0xf] }
 0x16d   : > { %1476 = vst [vmem:[#allocation2 + $0x11c] sm:$0xf] %v1347_v25  ;;  %v6622_v32 = vpop.f32.mrf.mxu1  ;;  %v756_v34 = vadd.f32 %v6525_v38, %v755_v30  ;;  %v5694_v30 = vld [vmem:[#allocation2 + $0xc8] sm:$0xf0] }
 0x16f   : > { %v801_v15 = vmax.f32 %v756_v34, 0.0 }
 0x171   : > { %v839_v44 = vrot.slane %v801_v15, 7  ;;  %v942_v45 = vrot.slane %v801_v15, 1  ;;  %v1071_v47 = vpack.c.bf16 %v801_v15, %v801_v15 }
 0x172   : > { %v4812_v55 = vld [vmem:[#allocation2 + $0x108] sm:$0xf]  ;;  %v5771_v63 = vld [vmem:[#allocation2 + $0x10c] sm:$0xf] }
 0x173   : > { %v856_v50 = vsel %vm844_vm1, %v823_v37, %v839_v44  ;;  %v872_v51 = vsel %vm844_vm1, %v839_v44, %v823_v37  ;;  %v959_v52 = vsel %vm947_vm3, %v926_v39, %v942_v45  ;;  %v975_v53 = vsel %vm947_vm3, %v942_v45, %v926_v39  ;;  %v6645_v54 = vpop.f32.mrf.mxu2  ;;  %v5772_v56 = vld [vmem:[#allocation2 + $0x110] sm:$0xf0]  ;;  %v4814_v0 = vld [vmem:[#allocation2 + $0x114] sm:$0xf0]  ;;  %v4988_v37 = vld [vmem:[#allocation2 + $0x8] sm:$0xf] }
 0x174   : > { %v903_v57 = vsel %vm810_vm0, 0.0, %v872_v51  ;;  %v1007_v58 = vsel %vm914_vm2, 0.0, %v975_v53  ;;  %v1039_v59 = vpack.c.bf16 %v856_v50, %v856_v50  ;;  %v1102_v60 = vpack.c.bf16 %v959_v52, %v959_v52  ;;  %v758_v62 = vpop.f32.mrf.mxu0  ;;  %v5671_v39 = vld [vmem:[#allocation2 + $0x10] sm:$0xf0] }
 0x175   : > { %v1038_v1 = vpack.c.bf16 %v903_v57, %v903_v57  ;;  %v1103_v2 = vpack.c.bf16 %v1007_v58, %v1007_v58  ;;  %v2375_v3 = vpop.f32.mrf.mxu1  ;;  %v1231_v7 = vunpack.c.l.b16 %v1071_v47  ;;  %v4813_v9 = vor.u32 %v5772_v56, %v4812_v55 }
 0x176   : > { %v1167_v5 = vunpack.c.l.b16 %v1039_v59  ;;  %v1294_v8 = vunpack.c.l.b16 %v1102_v60  ;;  %v4817_v13 = vor.u32 %v5771_v63, %v4814_v0  ;;  %v759_v17 = vadd.f32 %v6525_v38, %v758_v62  ;;  %v5809_v63 = vld [vmem:[%s7382_s5 + $0x160] sm:$0xff] }
 0x177   : > { %v1166_v11 = vunpack.c.l.b16 %v1038_v1  ;;  %v1295_v12 = vunpack.c.l.b16 %v1103_v2  ;;  %2977 = vmatmul.bf16.gmra.mxu0 %v5065_v4  ;;  %v5077_v44 = vor.u32 %v5694_v30, %v5076_v28  ;;  %v4989_v62 = vor.u32 %v5671_v39, %v4988_v37  ;;  %2448 = vmatpush.bf16.msra.mxu2 %v5809_v63 }
 0x178   : > { %v1349_v14 = vpack.c.b16 %v1294_v8, %v1294_v8  ;;  %v1350_v16 = vpack.c.b16 %v1231_v7, %v1167_v5  ;;  %2325 = vmatmul.bf16.gmra.mxu3 %v4813_v9  ;;  %2414 = vmatmul.bf16.gmra.mxu1 %v4817_v13  ;;  %v802_v21 = vmax.f32 %v759_v17, 0.0  ;;  %v5088_v17 = vld [vmem:[#allocation2 + $0xd8] sm:$0xf] }
 0x179   : > { %v1348_v18 = vpack.c.b16 %v1230_v10, %v1166_v11  ;;  %v1351_v19 = vpack.c.b16 %v1295_v12, %v1295_v12 }
 0x17a   : > { %1478 = vst [vmem:[#allocation2 + $0x128] sm:$0xf] %v1349_v14  ;;  %v824_v31 = vrot.slane %v802_v21, 7  ;;  %v927_v34 = vrot.slane %v802_v21, 1  ;;  %v1072_v15 = vpack.c.bf16 %v802_v21, %v802_v21 }
 0x17b   : > { %1477 = vst [vmem:[#allocation2 + $0x120] sm:$0xff] %v1348_v18  ;;  %v2286_v20 = vpop.f32.mrf.mxu2 }
 0x17c   : > { %1479 = vst [vmem:[#allocation2 + $0x12c] sm:$0xff] %v1350_v16  ;;  %v6652_v22 = vadd.f32 %v2375_v3, %v2286_v20  ;;  %v760_v23 = vpop.f32.mrf.mxu0  ;;  %v1232_v3 = vunpack.c.l.b16 %v1072_v15  ;;  %v5808_v16 = vld [vmem:[%s7382_s5 + $0x158] sm:$0xff]  ;;  %v5697_v20 = vld [vmem:[#allocation2 + $0xe0] sm:$0xf0]  ;;  %v5807_v15 = vld [vmem:[%s7382_s5 + $0x150] sm:$0xff] }
 0x17d   : > { %1480 = vst [vmem:[#allocation2 + $0x134] sm:$0xf] %v1351_v19  ;;  %v6657_v25 = vpop.f32.mrf.mxu1  ;;  %v761_v26 = vadd.f32 %v6525_v38, %v760_v23  ;;  %2449 = vmatpush.bf16.msra.mxu2 %v5808_v16 }
 0x17f   : > { %v803_v27 = vmax.f32 %v761_v26, 0.0 }
 0x181   : > { %v840_v6 = vrot.slane %v803_v27, 7  ;;  %v943_v35 = vrot.slane %v803_v27, 1  ;;  %v1073_v36 = vpack.c.bf16 %v803_v27, %v803_v27  ;;  %2450 = vmatpush.bf16.msra.mxu2 %v5807_v15  ;;  %v4872_v15 = vld [vmem:[#allocation2 + $0x180] sm:$0xf] }
 0x182   : > { %v4824_v40 = vld [vmem:[#allocation2 + $0x120] sm:$0xf]  ;;  %v5774_v49 = vld [vmem:[#allocation2 + $0x124] sm:$0xf] }
 0x183   : > { %v857_v45 = vsel %vm844_vm1, %v824_v31, %v840_v6  ;;  %v873_v38 = vsel %vm844_vm1, %v840_v6, %v824_v31  ;;  %v960_v46 = vsel %vm947_vm3, %v927_v34, %v943_v35  ;;  %v976_v47 = vsel %vm947_vm3, %v943_v35, %v927_v34  ;;  %v5775_v48 = vld [vmem:[#allocation2 + $0x128] sm:$0xf0]  ;;  %v4826_v50 = vld [vmem:[#allocation2 + $0x12c] sm:$0xf0]  ;;  %v5000_v31 = vld [vmem:[#allocation2 + $0x20] sm:$0xf] }
 0x184   : > { %v905_v51 = vsel %vm810_vm0, 0.0, %v873_v38  ;;  %v1009_v52 = vsel %vm914_vm2, 0.0, %v976_v47  ;;  %v1041_v53 = vpack.c.bf16 %v857_v45, %v857_v45  ;;  %v1104_v55 = vpack.c.bf16 %v960_v46, %v960_v46  ;;  %v6672_v56 = vpop.f32.mrf.mxu0  ;;  %v5674_v34 = vld [vmem:[#allocation2 + $0x28] sm:$0xf0]  ;;  %v5725_v45 = vld [vmem:[%s7382_s5 + $0x40] sm:$0xff] }
 0x185   : > { %v1040_v57 = vpack.c.bf16 %v905_v51, %v905_v51  ;;  %v1105_v58 = vpack.c.bf16 %v1009_v52, %v1009_v52  ;;  %v1233_v59 = vunpack.c.l.b16 %v1073_v36  ;;  %v2380_v60 = vpop.f32.mrf.mxu1  ;;  %v4825_v1 = vor.u32 %v5775_v48, %v4824_v40  ;;  %3030 = vmatpush.bf16.msrb.mxu3 %v5725_v45  ;;  %v4848_v38 = vld [vmem:[#allocation2 + $0x150] sm:$0xf]  ;;  %v5700_v47 = vld [vmem:[#allocation2 + $0xf8] sm:$0xf0]  ;;  %v4850_v51 = vld [vmem:[#allocation2 + $0x15c] sm:$0xf0] }
 0x186   : > { %v1169_v0 = vunpack.c.l.b16 %v1041_v53  ;;  %v1296_v43 = vunpack.c.l.b16 %v1104_v55  ;;  %v4829_v2 = vor.u32 %v5774_v49, %v4826_v50  ;;  %v5089_v35 = vor.u32 %v5697_v20, %v5088_v17  ;;  %v5100_v46 = vld [vmem:[#allocation2 + $0xf0] sm:$0xf]  ;;  %v5781_v49 = vld [vmem:[#allocation2 + $0x158] sm:$0xf0]  ;;  %v5780_v50 = vld [vmem:[#allocation2 + $0x154] sm:$0xf] }
 0x187   : > { %v1168_v4 = vunpack.c.l.b16 %v1040_v57  ;;  %v1297_v5 = vunpack.c.l.b16 %v1105_v58  ;;  %2982 = vmatmul.bf16.gmra.mxu0 %v5077_v44  ;;  %v5001_v36 = vor.u32 %v5674_v34, %v5000_v31  ;;  %v5012_v55 = vld [vmem:[#allocation2 + $0x38] sm:$0xf]  ;;  %v5677_v57 = vld [vmem:[#allocation2 + $0x40] sm:$0xf0]  ;;  %v5806_v58 = vld [vmem:[%s7382_s5 + $0x148] sm:$0xff]  ;;  %v4853_v63 = vor.u32 %v5780_v50, %v4850_v51 }
 0x188   : > { %v1353_v7 = vpack.c.b16 %v1296_v43, %v1296_v43  ;;  %v1354_v8 = vpack.c.b16 %v1233_v59, %v1169_v0  ;;  %2330 = vmatmul.bf16.gmra.mxu3 %v4825_v1  ;;  %2419 = vmatmul.bf16.vlgmr.msrb.gmra.mxu2 %v4829_v2  ;;  %v5013_v41 = vor.u32 %v5677_v57, %v5012_v55  ;;  %v5024_v17 = vld [vmem:[#allocation2 + $0x50] sm:$0xf]  ;;  %v5036_v50 = vld [vmem:[#allocation2 + $0x68] sm:$0xf]  ;;  %v5683_v51 = vld [vmem:[#allocation2 + $0x70] sm:$0xf0] }
 0x189   : > { %v1352_v9 = vpack.c.b16 %v1232_v3, %v1168_v4  ;;  %v1355_v10 = vpack.c.b16 %v1297_v5, %v1297_v5  ;;  %3120 = vmatmul.bf16.vlgmr.msra.gmra.mxu1 %v4989_v62  ;;  %v4849_v62 = vor.u32 %v5781_v49, %v4848_v38  ;;  %2451 = vmatpush.bf16.msra.mxu2 %v5806_v58  ;;  %v5805_v3 = vld [vmem:[%s7382_s5 + $0x140] sm:$0xff]  ;;  %v4860_v4 = vld [vmem:[#allocation2 + $0x168] sm:$0xf]  ;;  %v5787_v38 = vld [vmem:[#allocation2 + $0x188] sm:$0xf0] }
 0x18a   : > { %1482 = vst [vmem:[#allocation2 + $0x140] sm:$0xf] %v1353_v7  ;;  %v5112_v5 = vld [vmem:[#allocation2 + $0x108] sm:$0xf]  ;;  %v5703_v7 = vld [vmem:[#allocation2 + $0x110] sm:$0xf0]  ;;  %v4873_v58 = vor.u32 %v5787_v38, %v4872_v15 }
 0x18b   : > { %1481 = vst [vmem:[#allocation2 + $0x138] sm:$0xff] %v1352_v9  ;;  %v2291_v11 = vpop.f32.mrf.mxu3  ;;  %v5784_v9 = vld [vmem:[#allocation2 + $0x170] sm:$0xf0]  ;;  %v5113_v20 = vor.u32 %v5703_v7, %v5112_v5 }
 0x18c   : > { %1483 = vst [vmem:[#allocation2 + $0x144] sm:$0xff] %v1354_v8  ;;  %v6680_v12 = vadd.f32 %v2380_v60, %v2291_v11  ;;  %v6682_v13 = vpop.f32.mrf.mxu0  ;;  %v5101_v60 = vor.u32 %v5700_v47, %v5100_v46  ;;  %v4862_v11 = vld [vmem:[#allocation2 + $0x174] sm:$0xf0]  ;;  %v5786_v46 = vld [vmem:[#allocation2 + $0x184] sm:$0xf]  ;;  %v5871_v38 = vld [vmem:[%s7382_s5 + $0x1d0] sm:$0xff] }
 0x18d   : > { %1484 = vst [vmem:[#allocation2 + $0x14c] sm:$0xf] %v1355_v10  ;;  %v2382_v14 = vpop.f32.mrf.mxu1  ;;  %2452 = vmatpush.bf16.msra.mxu2 %v5805_v3  ;;  %v5783_v10 = vld [vmem:[#allocation2 + $0x16c] sm:$0xf]  ;;  %v4874_v47 = vld [vmem:[#allocation2 + $0x18c] sm:$0xf0] }
 0x18e   : > { %v5669_v3 = vld [vmem:[#allocation2 + $0x4] sm:$0xf] }
 0x192   : > { %v4836_v18 = vld [vmem:[#allocation2 + $0x138] sm:$0xf]  ;;  %v5777_v19 = vld [vmem:[#allocation2 + $0x13c] sm:$0xf] }
 0x193   : > { %v2293_v21 = vpop.f32.mrf.mxu3  ;;  %v5778_v23 = vld [vmem:[#allocation2 + $0x140] sm:$0xf0]  ;;  %v4838_v24 = vld [vmem:[#allocation2 + $0x144] sm:$0xf0]  ;;  %v5136_v5 = vld [vmem:[#allocation2 + $0x138] sm:$0xf] }
 0x194   : > { %v6687_v26 = vadd.f32 %v2382_v14, %v2293_v21  ;;  %v6689_v27 = vpop.f32.mrf.mxu0  ;;  %v4837_v28 = vor.u32 %v5778_v23, %v4836_v18  ;;  %v4841_v30 = vor.u32 %v5777_v19, %v4838_v24  ;;  %v5680_v18 = vld [vmem:[#allocation2 + $0x58] sm:$0xf0]  ;;  %v4861_v21 = vor.u32 %v5784_v9, %v4860_v4  ;;  %v4982_v4 = vld [vmem:[#allocation2 + $0xc] sm:$0xf0]  ;;  %v5709_v7 = vld [vmem:[#allocation2 + $0x140] sm:$0xf0] }
 0x195   : > { %v2385_v6 = vpop.f32.mrf.mxu1  ;;  %v4865_v23 = vor.u32 %v5783_v10, %v4862_v11  ;;  %v5025_v24 = vor.u32 %v5680_v18, %v5024_v17  ;;  %v4700_v9 = vld [vmem:[#allocation2 + $0x20] sm:$0xf]  ;;  %v5743_v10 = vld [vmem:[#allocation2 + $0x28] sm:$0xf0]  ;;  %v4985_v17 = vor.u32 %v5669_v3, %v4982_v4 }
 0x196   : > { %v5048_v18 = vld [vmem:[#allocation2 + $0x80] sm:$0xf] }
 0x197   : > { %2987 = vmatmul.bf16.gmra.mxu0 %v5089_v35 }
 0x198   : > { %2335 = vmatmul.bf16.gmra.mxu3 %v4837_v28  ;;  %2424 = vmatmul.bf16.gmra.mxu2 %v4841_v30  ;;  %v5868_v28 = vld [vmem:[%s7382_s5 + $0x1b8] sm:$0xff] }
 0x199   : > { %3125 = vmatmul.bf16.gmra.mxu1 %v5001_v36  ;;  %v5884_v30 = vld [vmem:[%s7382_s5 + $0x238] sm:$0xff]  ;;  %3715 = vmatpush.bf16.msrb.mxu2 %v5868_v28  ;;  %v5873_v28 = vld [vmem:[%s7382_s5 + $0x1e0] sm:$0xff] }
 0x19a   : > { %3893 = vmatpush.bf16.msra.mxu3 %v5884_v30  ;;  %v5876_v36 = vld [vmem:[%s7382_s5 + $0x1f8] sm:$0xff] }
 0x19b   : > { %v2296_v40 = vpop.f32.mrf.mxu3  ;;  %3804 = vmatpush.bf16.msra.mxu0 %v5876_v36  ;;  %v5883_v36 = vld [vmem:[%s7382_s5 + $0x230] sm:$0xff] }
 0x19c   : > { %v6694_v37 = vadd.f32 %v2385_v6, %v2296_v40  ;;  %v6696_v39 = vpop.f32.mrf.mxu0  ;;  %v5124_v40 = vld [vmem:[#allocation2 + $0x120] sm:$0xf] }
 0x19d   : > { %v2387_v44 = vpop.f32.mrf.mxu1 }
 0x19e   : > { %3894 = vmatpush.bf16.msra.mxu3 %v5883_v36 }
 0x1a3   : > { %v2298_v48 = vpop.f32.mrf.mxu3 }
 0x1a4   : > { %v6701_v52 = vadd.f32 %v2387_v44, %v2298_v48  ;;  %v6703_v53 = vpop.f32.mrf.mxu0  ;;  %v5706_v44 = vld [vmem:[#allocation2 + $0x128] sm:$0xf0] }
 0x1a5   : > { %v2390_v59 = vpop.f32.mrf.mxu1  ;;  %v5125_v57 = vor.u32 %v5706_v44, %v5124_v40  ;;  %v5872_v44 = vld [vmem:[%s7382_s5 + $0x1d8] sm:$0xff] }
 0x1a7   : > { %2992 = vmatmul.bf16.gmra.mxu0 %v5101_v60  ;;  %v5037_v60 = vor.u32 %v5683_v51, %v5036_v50  ;;  %v5148_v50 = vld [vmem:[#allocation2 + $0x150] sm:$0xf]  ;;  %v5712_v51 = vld [vmem:[#allocation2 + $0x158] sm:$0xf0] }
 0x1a8   : > { %2340 = vmatmul.bf16.gmra.mxu3 %v4849_v62  ;;  %2429 = vmatmul.bf16.gmra.mxu2 %v4853_v63  ;;  %v5149_v3 = vor.u32 %v5712_v51, %v5148_v50 }
 0x1a9   : > { %3130 = vmatmul.bf16.gmra.mxu1 %v5013_v41 }
 0x1ab   : > { %v2301_v0 = vpop.f32.mrf.mxu3 }
 0x1ac   : > { %v6708_v43 = vadd.f32 %v2390_v59, %v2301_v0  ;;  %v6710_v1 = vpop.f32.mrf.mxu0  ;;  %v4877_v59 = vor.u32 %v5786_v46, %v4874_v47  ;;  %v5672_v47 = vld [vmem:[#allocation2 + $0x1c] sm:$0xf] }
 0x1ad   : > { %v2392_v2 = vpop.f32.mrf.mxu1 }
 0x1b3   : > { %v2303_v8 = vpop.f32.mrf.mxu3 }
 0x1b4   : > { %v6715_v14 = vadd.f32 %v2392_v2, %v2303_v8  ;;  %v6717_v16 = vpop.f32.mrf.mxu0  ;;  %v5875_v2 = vld [vmem:[%s7382_s5 + $0x1f0] sm:$0xff] }
 0x1b5   : > { %v2395_v19 = vpop.f32.mrf.mxu1  ;;  %3805 = vmatpush.bf16.msra.mxu0 %v5875_v2  ;;  %v5870_v2 = vld [vmem:[%s7382_s5 + $0x1c8] sm:$0xff] }
 0x1b7   : > { %2997 = vmatmul.bf16.gmra.mxu0 %v5113_v20  ;;  %v5874_v20 = vld [vmem:[%s7382_s5 + $0x1e8] sm:$0xff] }
 0x1b8   : > { %2345 = vmatmul.bf16.gmra.mxu3 %v4861_v21  ;;  %2434 = vmatmul.bf16.gmra.mxu2 %v4865_v23  ;;  %v5137_v23 = vor.u32 %v5709_v7, %v5136_v5 }
 0x1b9   : > { %3135 = vmatmul.bf16.gmra.mxu1 %v5025_v24  ;;  %v4701_v24 = vor.u32 %v5743_v10, %v4700_v9  ;;  %3806 = vmatpush.bf16.msra.mxu0 %v5874_v20  ;;  %v5675_v20 = vld [vmem:[#allocation2 + $0x34] sm:$0xf] }
 0x1bb   : > { %v2306_v31 = vpop.f32.mrf.mxu3 }
 0x1bc   : > { %v6725_v34 = vadd.f32 %v2395_v19, %v2306_v31  ;;  %v6727_v6 = vpop.f32.mrf.mxu0  ;;  %v5686_v19 = vld [vmem:[#allocation2 + $0x88] sm:$0xf0] }
 0x1bd   : > { %v2397_v35 = vpop.f32.mrf.mxu1  ;;  %v5049_v30 = vor.u32 %v5686_v19, %v5048_v18  ;;  %3807 = vmatpush.bf16.msra.mxu0 %v5873_v28  ;;  %v4724_v28 = vld [vmem:[#allocation2 + $0x50] sm:$0xf] }
 0x1c1   : > { %3808 = vmatpush.bf16.msra.mxu0 %v5872_v44  ;;  %v5692_v44 = vld [vmem:[#allocation2 + $0xb8] sm:$0xf0] }
 0x1c3   : > { %v2308_v45 = vpop.f32.mrf.mxu3 }
 0x1c4   : > { %v6732_v48 = vadd.f32 %v2397_v35, %v2308_v45  ;;  %v6734_v49 = vpop.f32.mrf.mxu0  ;;  %v5867_v35 = vld [vmem:[%s7382_s5 + $0x1b0] sm:$0xff] }
 0x1c5   : > { %v2400_v55 = vpop.f32.mrf.mxu1  ;;  %3716 = vmatpush.bf16.msrb.mxu2 %v5867_v35  ;;  %3809 = vmatpush.bf16.msra.mxu0 %v5871_v38  ;;  %v5006_v35 = vld [vmem:[#allocation2 + $0x3c] sm:$0xf0] }
 0x1c6   : > { %v5009_v50 = vor.u32 %v5675_v20, %v5006_v35 }
 0x1c7   : > { %3002 = vmatmul.bf16.gmra.mxu0 %v5125_v57  ;;  %v4712_v57 = vld [vmem:[#allocation2 + $0x38] sm:$0xf] }
 0x1c8   : > { %2350 = vmatmul.bf16.gmra.mxu3 %v4873_v58  ;;  %2439 = vmatmul.bf16.gmra.mxu2 %v4877_v59  ;;  %v5746_v58 = vld [vmem:[#allocation2 + $0x40] sm:$0xf0]  ;;  %v4994_v59 = vld [vmem:[#allocation2 + $0x24] sm:$0xf0] }
 0x1c9   : > { %3140 = vmatmul.bf16.gmra.mxu1 %v5037_v60  ;;  %v4713_v5 = vor.u32 %v5746_v58, %v4712_v57  ;;  %v4997_v7 = vor.u32 %v5672_v47, %v4994_v59  ;;  %3810 = vmatpush.bf16.msra.mxu0 %v5870_v2  ;;  %v5866_v57 = vld [vmem:[%s7382_s5 + $0x1a8] sm:$0xff]  ;;  %v6795_v2 = vpop.f32.mrf.mxu2 }
 0x1ca   : > { %v5882_v58 = vld [vmem:[%s7382_s5 + $0x228] sm:$0xff]  ;;  %3717 = vmatpush.bf16.msrb.mxu2 %v5866_v57 }
 0x1cb   : > { %v2311_v62 = vpop.f32.mrf.mxu3  ;;  %3895 = vmatpush.bf16.msra.mxu3 %v5882_v58 }
 0x1cc   : > { %v6736_v63 = vadd.f32 %v2400_v55, %v2311_v62  ;;  %v6738_v0 = vpop.f32.mrf.mxu0  ;;  %v5060_v62 = vld [vmem:[#allocation2 + $0x98] sm:$0xf] }
 0x1cd   : > { %v2402_v41 = vpop.f32.mrf.mxu1 }
 0x1d3   : > { %v2313_v8 = vpop.f32.mrf.mxu3 }
 0x1d4   : > { %v6743_v11 = vadd.f32 %v2402_v41, %v2313_v8  ;;  %v6751_v31 = vpop.f32.mrf.mxu0  ;;  %v5689_v41 = vld [vmem:[#allocation2 + $0xa0] sm:$0xf0] }
 0x1d5   : > { %v2405_v21 = vpop.f32.mrf.mxu1  ;;  %v5869_v8 = vld [vmem:[%s7382_s5 + $0x1c0] sm:$0xff]  ;;  %v5061_v9 = vor.u32 %v5689_v41, %v5060_v62 }
 0x1d6   : > { %3811 = vmatpush.bf16.msra.mxu0 %v5869_v8 }
 0x1d7   : > { %3007 = vmatmul.bf16.gmra.mxu0 %v5137_v23  ;;  %v5715_v23 = vld [vmem:[#allocation2 + $0x170] sm:$0xf0] }
 0x1d8   : > { %2453 = vmatmul.bf16.vlgmr.msra.gmra.mxu2 %v4701_v24  ;;  %3031 = vmatmul.bf16.vlgmr.msrb.gmra.mxu3 %v4985_v17 }
 0x1d9   : > { %3145 = vmatmul.bf16.gmra.mxu1 %v5049_v30  ;;  %v5749_v30 = vld [vmem:[#allocation2 + $0x58] sm:$0xf0] }
 0x1da   : > { %v4725_v47 = vor.u32 %v5749_v30, %v4724_v28 }
 0x1db   : > { %v2316_v15 = vpop.f32.mrf.mxu3 }
 0x1dc   : > { %v6759_v40 = vadd.f32 %v2405_v21, %v2316_v15  ;;  %v6767_v46 = vpop.f32.mrf.mxu0  ;;  %v5160_v21 = vld [vmem:[#allocation2 + $0x168] sm:$0xf]  ;;  %v5072_v15 = vld [vmem:[#allocation2 + $0xb0] sm:$0xf] }
 0x1dd   : > { %v2407_v45 = vpop.f32.mrf.mxu1  ;;  %v5073_v51 = vor.u32 %v5692_v44, %v5072_v15 }
 0x1e3   : > { %v2318_v55 = vpop.f32.mrf.mxu3 }
 0x1e4   : > { %v6769_v60 = vadd.f32 %v2407_v45, %v2318_v55  ;;  %v6777_v17 = vpop.f32.mrf.mxu0  ;;  %v5161_v45 = vor.u32 %v5715_v23, %v5160_v21  ;;  %v5084_v21 = vld [vmem:[#allocation2 + $0xc8] sm:$0xf]  ;;  %v5695_v23 = vld [vmem:[#allocation2 + $0xd0] sm:$0xf0] }
 0x1e5   : > { %v2410_v4 = vpop.f32.mrf.mxu1  ;;  %v5085_v35 = vor.u32 %v5695_v23, %v5084_v21 }
 0x1e7   : > { %3012 = vmatmul.bf16.gmra.mxu0 %v5149_v3  ;;  %v5678_v3 = vld [vmem:[#allocation2 + $0x4c] sm:$0xf] }
 0x1e8   : > { %2458 = vmatmul.bf16.gmra.mxu2 %v4713_v5  ;;  %3036 = vmatmul.bf16.gmra.mxu3 %v4997_v7  ;;  %v5318_v5 = vld [vmem:[#allocation2 + $0x3c] sm:$0xf0] }
 0x1e9   : > { %3150 = vmatmul.bf16.gmra.mxu1 %v5061_v9  ;;  %v4736_v9 = vld [vmem:[#allocation2 + $0x68] sm:$0xf] }
 0x1eb   : > { %v2321_v10 = vpop.f32.mrf.mxu3 }
 0x1ec   : > { %v6779_v18 = vadd.f32 %v2410_v4, %v2321_v10  ;;  %v6783_v38 = vpop.f32.mrf.mxu0  ;;  %v5813_v4 = vld [vmem:[#allocation2 + $0x34] sm:$0xf] }
 0x1ed   : > { %v2412_v19 = vpop.f32.mrf.mxu1  ;;  %v5752_v10 = vld [vmem:[#allocation2 + $0x70] sm:$0xf0] }
 0x1ee   : > { %v4737_v28 = vor.u32 %v5752_v10, %v4736_v9  ;;  %v5698_v9 = vld [vmem:[#allocation2 + $0xe8] sm:$0xf0] }
 0x1f3   : > { %v2323_v24 = vpop.f32.mrf.mxu3 }
 0x1f4   : > { %v6781_v36 = vadd.f32 %v2412_v19, %v2323_v24  ;;  %v6793_v41 = vpop.f32.mrf.mxu0  ;;  %v5018_v19 = vld [vmem:[#allocation2 + $0x54] sm:$0xf0]  ;;  %v5321_v24 = vor.u32 %v5813_v4, %v5318_v5  ;;  %v5755_v4 = vld [vmem:[#allocation2 + $0x88] sm:$0xf0]  ;;  %v5030_v5 = vld [vmem:[#allocation2 + $0x6c] sm:$0xf0] }
 0x1f5   : > { %v2415_v55 = vpop.f32.mrf.mxu1  ;;  %v5021_v30 = vor.u32 %v5678_v3, %v5018_v19 }
 0x1f7   : > { %3017 = vmatmul.bf16.gmra.mxu0 %v5161_v45 }
 0x1f8   : > { %2463 = vmatmul.bf16.gmra.mxu2 %v4725_v47  ;;  %3041 = vmatmul.bf16.gmra.mxu3 %v5009_v50  ;;  %v5681_v50 = vld [vmem:[#allocation2 + $0x64] sm:$0xf] }
 0x1f9   : > { %3155 = vmatmul.bf16.gmra.mxu1 %v5073_v51  ;;  %v5816_v51 = vld [vmem:[#allocation2 + $0x4c] sm:$0xf]  ;;  %v5033_v21 = vor.u32 %v5681_v50, %v5030_v5  ;;  %v5684_v50 = vld [vmem:[#allocation2 + $0x7c] sm:$0xf]  ;;  %v5042_v5 = vld [vmem:[#allocation2 + $0x84] sm:$0xf0] }
 0x1fb   : > { %v2326_v59 = vpop.f32.mrf.mxu3 }
 0x1fc   : > { %v6791_v62 = vadd.f32 %v2415_v55, %v2326_v59  ;;  %v6799_v15 = vpop.f32.mrf.mxu0  ;;  %v5330_v55 = vld [vmem:[#allocation2 + $0x54] sm:$0xf0]  ;;  %v4748_v59 = vld [vmem:[#allocation2 + $0x80] sm:$0xf] }
 0x1fd   : > { %v2417_v7 = vpop.f32.mrf.mxu1  ;;  %v5333_v10 = vor.u32 %v5816_v51, %v5330_v55  ;;  %v4749_v19 = vor.u32 %v5755_v4, %v4748_v59  ;;  %v5819_v51 = vld [vmem:[#allocation2 + $0x64] sm:$0xf]  ;;  %v5342_v55 = vld [vmem:[#allocation2 + $0x6c] sm:$0xf0]  ;;  %v4760_v59 = vld [vmem:[#allocation2 + $0x98] sm:$0xf] }
 0x1fe   : > { %v5758_v4 = vld [vmem:[#allocation2 + $0xa0] sm:$0xf0] }
 0x203   : > { %v2328_v8 = vpop.f32.mrf.mxu3 }
 0x204   : > { %v6797_v20 = vadd.f32 %v2417_v7, %v2328_v8  ;;  %v6803_v3 = vpop.f32.mrf.mxu0  ;;  %v5096_v8 = vld [vmem:[#allocation2 + $0xe0] sm:$0xf] }
 0x205   : > { %v5097_v23 = vor.u32 %v5698_v9, %v5096_v8  ;;  %v5108_v9 = vld [vmem:[#allocation2 + $0xf8] sm:$0xf] }
 0x206   : > { %7393 = vst [vmem:[#allocation6_spill] sm:$0xff] %v6797_v20 }
 0x207   : > { %3812 = vmatmul.bf16.vlgmr.msra.gmra.mxu0 %v5321_v24  ;;  %v5865_v24 = vld [vmem:[%s7382_s5 + $0x1a0] sm:$0xff] }
 0x208   : > { %2468 = vmatmul.bf16.gmra.mxu2 %v4737_v28  ;;  %3046 = vmatmul.bf16.gmra.mxu3 %v5021_v30  ;;  %v5881_v28 = vld [vmem:[%s7382_s5 + $0x220] sm:$0xff] }
 0x209   : > { %3160 = vmatmul.bf16.gmra.mxu1 %v5085_v35  ;;  %3718 = vmatpush.bf16.msrb.mxu2 %v5865_v24 }
 0x20a   : > { %3896 = vmatpush.bf16.msra.mxu3 %v5881_v28 }
 0x20b   : > { %v2331_v44 = vpop.f32.mrf.mxu3  ;;  %v2420_v45 = vpop.f32.mrf.mxu2 }
 0x20c   : > { %v6801_v47 = vadd.f32 %v2420_v45, %v2331_v44  ;;  %v6815_v45 = vpop.f32.mrf.mxu0 }
 0x20e   : > { %7394 = vst [vmem:[#allocation7_spill] sm:$0xff] %v6801_v47 }
 0x213   : > { %v2333_v57 = vpop.f32.mrf.mxu3  ;;  %v2422_v58 = vpop.f32.mrf.mxu2 }
 0x214   : > { %v6805_v7 = vadd.f32 %v2422_v58, %v2333_v57  ;;  %v6819_v28 = vpop.f32.mrf.mxu0 }
 0x216   : > { %7395 = vst [vmem:[#allocation8_spill] sm:$0xff] %v6805_v7  ;;  %v6823_v7 = vpop.f32.mrf.mxu1 }
 0x217   : > { %3817 = vmatmul.bf16.gmra.mxu0 %v5333_v10  ;;  %v5701_v10 = vld [vmem:[#allocation2 + $0x100] sm:$0xf0]  ;;  %7399 = vst [vmem:[#allocation12_spill] sm:$0xff] %v6823_v7  ;;  %v5880_v7 = vld [vmem:[%s7382_s5 + $0x218] sm:$0xff] }
 0x218   : > { %2473 = vmatmul.bf16.gmra.mxu2 %v4749_v19  ;;  %3051 = vmatmul.bf16.gmra.mxu3 %v5033_v21  ;;  %v5345_v19 = vor.u32 %v5819_v51, %v5342_v55  ;;  %v4761_v21 = vor.u32 %v5758_v4, %v4760_v59  ;;  %v5109_v24 = vor.u32 %v5701_v10, %v5108_v9  ;;  %v5354_v51 = vld [vmem:[#allocation2 + $0x84] sm:$0xf0]  ;;  %v4772_v59 = vld [vmem:[#allocation2 + $0xb0] sm:$0xf]  ;;  %v5761_v4 = vld [vmem:[#allocation2 + $0xb8] sm:$0xf0] }
 0x219   : > { %3165 = vmatmul.bf16.gmra.mxu1 %v5097_v23  ;;  %v5045_v23 = vor.u32 %v5684_v50, %v5042_v5  ;;  %v5054_v5 = vld [vmem:[#allocation2 + $0x9c] sm:$0xf0]  ;;  %v5120_v10 = vld [vmem:[#allocation2 + $0x110] sm:$0xf]  ;;  %3897 = vmatpush.bf16.msra.mxu3 %v5880_v7 }
 0x21b   : > { %v2336_v30 = vpop.f32.mrf.mxu3  ;;  %v2425_v35 = vpop.f32.mrf.mxu2 }
 0x21c   : > { %v6813_v44 = vadd.f32 %v2425_v35, %v2336_v30 }
 0x21e   : > { %7396 = vst [vmem:[#allocation9_spill] sm:$0xff] %v6813_v44 }
 0x223   : > { %v2338_v57 = vpop.f32.mrf.mxu3  ;;  %v2427_v58 = vpop.f32.mrf.mxu2 }
 0x224   : > { %v6817_v8 = vadd.f32 %v2427_v58, %v2338_v57  ;;  %v6825_v57 = vpop.f32.mrf.mxu0  ;;  %v5687_v58 = vld [vmem:[#allocation2 + $0x94] sm:$0xf] }
 0x226   : > { %7397 = vst [vmem:[#allocation10_spill] sm:$0xff] %v6817_v8  ;;  %v5822_v8 = vld [vmem:[#allocation2 + $0x7c] sm:$0xf] }
 0x227   : > { %3822 = vmatmul.bf16.gmra.mxu0 %v5345_v19  ;;  %v5704_v19 = vld [vmem:[#allocation2 + $0x118] sm:$0xf0] }
 0x228   : > { %2478 = vmatmul.bf16.gmra.mxu2 %v4761_v21  ;;  %3056 = vmatmul.bf16.gmra.mxu3 %v5045_v23  ;;  %v5357_v21 = vor.u32 %v5822_v8, %v5354_v51  ;;  %v4773_v23 = vor.u32 %v5761_v4, %v4772_v59  ;;  %v6835_v8 = vpop.f32.mrf.mxu1  ;;  %v5690_v59 = vld [vmem:[#allocation2 + $0xac] sm:$0xf]  ;;  %v5825_v4 = vld [vmem:[#allocation2 + $0x94] sm:$0xf] }
 0x229   : > { %3170 = vmatmul.bf16.gmra.mxu1 %v5109_v24  ;;  %v5057_v24 = vor.u32 %v5687_v58, %v5054_v5  ;;  %7401 = vst [vmem:[#allocation14_spill] sm:$0xff] %v6835_v8  ;;  %v5366_v5 = vld [vmem:[#allocation2 + $0x9c] sm:$0xf0] }
 0x22b   : > { %v2341_v30 = vpop.f32.mrf.mxu3  ;;  %v2430_v35 = vpop.f32.mrf.mxu2 }
 0x22c   : > { %v6821_v44 = vadd.f32 %v2430_v35, %v2341_v30  ;;  %v5121_v30 = vor.u32 %v5704_v19, %v5120_v10  ;;  %v5864_v35 = vld [vmem:[%s7382_s5 + $0x198] sm:$0xff]  ;;  %v6837_v58 = vpop.f32.mrf.mxu0 }
 0x22d   : > { %3719 = vmatpush.bf16.msrb.mxu2 %v5864_v35  ;;  %7402 = vst [vmem:[#allocation15_spill] sm:$0xff] %v6837_v58  ;;  %v5369_v35 = vor.u32 %v5825_v4, %v5366_v5  ;;  %v5378_v4 = vld [vmem:[#allocation2 + $0xb4] sm:$0xf0]  ;;  %v5078_v5 = vld [vmem:[#allocation2 + $0xcc] sm:$0xf0] }
 0x22e   : > { %7398 = vst [vmem:[#allocation11_spill] sm:$0xff] %v6821_v44  ;;  %v5707_v44 = vld [vmem:[#allocation2 + $0x130] sm:$0xf0] }
 0x230   : > { %v6843_v7 = vpop.f32.mrf.mxu1 }
 0x231   : > { %7405 = vst [vmem:[#allocation18_spill] sm:$0xff] %v6843_v7  ;;  %v5828_v7 = vld [vmem:[#allocation2 + $0xac] sm:$0xf] }
 0x233   : > { %v2343_v55 = vpop.f32.mrf.mxu3  ;;  %v2432_v50 = vpop.f32.mrf.mxu2 }
 0x234   : > { %v6827_v9 = vadd.f32 %v2432_v50, %v2343_v55  ;;  %v6845_v8 = vpop.f32.mrf.mxu0 }
 0x236   : > { %7400 = vst [vmem:[#allocation13_spill] sm:$0xff] %v6827_v9  ;;  %v5132_v9 = vld [vmem:[#allocation2 + $0x128] sm:$0xf] }
 0x237   : > { %3827 = vmatmul.bf16.gmra.mxu0 %v5357_v21  ;;  %v4784_v21 = vld [vmem:[#allocation2 + $0xc8] sm:$0xf] }
 0x238   : > { %2483 = vmatmul.bf16.gmra.mxu2 %v4773_v23  ;;  %3061 = vmatmul.bf16.gmra.mxu3 %v5057_v24  ;;  %v5764_v23 = vld [vmem:[#allocation2 + $0xd0] sm:$0xf0]  ;;  %v5066_v24 = vld [vmem:[#allocation2 + $0xb4] sm:$0xf0] }
 0x239   : > { %3175 = vmatmul.bf16.gmra.mxu1 %v5121_v30  ;;  %v4785_v47 = vor.u32 %v5764_v23, %v4784_v21  ;;  %v5767_v21 = vld [vmem:[#allocation2 + $0xe8] sm:$0xf0]  ;;  %v5693_v23 = vld [vmem:[#allocation2 + $0xc4] sm:$0xf] }
 0x23b   : > { %v2346_v55 = vpop.f32.mrf.mxu3  ;;  %v2435_v50 = vpop.f32.mrf.mxu2 }
 0x23c   : > { %v6839_v51 = vadd.f32 %v2435_v50, %v2346_v55  ;;  %v5069_v55 = vor.u32 %v5690_v59, %v5066_v24  ;;  %v5133_v50 = vor.u32 %v5707_v44, %v5132_v9  ;;  %v5892_v59 = vld [vmem:[%s7384_s7 + $0x38] sm:$0xff] }
 0x23d   : > { %4166 = vmatpush.bf16.msrb.mxu1 %v5892_v59  ;;  %v5879_v59 = vld [vmem:[%s7382_s5 + $0x210] sm:$0xff] }
 0x23e   : > { %7403 = vst [vmem:[#allocation16_spill] sm:$0xff] %v6839_v51  ;;  %3898 = vmatpush.bf16.msra.mxu3 %v5879_v59  ;;  %v5713_v59 = vld [vmem:[#allocation2 + $0x160] sm:$0xf0] }
 0x243   : > { %v2348_v10 = vpop.f32.mrf.mxu3  ;;  %v2437_v19 = vpop.f32.mrf.mxu2 }
 0x244   : > { %v6841_v30 = vadd.f32 %v2437_v19, %v2348_v10  ;;  %v6849_v10 = vpop.f32.mrf.mxu1  ;;  %v6851_v19 = vpop.f32.mrf.mxu0 }
 0x245   : > { %7407 = vst [vmem:[#allocation20_spill] sm:$0xff] %v6849_v10 }
 0x246   : > { %7404 = vst [vmem:[#allocation17_spill] sm:$0xff] %v6841_v30 }
 0x247   : > { %3832 = vmatmul.bf16.gmra.mxu0 %v5369_v35  ;;  %v5381_v35 = vor.u32 %v5828_v7, %v5378_v4 }
 0x248   : > { %2488 = vmatmul.bf16.gmra.mxu2 %v4785_v47  ;;  %3066 = vmatmul.bf16.gmra.mxu3 %v5069_v55  ;;  %v4796_v47 = vld [vmem:[#allocation2 + $0xe0] sm:$0xf] }
 0x249   : > { %3180 = vmatmul.bf16.gmra.mxu1 %v5133_v50  ;;  %v4797_v55 = vor.u32 %v5767_v21, %v4796_v47  ;;  %v5081_v50 = vor.u32 %v5693_v23, %v5078_v5  ;;  %v2368_v47 = vadd.f32 %v6587_v42, %v6607_v61  ;;  %v5090_v21 = vld [vmem:[#allocation2 + $0xe4] sm:$0xf0]  ;;  %v5831_v23 = vld [vmem:[#allocation2 + $0xc4] sm:$0xf] }
 0x24b   : > { %v2351_v51 = vpop.f32.mrf.mxu3  ;;  %v2440_v20 = vpop.f32.mrf.mxu2 }
 0x24c   : > { %v6847_v58 = vadd.f32 %v2440_v20, %v2351_v51  ;;  %v5144_v20 = vld [vmem:[#allocation2 + $0x140] sm:$0xf]  ;;  %v5710_v51 = vld [vmem:[#allocation2 + $0x148] sm:$0xf0]  ;;  %v6860_v30 = vpop.f32.mrf.mxu0 }
 0x24d   : > { %v5145_v10 = vor.u32 %v5710_v51, %v5144_v20  ;;  %7410 = vst [vmem:[#allocation23_spill] sm:$0xff] %v6860_v30  ;;  %v5390_v20 = vld [vmem:[#allocation2 + $0xcc] sm:$0xf0] }
 0x24e   : > { %7406 = vst [vmem:[#allocation19_spill] sm:$0xff] %v6847_v58  ;;  %v6858_v58 = vpop.f32.mrf.mxu1 }
 0x24f   : > { %7409 = vst [vmem:[#allocation22_spill] sm:$0xff] %v6858_v58  ;;  %v5696_v58 = vld [vmem:[#allocation2 + $0xdc] sm:$0xf] }
 0x250   : > { %v5093_v42 = vor.u32 %v5696_v58, %v5090_v21  ;;  %v5834_v58 = vld [vmem:[#allocation2 + $0xdc] sm:$0xf]  ;;  %v2373_v21 = vadd.f32 %v6622_v32, %v6645_v54 }
 0x253   : > { %v2353_v44 = vpop.f32.mrf.mxu3  ;;  %v2442_v9 = vpop.f32.mrf.mxu2 }
 0x254   : > { %v6856_v24 = vadd.f32 %v2442_v9, %v2353_v44  ;;  %v5863_v44 = vld [vmem:[%s7382_s5 + $0x190] sm:$0xff] }
 0x255   : > { %3720 = vmatpush.bf16.msrb.mxu2 %v5863_v44  ;;  %v5156_v44 = vld [vmem:[#allocation2 + $0x158] sm:$0xf] }
 0x256   : > { %7408 = vst [vmem:[#allocation21_spill] sm:$0xff] %v6856_v24  ;;  %v6874_v24 = vpop.f32.mrf.mxu0  ;;  %v5157_v61 = vor.u32 %v5713_v59, %v5156_v44  ;;  %v5699_v44 = vld [vmem:[#allocation2 + $0xf4] sm:$0xf]  ;;  %v5168_v59 = vld [vmem:[#allocation2 + $0x170] sm:$0xf] }
 0x257   : > { %3837 = vmatmul.bf16.gmra.mxu0 %v5381_v35 }
 0x258   : > { %2493 = vmatmul.bf16.gmra.mxu2 %v4797_v55  ;;  %3071 = vmatmul.bf16.gmra.mxu3 %v5081_v50  ;;  %v4808_v55 = vld [vmem:[#allocation2 + $0xf8] sm:$0xf]  ;;  %v5770_v50 = vld [vmem:[#allocation2 + $0x100] sm:$0xf0] }
 0x259   : > { %3185 = vmatmul.bf16.gmra.mxu1 %v5145_v10 }
 0x25b   : > { %v2454_v7 = vpop.f32.mrf.mxu2  ;;  %v3032_v4 = vpop.f32.mrf.mxu3 }
 0x25c   : > { %v2455_v5 = vadd.f32 %v2454_v7, %v6585_v33  ;;  %v6876_v7 = vpop.f32.mrf.mxu1 }
 0x25d   : > { %7412 = vst [vmem:[#allocation25_spill] sm:$0xff] %v6876_v7 }
 0x25e   : > { %v2944_v10 = vadd.f32 %v6672_v56, %v2455_v5  ;;  %v5393_v56 = vor.u32 %v5831_v23, %v5390_v20  ;;  %v4809_v5 = vor.u32 %v5770_v50, %v4808_v55  ;;  %v5102_v20 = vld [vmem:[#allocation2 + $0xfc] sm:$0xf0]  ;;  %v5891_v55 = vld [vmem:[%s7384_s7 + $0x30] sm:$0xff] }
 0x25f   : > { %4167 = vmatpush.bf16.msrb.mxu1 %v5891_v55  ;;  %v5105_v32 = vor.u32 %v5699_v44, %v5102_v20  ;;  %v5414_v44 = vld [vmem:[#allocation2 + $0xfc] sm:$0xf0] }
 0x260   : > { %v6870_v9 = vadd.f32 %v3032_v4, %v2944_v10 }
 0x262   : > { %7411 = vst [vmem:[#allocation24_spill] sm:$0xff] %v6870_v9 }
 0x263   : > { %v2456_v51 = vpop.f32.mrf.mxu2  ;;  %v3034_v35 = vpop.f32.mrf.mxu3 }
 0x264   : > { %v2457_v33 = vadd.f32 %v2456_v51, %v2368_v47  ;;  %v6882_v51 = vpop.f32.mrf.mxu0  ;;  %v6885_v23 = vpop.f32.mrf.mxu1 }
 0x266   : > { %v2946_v4 = vadd.f32 %v6682_v13, %v2457_v33  ;;  %v5773_v33 = vld [vmem:[#allocation2 + $0x118] sm:$0xf0] }
 0x267   : > { %3842 = vmatmul.bf16.gmra.mxu0 %v5393_v56  ;;  %v5716_v56 = vld [vmem:[#allocation2 + $0x178] sm:$0xf0] }
 0x268   : > { %v6879_v10 = vadd.f32 %v3034_v35, %v2946_v4  ;;  %2498 = vmatmul.bf16.gmra.mxu2 %v4809_v5  ;;  %3076 = vmatmul.bf16.gmra.mxu3 %v5093_v42  ;;  %v5402_v35 = vld [vmem:[#allocation2 + $0xe4] sm:$0xf0]  ;;  %v5169_v54 = vor.u32 %v5716_v56, %v5168_v59 }
 0x269   : > { %3190 = vmatmul.bf16.gmra.mxu1 %v5157_v61  ;;  %v4832_v56 = vld [vmem:[#allocation2 + $0x128] sm:$0xf] }
 0x26b   : > { %v2459_v9 = vpop.f32.mrf.mxu2  ;;  %v3037_v30 = vpop.f32.mrf.mxu3 }
 0x26c   : > { %v2460_v47 = vadd.f32 %v2459_v9, %v6620_v29  ;;  %v4820_v9 = vld [vmem:[#allocation2 + $0x110] sm:$0xf]  ;;  %v6895_v5 = vpop.f32.mrf.mxu0  ;;  %v6899_v61 = vpop.f32.mrf.mxu1 }
 0x26d   : > { %v4821_v4 = vor.u32 %v5773_v33, %v4820_v9  ;;  %v5114_v9 = vld [vmem:[#allocation2 + $0x114] sm:$0xf0]  ;;  %v5837_v33 = vld [vmem:[#allocation2 + $0xf4] sm:$0xf] }
 0x26e   : > { %v2949_v7 = vadd.f32 %v6689_v27, %v2460_v47  ;;  %v5862_v47 = vld [vmem:[%s7382_s5 + $0x188] sm:$0xff] }
 0x26f   : > { %3721 = vmatpush.bf16.msrb.mxu2 %v5862_v47 }
 0x270   : > { %v6887_v13 = vadd.f32 %v3037_v30, %v2949_v7  ;;  %v5405_v30 = vor.u32 %v5834_v58, %v5402_v35 }
 0x273   : > { %v2461_v50 = vpop.f32.mrf.mxu2  ;;  %v3039_v29 = vpop.f32.mrf.mxu3 }
 0x274   : > { %v2462_v27 = vadd.f32 %v2461_v50, %v2373_v21  ;;  %v2378_v50 = vadd.f32 %v6657_v25, %v6795_v2 }
 0x276   : > { %v2951_v7 = vadd.f32 %v6696_v39, %v2462_v27  ;;  %v5878_v39 = vld [vmem:[%s7382_s5 + $0x208] sm:$0xff] }
 0x277   : > { %3847 = vmatmul.bf16.gmra.mxu0 %v5405_v30  ;;  %3899 = vmatpush.bf16.msra.mxu3 %v5878_v39  ;;  %v5776_v30 = vld [vmem:[#allocation2 + $0x130] sm:$0xf0] }
 0x278   : > { %v6897_v42 = vadd.f32 %v3039_v29, %v2951_v7  ;;  %2503 = vmatmul.bf16.gmra.mxu2 %v4821_v4  ;;  %3081 = vmatmul.bf16.gmra.mxu3 %v5105_v32  ;;  %v6913_v29 = vpop.f32.mrf.mxu0  ;;  %v5702_v7 = vld [vmem:[#allocation2 + $0x10c] sm:$0xf]  ;;  %v5417_v4 = vor.u32 %v5837_v33, %v5414_v44 }
 0x279   : > { %3195 = vmatmul.bf16.gmra.mxu1 %v5169_v54  ;;  %v5117_v54 = vor.u32 %v5702_v7, %v5114_v9  ;;  %v5890_v9 = vld [vmem:[%s7384_s7 + $0x28] sm:$0xff] }
 0x27a   : > { %4168 = vmatpush.bf16.msrb.mxu1 %v5890_v9 }
 0x27b   : > { %v2464_v58 = vpop.f32.mrf.mxu2  ;;  %v3042_v21 = vpop.f32.mrf.mxu3 }
 0x27c   : > { %v2465_v20 = vadd.f32 %v2464_v58, %v6652_v22 }
 0x27e   : > { %v2954_v35 = vadd.f32 %v6703_v53, %v2465_v20  ;;  %v4833_v53 = vor.u32 %v5776_v30, %v4832_v56  ;;  %v5705_v56 = vld [vmem:[#allocation2 + $0x124] sm:$0xf] }
 0x280   : > { %v6909_v55 = vadd.f32 %v3042_v21, %v2954_v35  ;;  %v6918_v39 = vpop.f32.mrf.mxu0  ;;  %v5840_v35 = vld [vmem:[#allocation2 + $0x10c] sm:$0xf] }
 0x283   : > { %v2466_v27 = vpop.f32.mrf.mxu2  ;;  %v3044_v59 = vpop.f32.mrf.mxu3 }
 0x284   : > { %v2467_v22 = vadd.f32 %v2466_v27, %v2378_v50  ;;  %v5126_v50 = vld [vmem:[#allocation2 + $0x12c] sm:$0xf0]  ;;  %v4844_v27 = vld [vmem:[#allocation2 + $0x140] sm:$0xf] }
 0x286   : > { %v2956_v32 = vadd.f32 %v6710_v1, %v2467_v22  ;;  %v5426_v1 = vld [vmem:[#allocation2 + $0x114] sm:$0xf0] }
 0x287   : > { %3852 = vmatmul.bf16.gmra.mxu0 %v5417_v4  ;;  %v5129_v4 = vor.u32 %v5705_v56, %v5126_v50  ;;  %v5843_v50 = vld [vmem:[#allocation2 + $0x124] sm:$0xf] }
 0x288   : > { %v6916_v47 = vadd.f32 %v3044_v59, %v2956_v32  ;;  %2508 = vmatmul.bf16.gmra.mxu2 %v4833_v53  ;;  %3086 = vmatmul.bf16.gmra.mxu3 %v5117_v54  ;;  %v5779_v59 = vld [vmem:[#allocation2 + $0x148] sm:$0xf0]  ;;  %v6928_v7 = vpop.f32.mrf.mxu0  ;;  %v5861_v53 = vld [vmem:[%s7382_s5 + $0x180] sm:$0xff] }
 0x289   : > { %v4845_v22 = vor.u32 %v5779_v59, %v4844_v27  ;;  %3722 = vmatpush.bf16.msrb.mxu2 %v5861_v53  ;;  %v5782_v27 = vld [vmem:[#allocation2 + $0x160] sm:$0xf0]  ;;  %v5708_v59 = vld [vmem:[#allocation2 + $0x13c] sm:$0xf] }
 0x28b   : > { %v2469_v25 = vpop.f32.mrf.mxu2  ;;  %v3047_v2 = vpop.f32.mrf.mxu3 }
 0x28c   : > { %v2470_v58 = vadd.f32 %v2469_v25, %v6680_v12  ;;  %v5429_v12 = vor.u32 %v5840_v35, %v5426_v1  ;;  %v5138_v35 = vld [vmem:[#allocation2 + $0x144] sm:$0xf0]  ;;  %v5438_v1 = vld [vmem:[#allocation2 + $0x12c] sm:$0xf0] }
 0x28e   : > { %v2959_v21 = vadd.f32 %v6717_v16, %v2470_v58 }
 0x290   : > { %v6922_v20 = vadd.f32 %v3047_v2, %v2959_v21  ;;  %v6941_v58 = vpop.f32.mrf.mxu0 }
 0x293   : > { %v2471_v33 = vpop.f32.mrf.mxu2  ;;  %v3049_v44 = vpop.f32.mrf.mxu3 }
 0x294   : > { %v2472_v30 = vadd.f32 %v2471_v33, %v6687_v26  ;;  %v5877_v26 = vld [vmem:[%s7382_s5 + $0x200] sm:$0xff] }
 0x295   : > { %3900 = vmatpush.bf16.msra.mxu3 %v5877_v26 }
 0x296   : > { %v2961_v16 = vadd.f32 %v6727_v6, %v2472_v30  ;;  %v5441_v30 = vor.u32 %v5843_v50, %v5438_v1  ;;  %v4868_v1 = vld [vmem:[#allocation2 + $0x170] sm:$0xf] }
 0x297   : > { %3857 = vmatmul.bf16.gmra.mxu0 %v5429_v12 }
 0x298   : > { %v6931_v32 = vadd.f32 %v3049_v44, %v2961_v16  ;;  %2513 = vmatmul.bf16.gmra.mxu2 %v4845_v22  ;;  %3091 = vmatmul.bf16.gmra.mxu3 %v5129_v4  ;;  %v4856_v44 = vld [vmem:[#allocation2 + $0x158] sm:$0xf]  ;;  %v5141_v16 = vor.u32 %v5708_v59, %v5138_v35  ;;  %v6949_v22 = vpop.f32.mrf.mxu0 }
 0x299   : > { %v4857_v12 = vor.u32 %v5782_v27, %v4856_v44 }
 0x29b   : > { %v2474_v54 = vpop.f32.mrf.mxu2  ;;  %v3052_v25 = vpop.f32.mrf.mxu3 }
 0x29c   : > { %v2475_v2 = vadd.f32 %v2474_v54, %v6694_v37 }
 0x29e   : > { %v2964_v6 = vadd.f32 %v6734_v49, %v2475_v2  ;;  %v5711_v2 = vld [vmem:[#allocation2 + $0x154] sm:$0xf] }
 0x2a0   : > { %v6943_v21 = vadd.f32 %v3052_v25, %v2964_v6  ;;  %v5889_v6 = vld [vmem:[%s7384_s7 + $0x20] sm:$0xff]  ;;  %v6958_v44 = vpop.f32.mrf.mxu0 }
 0x2a1   : > { %4169 = vmatpush.bf16.msrb.mxu1 %v5889_v6  ;;  %v5788_v6 = vld [vmem:[#allocation2 + $0x190] sm:$0xf0] }
 0x2a3   : > { %v2476_v9 = vpop.f32.mrf.mxu2  ;;  %v3054_v33 = vpop.f32.mrf.mxu3 }
 0x2a4   : > { %v2477_v56 = vadd.f32 %v2476_v9, %v6701_v52  ;;  %v5846_v52 = vld [vmem:[#allocation2 + $0x13c] sm:$0xf] }
 0x2a5   : > { %v5785_v9 = vld [vmem:[#allocation2 + $0x178] sm:$0xf0] }
 0x2a6   : > { %v2966_v37 = vadd.f32 %v6738_v0, %v2477_v56  ;;  %v5450_v0 = vld [vmem:[#allocation2 + $0x144] sm:$0xf0]  ;;  %v4869_v59 = vor.u32 %v5785_v9, %v4868_v1 }
 0x2a7   : > { %3862 = vmatmul.bf16.gmra.mxu0 %v5441_v30 }
 0x2a8   : > { %v6947_v49 = vadd.f32 %v3054_v33, %v2966_v37  ;;  %2518 = vmatmul.bf16.gmra.mxu2 %v4857_v12  ;;  %3096 = vmatmul.bf16.gmra.mxu3 %v5141_v16  ;;  %v5150_v33 = vld [vmem:[#allocation2 + $0x15c] sm:$0xf0] }
 0x2a9   : > { %v5153_v56 = vor.u32 %v5711_v2, %v5150_v33 }
 0x2ab   : > { %v2479_v4 = vpop.f32.mrf.mxu2  ;;  %v3057_v53 = vpop.f32.mrf.mxu3 }
 0x2ac   : > { %v2480_v26 = vadd.f32 %v2479_v4, %v6708_v43  ;;  %v6965_v4 = vpop.f32.mrf.mxu0 }
 0x2ae   : > { %v2969_v54 = vadd.f32 %v6751_v31, %v2480_v26  ;;  %v5453_v31 = vor.u32 %v5846_v52, %v5450_v0  ;;  %v5714_v26 = vld [vmem:[#allocation2 + $0x16c] sm:$0xf]  ;;  %v4880_v0 = vld [vmem:[#allocation2 + $0x188] sm:$0xf] }
 0x2b0   : > { %v6953_v25 = vadd.f32 %v3057_v53, %v2969_v54  ;;  %v5849_v54 = vld [vmem:[#allocation2 + $0x154] sm:$0xf] }
 0x2b3   : > { %v2481_v35 = vpop.f32.mrf.mxu2  ;;  %v3059_v50 = vpop.f32.mrf.mxu3 }
 0x2b4   : > { %v2482_v43 = vadd.f32 %v2481_v35, %v6715_v14  ;;  %v5162_v35 = vld [vmem:[#allocation2 + $0x174] sm:$0xf0] }
 0x2b5   : > { %v5165_v33 = vor.u32 %v5714_v26, %v5162_v35 }
 0x2b6   : > { %v2971_v27 = vadd.f32 %v6767_v46, %v2482_v43  ;;  %v5462_v46 = vld [vmem:[#allocation2 + $0x15c] sm:$0xf0]  ;;  %v6972_v43 = vpop.f32.mrf.mxu0 }
 0x2b7   : > { %3867 = vmatmul.bf16.gmra.mxu0 %v5453_v31  ;;  %v5465_v1 = vor.u32 %v5849_v54, %v5462_v46  ;;  %v5316_v46 = vld [vmem:[#allocation2 + $0x30] sm:$0xf] }
 0x2b8   : > { %v6962_v30 = vadd.f32 %v3059_v50, %v2971_v27  ;;  %2523 = vmatmul.bf16.gmra.mxu2 %v4869_v59  ;;  %3101 = vmatmul.bf16.gmra.mxu3 %v5153_v56 }
 0x2bb   : > { %v2484_v37 = vpop.f32.mrf.mxu2  ;;  %v3062_v12 = vpop.f32.mrf.mxu3 }
 0x2bc   : > { %v2485_v16 = vadd.f32 %v2484_v37, %v6725_v34  ;;  %v4881_v34 = vor.u32 %v5788_v6, %v4880_v0 }
 0x2be   : > { %v2974_v53 = vadd.f32 %v6777_v17, %v2485_v16  ;;  %v5474_v16 = vld [vmem:[#allocation2 + $0x174] sm:$0xf0] }
 0x2c0   : > { %v6968_v14 = vadd.f32 %v3062_v12, %v2974_v53  ;;  %v6980_v12 = vpop.f32.mrf.mxu0  ;;  %v5888_v53 = vld [vmem:[%s7384_s7 + $0x18] sm:$0xff] }
 0x2c1   : > { %4170 = vmatpush.bf16.msrb.mxu1 %v5888_v53  ;;  %v5818_v53 = vld [vmem:[#allocation2 + $0x58] sm:$0xf0] }
 0x2c3   : > { %v2486_v52 = vpop.f32.mrf.mxu2  ;;  %v3064_v2 = vpop.f32.mrf.mxu3 }
 0x2c4   : > { %v2487_v50 = vadd.f32 %v2486_v52, %v6732_v48  ;;  %v5814_v48 = vld [vmem:[#allocation2 + $0x38] sm:$0xf0]  ;;  %v5324_v52 = vld [vmem:[#allocation2 + $0x38] sm:$0xf] }
 0x2c5   : > { %v5317_v6 = vor.u32 %v5814_v48, %v5316_v46 }
 0x2c6   : > { %v2976_v9 = vadd.f32 %v6783_v38, %v2487_v50  ;;  %v5852_v38 = vld [vmem:[#allocation2 + $0x16c] sm:$0xf] }
 0x2c7   : > { %3872 = vmatmul.bf16.gmra.mxu0 %v5465_v1 }
 0x2c8   : > { %v6974_v17 = vadd.f32 %v3064_v2, %v2976_v9  ;;  %2528 = vmatmul.bf16.gmra.mxu2 %v4881_v34  ;;  %3106 = vmatmul.bf16.gmra.mxu3 %v5165_v33  ;;  %v5815_v2 = vld [vmem:[#allocation2 + $0x40] sm:$0xf0]  ;;  %v6990_v33 = vpop.f32.mrf.mxu0 }
 0x2c9   : > { %v5325_v35 = vor.u32 %v5815_v2, %v5324_v52 }
 0x2cb   : > { %v2489_v31 = vpop.f32.mrf.mxu2  ;;  %v3067_v27 = vpop.f32.mrf.mxu3 }
 0x2cc   : > { %v2490_v59 = vadd.f32 %v2489_v31, %v6736_v63 }
 0x2ce   : > { %v2979_v56 = vadd.f32 %v6793_v41, %v2490_v59  ;;  %v5477_v41 = vor.u32 %v5852_v38, %v5474_v16  ;;  %v5855_v59 = vld [vmem:[#allocation2 + $0x184] sm:$0xf]  ;;  %v5328_v38 = vld [vmem:[#allocation2 + $0x48] sm:$0xf]  ;;  %v5336_v16 = vld [vmem:[#allocation2 + $0x50] sm:$0xf] }
 0x2cf   : > { %v5337_v52 = vor.u32 %v5818_v53, %v5336_v16  ;;  %v7013_v53 = vpop.f32.mrf.mxu1 }
 0x2d0   : > { %v6978_v37 = vadd.f32 %v3067_v27, %v2979_v56  ;;  %v5817_v27 = vld [vmem:[#allocation2 + $0x50] sm:$0xf0]  ;;  %v6997_v2 = vpop.f32.mrf.mxu0 }
 0x2d3   : > { %v2491_v26 = vpop.f32.mrf.mxu2  ;;  %v3069_v54 = vpop.f32.mrf.mxu3 }
 0x2d4   : > { %v2492_v63 = vadd.f32 %v2491_v26, %v6743_v11 }
 0x2d6   : > { %v2981_v0 = vadd.f32 %v6799_v15, %v2492_v63  ;;  %v5486_v15 = vld [vmem:[#allocation2 + $0x18c] sm:$0xf0] }
 0x2d7   : > { %3877 = vmatmul.bf16.gmra.mxu0 %v5477_v41 }
 0x2d8   : > { %v6987_v50 = vadd.f32 %v3069_v54, %v2981_v0  ;;  %3723 = vmatmul.bf16.vlgmr.msrb.gmra.mxu2 %v5317_v6  ;;  %3901 = vmatmul.bf16.vlgmr.msra.gmra.mxu3 %v5325_v35  ;;  %v5489_v54 = vor.u32 %v5855_v59, %v5486_v15 }
 0x2db   : > { %v2494_v1 = vpop.f32.mrf.mxu2  ;;  %v3072_v9 = vpop.f32.mrf.mxu3 }
 0x2dc   : > { %v2495_v34 = vadd.f32 %v2494_v1, %v6759_v40  ;;  %v5329_v40 = vor.u32 %v5817_v27, %v5328_v38  ;;  %v5821_v27 = vld [vmem:[#allocation2 + $0x70] sm:$0xf0] }
 0x2de   : > { %v2984_v31 = vadd.f32 %v6803_v3, %v2495_v34  ;;  %v5340_v34 = vld [vmem:[#allocation2 + $0x60] sm:$0xf] }
 0x2e0   : > { %v6993_v11 = vadd.f32 %v3072_v9, %v2984_v31  ;;  %v5348_v31 = vld [vmem:[#allocation2 + $0x68] sm:$0xf] }
 0x2e3   : > { %v2496_v56 = vpop.f32.mrf.mxu2  ;;  %v3074_v48 = vpop.f32.mrf.mxu3 }
 0x2e4   : > { %v2497_v26 = vadd.f32 %v2496_v56, %v6769_v60  ;;  %v5820_v60 = vld [vmem:[#allocation2 + $0x68] sm:$0xf0]  ;;  %v5349_v56 = vor.u32 %v5821_v27, %v5348_v31  ;;  %v7415_v27 = vld [vmem:[#allocation7_spill] sm:$0xff] }
 0x2e6   : > { %v2986_v46 = vadd.f32 %v6815_v45, %v2497_v26  ;;  %v5887_v45 = vld [vmem:[%s7384_s7 + $0x10] sm:$0xff]  ;;  %v7413_v26 = vld [vmem:[#allocation15_spill] sm:$0xff] }
 0x2e7   : > { %3882 = vmatmul.bf16.gmra.mxu0 %v5489_v54  ;;  %4171 = vmatpush.bf16.msrb.mxu1 %v5887_v45 }
 0x2e8   : > { %v6999_v3 = vadd.f32 %v3074_v48, %v2986_v46  ;;  %3728 = vmatmul.bf16.gmra.mxu2 %v5329_v40  ;;  %3906 = vmatmul.bf16.gmra.mxu3 %v5337_v52 }
 0x2eb   : > { %v2499_v63 = vpop.f32.mrf.mxu2  ;;  %v3077_v41 = vpop.f32.mrf.mxu3 }
 0x2ec   : > { %v2500_v0 = vadd.f32 %v2499_v63, %v6779_v18  ;;  %v5341_v18 = vor.u32 %v5820_v60, %v5340_v34  ;;  %v5360_v63 = vld [vmem:[#allocation2 + $0x80] sm:$0xf] }
 0x2ee   : > { %v2989_v6 = vadd.f32 %v6819_v28, %v2500_v0  ;;  %v7414_v0 = vld [vmem:[#allocation6_spill] sm:$0xff] }
 0x2f0   : > { %v7003_v35 = vadd.f32 %v3077_v41, %v2989_v6  ;;  %v5824_v41 = vld [vmem:[#allocation2 + $0x88] sm:$0xf0] }
 0x2f3   : > { %v2501_v1 = vpop.f32.mrf.mxu2  ;;  %v3079_v9 = vpop.f32.mrf.mxu3 }
 0x2f4   : > { %v2502_v59 = vadd.f32 %v2501_v1, %v6781_v36  ;;  %v5823_v36 = vld [vmem:[#allocation2 + $0x80] sm:$0xf0]  ;;  %v5361_v1 = vor.u32 %v5824_v41, %v5360_v63 }
 0x2f6   : > { %v2991_v15 = vadd.f32 %v6825_v57, %v2502_v59  ;;  %v5352_v57 = vld [vmem:[#allocation2 + $0x78] sm:$0xf] }
 0x2f7   : > { %v5353_v45 = vor.u32 %v5823_v36, %v5352_v57  ;;  %v5827_v36 = vld [vmem:[#allocation2 + $0xa0] sm:$0xf0]  ;;  %v7417_v57 = vld [vmem:[#allocation23_spill] sm:$0xff] }
 0x2f8   : > { %v7010_v28 = vadd.f32 %v3079_v9, %v2991_v15  ;;  %3733 = vmatmul.bf16.gmra.mxu2 %v5341_v18  ;;  %3911 = vmatmul.bf16.gmra.mxu3 %v5349_v56  ;;  %v7020_v9 = vpop.f32.mrf.mxu1 }
 0x2fb   : > { %v2504_v48 = vpop.f32.mrf.mxu2  ;;  %v3082_v38 = vpop.f32.mrf.mxu3 }
 0x2fc   : > { %v2505_v16 = vadd.f32 %v2504_v48, %v6791_v62  ;;  %v5826_v48 = vld [vmem:[#allocation2 + $0x98] sm:$0xf0] }
 0x2fe   : > { %v2994_v54 = vadd.f32 %v7413_v26, %v2505_v16  ;;  %v5364_v26 = vld [vmem:[#allocation2 + $0x90] sm:$0xf] }
 0x300   : > { %v7016_v46 = vadd.f32 %v3082_v38, %v2994_v54  ;;  %v7028_v56 = vpop.f32.mrf.mxu1  ;;  %v5372_v54 = vld [vmem:[#allocation2 + $0x98] sm:$0xf] }
 0x301   : > { %v5373_v41 = vor.u32 %v5827_v36, %v5372_v54 }
 0x303   : > { %v2506_v40 = vpop.f32.mrf.mxu2  ;;  %v3084_v52 = vpop.f32.mrf.mxu3 }
 0x304   : > { %v2507_v6 = vadd.f32 %v2506_v40, %v7414_v0  ;;  %v7416_v40 = vld [vmem:[#allocation8_spill] sm:$0xff] }
 0x306   : > { %v2996_v60 = vadd.f32 %v6845_v8, %v2507_v6  ;;  %v5886_v8 = vld [vmem:[%s7384_s7 + $0x8] sm:$0xff] }
 0x307   : > { %4172 = vmatpush.bf16.msrb.mxu1 %v5886_v8 }
 0x308   : > { %v7022_v62 = vadd.f32 %v3084_v52, %v2996_v60  ;;  %3738 = vmatmul.bf16.gmra.mxu2 %v5353_v45  ;;  %3916 = vmatmul.bf16.gmra.mxu3 %v5361_v1  ;;  %v7037_v45 = vpop.f32.mrf.mxu1  ;;  %v7419_v1 = vld [vmem:[#allocation9_spill] sm:$0xff] }
 0x30b   : > { %v2509_v34 = vpop.f32.mrf.mxu2  ;;  %v3087_v31 = vpop.f32.mrf.mxu3 }
 0x30c   : > { %v2510_v59 = vadd.f32 %v2509_v34, %v7415_v27 }
 0x30e   : > { %v2999_v15 = vadd.f32 %v6851_v19, %v2510_v59  ;;  %v5365_v19 = vor.u32 %v5826_v48, %v5364_v26  ;;  %v5829_v59 = vld [vmem:[#allocation2 + $0xb0] sm:$0xf0]  ;;  %v5384_v48 = vld [vmem:[#allocation2 + $0xb0] sm:$0xf]  ;;  %v5830_v26 = vld [vmem:[#allocation2 + $0xb8] sm:$0xf0] }
 0x310   : > { %v7026_v18 = vadd.f32 %v3087_v31, %v2999_v15  ;;  %v7044_v36 = vpop.f32.mrf.mxu1 }
 0x313   : > { %v2511_v38 = vpop.f32.mrf.mxu2  ;;  %v3089_v16 = vpop.f32.mrf.mxu3 }
 0x314   : > { %v2512_v52 = vadd.f32 %v2511_v38, %v7416_v40  ;;  %v5376_v38 = vld [vmem:[#allocation2 + $0xa8] sm:$0xf] }
 0x316   : > { %v3001_v63 = vadd.f32 %v7417_v57, %v2512_v52  ;;  %v5377_v52 = vor.u32 %v5829_v59, %v5376_v38  ;;  %v5385_v57 = vor.u32 %v5830_v26, %v5384_v48  ;;  %v5396_v38 = vld [vmem:[#allocation2 + $0xc8] sm:$0xf]  ;;  %v5833_v48 = vld [vmem:[#allocation2 + $0xd0] sm:$0xf0] }
 0x317   : > { %v7425_v26 = vld [vmem:[#allocation13_spill] sm:$0xff] }
 0x318   : > { %v7035_v0 = vadd.f32 %v3089_v16, %v3001_v63  ;;  %3743 = vmatmul.bf16.gmra.mxu2 %v5365_v19  ;;  %3921 = vmatmul.bf16.gmra.mxu3 %v5373_v41  ;;  %v7421_v16 = vld [vmem:[#allocation10_spill] sm:$0xff]  ;;  %v7423_v41 = vld [vmem:[#allocation11_spill] sm:$0xff] }
 0x31a   : > { %7418 = vst [vmem:[#allocation15_spill] sm:$0xff] %v7035_v0 }
 0x31b   : > { %v2514_v6 = vpop.f32.mrf.mxu2  ;;  %v3092_v60 = vpop.f32.mrf.mxu3 }
 0x31c   : > { %v2515_v34 = vadd.f32 %v2514_v6, %v7419_v1  ;;  %v7051_v1 = vpop.f32.mrf.mxu1 }
 0x31e   : > { %v3004_v31 = vadd.f32 %v6874_v24, %v2515_v34 }
 0x320   : > { %v7041_v27 = vadd.f32 %v3092_v60, %v3004_v31  ;;  %v5832_v31 = vld [vmem:[#allocation2 + $0xc8] sm:$0xf0] }
 0x322   : > { %7420 = vst [vmem:[#allocation6_spill] sm:$0xff] %v7041_v27 }
 0x323   : > { %v2516_v15 = vpop.f32.mrf.mxu2  ;;  %v3094_v8 = vpop.f32.mrf.mxu3 }
 0x324   : > { %v2517_v54 = vadd.f32 %v2516_v15, %v7421_v16 }
 0x326   : > { %v3006_v40 = vadd.f32 %v6882_v51, %v2517_v54  ;;  %v5885_v51 = vld [vmem:[%s7384_s7] sm:$0xff] }
 0x327   : > { %4173 = vmatpush.bf16.msrb.mxu1 %v5885_v51 }
 0x328   : > { %v7047_v63 = vadd.f32 %v3094_v8, %v3006_v40  ;;  %3748 = vmatmul.bf16.gmra.mxu2 %v5377_v52  ;;  %3926 = vmatmul.bf16.gmra.mxu3 %v5385_v57  ;;  %v5388_v8 = vld [vmem:[#allocation2 + $0xc0] sm:$0xf]  ;;  %v5397_v40 = vor.u32 %v5833_v48, %v5396_v38  ;;  %v7062_v57 = vpop.f32.mrf.mxu1  ;;  %v7429_v38 = vld [vmem:[#allocation17_spill] sm:$0xff] }
 0x32a   : > { %7422 = vst [vmem:[#allocation7_spill] sm:$0xff] %v7047_v63 }
 0x32b   : > { %v2519_v24 = vpop.f32.mrf.mxu2  ;;  %v3097_v19 = vpop.f32.mrf.mxu3 }
 0x32c   : > { %v2520_v6 = vadd.f32 %v2519_v24, %v7423_v41  ;;  %v7427_v41 = vld [vmem:[#allocation16_spill] sm:$0xff] }
 0x32e   : > { %v3009_v60 = vadd.f32 %v6895_v5, %v2520_v6  ;;  %v5389_v5 = vor.u32 %v5832_v31, %v5388_v8  ;;  %v5408_v31 = vld [vmem:[#allocation2 + $0xe0] sm:$0xf]  ;;  %v5836_v8 = vld [vmem:[#allocation2 + $0xe8] sm:$0xf0] }
 0x330   : > { %v7053_v34 = vadd.f32 %v3097_v19, %v3009_v60 }
 0x332   : > { %7424 = vst [vmem:[#allocation8_spill] sm:$0xff] %v7053_v34 }
 0x333   : > { %v2521_v59 = vpop.f32.mrf.mxu2  ;;  %v3099_v15 = vpop.f32.mrf.mxu3 }
 0x334   : > { %v2522_v16 = vadd.f32 %v2521_v59, %v7425_v26  ;;  %v5400_v59 = vld [vmem:[#allocation2 + $0xd8] sm:$0xf] }
 0x336   : > { %v3011_v54 = vadd.f32 %v6913_v29, %v2522_v16  ;;  %v5835_v29 = vld [vmem:[#allocation2 + $0xe0] sm:$0xf0] }
 0x338   : > { %v7060_v52 = vadd.f32 %v3099_v15, %v3011_v54  ;;  %3753 = vmatmul.bf16.gmra.mxu2 %v5389_v5  ;;  %3931 = vmatmul.bf16.gmra.mxu3 %v5397_v40  ;;  %v7068_v15 = vpop.f32.mrf.mxu1  ;;  %v5401_v54 = vor.u32 %v5835_v29, %v5400_v59  ;;  %v5409_v5 = vor.u32 %v5836_v8, %v5408_v31  ;;  %v5420_v59 = vld [vmem:[#allocation2 + $0xf8] sm:$0xf]  ;;  %v5839_v29 = vld [vmem:[#allocation2 + $0x100] sm:$0xf0] }
 0x33a   : > { %7426 = vst [vmem:[#allocation23_spill] sm:$0xff] %v7060_v52  ;;  %v5412_v52 = vld [vmem:[#allocation2 + $0xf0] sm:$0xf] }
 0x33b   : > { %v2524_v24 = vpop.f32.mrf.mxu2  ;;  %v3102_v19 = vpop.f32.mrf.mxu3 }
 0x33c   : > { %v2525_v6 = vadd.f32 %v2524_v24, %v7427_v41 }
 0x33e   : > { %v3014_v60 = vadd.f32 %v6918_v39, %v2525_v6 }
 0x340   : > { %v7066_v34 = vadd.f32 %v3102_v19, %v3014_v60  ;;  %v7431_v19 = vld [vmem:[#allocation19_spill] sm:$0xff]  ;;  %v7075_v6 = vpop.f32.mrf.mxu1 }
 0x342   : > { %7428 = vst [vmem:[#allocation9_spill] sm:$0xff] %v7066_v34 }
 0x343   : > { %v2526_v51 = vpop.f32.mrf.mxu2  ;;  %v3104_v26 = vpop.f32.mrf.mxu3 }
 0x344   : > { %v2527_v48 = vadd.f32 %v2526_v51, %v7429_v38 }
 0x346   : > { %v3016_v16 = vadd.f32 %v6928_v7, %v2527_v48  ;;  %v5838_v7 = vld [vmem:[#allocation2 + $0xf8] sm:$0xf0] }
 0x347   : > { %v5413_v48 = vor.u32 %v5838_v7, %v5412_v52 }
 0x348   : > { %v7072_v40 = vadd.f32 %v3104_v26, %v3016_v16  ;;  %3758 = vmatmul.bf16.gmra.mxu2 %v5401_v54  ;;  %3936 = vmatmul.bf16.gmra.mxu3 %v5409_v5  ;;  %v7433_v26 = vld [vmem:[#allocation21_spill] sm:$0xff]  ;;  %v5421_v16 = vor.u32 %v5839_v29, %v5420_v59  ;;  %v7082_v54 = vpop.f32.mrf.mxu1  ;;  %v5841_v59 = vld [vmem:[#allocation2 + $0x110] sm:$0xf0]  ;;  %v5842_v29 = vld [vmem:[#allocation2 + $0x118] sm:$0xf0] }
 0x34a   : > { %7430 = vst [vmem:[#allocation10_spill] sm:$0xff] %v7072_v40 }
 0x34b   : > { %v2529_v39 = vpop.f32.mrf.mxu2  ;;  %v3107_v24 = vpop.f32.mrf.mxu3 }
 0x34c   : > { %v2530_v41 = vadd.f32 %v2529_v39, %v7431_v19 }
 0x34e   : > { %v3019_v60 = vadd.f32 %v6941_v58, %v2530_v41  ;;  %v7086_v58 = vpop.f32.mrf.mxu0 }
 0x350   : > { %v7078_v34 = vadd.f32 %v3107_v24, %v3019_v60  ;;  %v7435_v60 = vld [vmem:[#allocation24_spill] sm:$0xff] }
 0x352   : > { %7432 = vst [vmem:[#allocation11_spill] sm:$0xff] %v7078_v34  ;;  %v7436_v34 = vld [vmem:[#allocation12_spill] sm:$0xff] }
 0x353   : > { %v2531_v51 = vpop.f32.mrf.mxu2  ;;  %v3109_v38 = vpop.f32.mrf.mxu3 }
 0x354   : > { %v2532_v31 = vadd.f32 %v2531_v51, %v7433_v26  ;;  %v3122_v51 = vadd.f32 %v7436_v34, %v7435_v60  ;;  %v7091_v26 = vpop.f32.mrf.mxu1  ;;  %v7437_v34 = vld [vmem:[#allocation14_spill] sm:$0xff] }
 0x356   : > { %v3021_v8 = vadd.f32 %v6949_v22, %v2532_v31  ;;  %v5424_v22 = vld [vmem:[#allocation2 + $0x108] sm:$0xf]  ;;  %v7093_v31 = vpop.f32.mrf.mxu0 }
 0x358   : > { %v7084_v5 = vadd.f32 %v3109_v38, %v3021_v8  ;;  %3763 = vmatmul.bf16.gmra.mxu2 %v5413_v48  ;;  %3941 = vmatmul.bf16.gmra.mxu3 %v5421_v16  ;;  %v5432_v38 = vld [vmem:[#allocation2 + $0x110] sm:$0xf]  ;;  %v7098_v48 = vld [vmem:[%s7383_s6] ss:$0 sm:$0xff]  ;;  %v3124_v16 = vadd.f32 %v7437_v34, %v6879_v10  ;;  %v5845_v34 = vld [vmem:[#allocation2 + $0x130] sm:$0xf0] }
 0x35a   : > { %7434 = vst [vmem:[#allocation13_spill] sm:$0xff] %v7084_v5 }
 0x35b   : > { %v3724_v39 = vpop.f32.mrf.mxu2  ;;  %v3902_v24 = vpop.f32.mrf.mxu3 }
 0x35c   : > { %v3814_v19 = vadd.f32 %v6958_v44, %v3724_v39  ;;  %v7105_v63 = vpop.f32.mrf.mxu1 }
 0x35e   : > { %v3903_v41 = vadd.f32 %v3902_v24, %v3814_v19  ;;  %v5425_v24 = vor.u32 %v5841_v59, %v5424_v22  ;;  %v5433_v19 = vor.u32 %v5842_v29, %v5432_v38  ;;  %v5436_v38 = vld [vmem:[#allocation2 + $0x120] sm:$0xf] }
 0x360   : > { %v3982_v8 = vadd.f32 %v3903_v41, %v3122_v51 }
 0x362   : > { %v4018_v60 = vadd.f32 %v7098_v48, %v3982_v8 }
 0x363   : > { %v3726_v52 = vpop.f32.mrf.mxu2  ;;  %v3904_v7 = vpop.f32.mrf.mxu3 }
 0x364   : > { %v3816_v44 = vadd.f32 %v6965_v4, %v3726_v52  ;;  %v4050_v27 = vmax.f32 %v4018_v60, 0.0  ;;  %v7108_v52 = vpop.f32.mrf.mxu0 }
 0x366   : > { %v3905_v39 = vadd.f32 %v3904_v7, %v3816_v44  ;;  %v7438_v7 = vld [vmem:[#allocation18_spill] sm:$0xff]  ;;  %v5444_v44 = vld [vmem:[#allocation2 + $0x128] sm:$0xf] }
 0x367   : > { %v3127_v59 = vadd.f32 %v7438_v7, %v6887_v13 }
 0x368   : > { %v3983_v5 = vadd.f32 %v3905_v39, %v3124_v16  ;;  %3768 = vmatmul.bf16.gmra.mxu2 %v5425_v24  ;;  %3946 = vmatmul.bf16.gmra.mxu3 %v5433_v19  ;;  %v7439_v24 = vld [vmem:[#allocation20_spill] sm:$0xff]  ;;  %v7115_v19 = vpop.f32.mrf.mxu1 }
 0x36a   : > { %v4019_v41 = vadd.f32 %v7098_v48, %v3983_v5  ;;  %v5844_v5 = vld [vmem:[#allocation2 + $0x128] sm:$0xf0] }
 0x36b   : > { %v3729_v51 = vpop.f32.mrf.mxu2  ;;  %v3907_v40 = vpop.f32.mrf.mxu3 }
 0x36c   : > { %v4051_v0 = vmax.f32 %v4019_v41, 0.0  ;;  %v3819_v4 = vadd.f32 %v6972_v43, %v3729_v51  ;;  %v3129_v43 = vadd.f32 %v7439_v24, %v6897_v42  ;;  %v7117_v60 = vpop.f32.mrf.mxu0  ;;  %v5456_v24 = vld [vmem:[#allocation2 + $0x140] sm:$0xf] }
 0x36e   : > { %v4082_v10 = vpack.c.bf16 %v4051_v0, %v4050_v27  ;;  %v3908_v22 = vadd.f32 %v3907_v40, %v3819_v4  ;;  %v5437_v27 = vor.u32 %v5844_v5, %v5436_v38  ;;  %v5445_v40 = vor.u32 %v5845_v34, %v5444_v44  ;;  %v5448_v44 = vld [vmem:[#allocation2 + $0x138] sm:$0xf] }
 0x370   : > { %4174 = vmatmul.bf16.vlgmr.msrb.gmra.mxu1 %v4082_v10  ;;  %v3984_v16 = vadd.f32 %v3908_v22, %v3127_v59  ;;  %v7122_v59 = vpop.f32.mrf.mxu1 }
 0x372   : > { %v4020_v13 = vadd.f32 %v7098_v48, %v3984_v16 }
 0x373   : > { %v3731_v29 = vpop.f32.mrf.mxu2  ;;  %v3909_v8 = vpop.f32.mrf.mxu3 }
 0x374   : > { %v3821_v39 = vadd.f32 %v6980_v12, %v3731_v29  ;;  %v4052_v12 = vmax.f32 %v4020_v13, 0.0  ;;  %v7440_v29 = vld [vmem:[#allocation22_spill] sm:$0xff]  ;;  %v7126_v5 = vpop.f32.mrf.mxu0 }
 0x376   : > { %v3910_v0 = vadd.f32 %v3909_v8, %v3821_v39  ;;  %v3132_v8 = vadd.f32 %v7440_v29, %v6909_v55  ;;  %v5847_v39 = vld [vmem:[#allocation2 + $0x140] sm:$0xf0] }
 0x378   : > { %v3985_v41 = vadd.f32 %v3910_v0, %v3129_v43  ;;  %3773 = vmatmul.bf16.gmra.mxu2 %v5437_v27  ;;  %3951 = vmatmul.bf16.gmra.mxu3 %v5445_v40  ;;  %v5848_v43 = vld [vmem:[#allocation2 + $0x148] sm:$0xf0] }
 0x379   : > { %v7441_v27 = vld [vmem:[#allocation25_spill] sm:$0xff] }
 0x37a   : > { %v4021_v51 = vadd.f32 %v7098_v48, %v3985_v41  ;;  %v3134_v40 = vadd.f32 %v7441_v27, %v6916_v47  ;;  %v5449_v41 = vor.u32 %v5847_v39, %v5448_v44  ;;  %v3137_v44 = vadd.f32 %v6885_v23, %v6922_v20 }
 0x37b   : > { %v3734_v4 = vpop.f32.mrf.mxu2  ;;  %v3912_v10 = vpop.f32.mrf.mxu3 }
 0x37c   : > { %v3824_v22 = vadd.f32 %v6990_v33, %v3734_v4  ;;  %v4053_v42 = vmax.f32 %v4021_v51, 0.0  ;;  %v5457_v51 = vor.u32 %v5848_v43, %v5456_v24  ;;  %v5850_v24 = vld [vmem:[#allocation2 + $0x158] sm:$0xf0]  ;;  %v5468_v43 = vld [vmem:[#allocation2 + $0x158] sm:$0xf] }
 0x37e   : > { %v4083_v7 = vpack.c.bf16 %v4053_v42, %v4052_v12  ;;  %v3913_v38 = vadd.f32 %v3912_v10, %v3824_v22  ;;  %v7132_v10 = vpop.f32.mrf.mxu1 }
 0x380   : > { %4179 = vmatmul.bf16.gmra.mxu1 %v4083_v7  ;;  %v3986_v0 = vadd.f32 %v3913_v38, %v3132_v8  ;;  %v7135_v7 = vpop.f32.mrf.mxu0 }
 0x382   : > { %v4022_v4 = vadd.f32 %v7098_v48, %v3986_v0  ;;  %v5851_v0 = vld [vmem:[#allocation2 + $0x160] sm:$0xf0] }
 0x383   : > { %v3736_v34 = vpop.f32.mrf.mxu2  ;;  %v3914_v16 = vpop.f32.mrf.mxu3 }
 0x384   : > { %v3826_v33 = vadd.f32 %v6997_v2, %v3736_v34  ;;  %v4054_v2 = vmax.f32 %v4022_v4, 0.0  ;;  %v5460_v34 = vld [vmem:[#allocation2 + $0x150] sm:$0xf]  ;;  %v5469_v4 = vor.u32 %v5851_v0, %v5468_v43  ;;  %v3144_v0 = vadd.f32 %v7020_v9, %v6947_v49  ;;  %v5858_v9 = vld [vmem:[#allocation2 + $0x19c] sm:$0xf] }
 0x386   : > { %v3915_v13 = vadd.f32 %v3914_v16, %v3826_v33  ;;  %v7140_v33 = vpop.f32.mrf.mxu1 }
 0x388   : > { %v3987_v55 = vadd.f32 %v3915_v13, %v3134_v40  ;;  %3778 = vmatmul.bf16.gmra.mxu2 %v5449_v41  ;;  %3956 = vmatmul.bf16.gmra.mxu3 %v5457_v51  ;;  %v7145_v13 = vpop.f32.mrf.mxu0  ;;  %v5461_v51 = vor.u32 %v5850_v24, %v5460_v34  ;;  %v5854_v24 = vld [vmem:[#allocation2 + $0x178] sm:$0xf0] }
 0x38a   : > { %v4023_v12 = vadd.f32 %v7098_v48, %v3987_v55 }
 0x38b   : > { %v3739_v22 = vpop.f32.mrf.mxu2  ;;  %v3917_v42 = vpop.f32.mrf.mxu3 }
 0x38c   : > { %v3829_v38 = vadd.f32 %v7086_v58, %v3739_v22  ;;  %v4055_v47 = vmax.f32 %v4023_v12, 0.0  ;;  %v3139_v58 = vadd.f32 %v6899_v61, %v6931_v32 }
 0x38e   : > { %v4084_v29 = vpack.c.bf16 %v4055_v47, %v4054_v2  ;;  %v3918_v8 = vadd.f32 %v3917_v42, %v3829_v38  ;;  %v7150_v38 = vpop.f32.mrf.mxu1 }
 0x390   : > { %4184 = vmatmul.bf16.gmra.mxu1 %v4084_v29  ;;  %v3988_v27 = vadd.f32 %v3918_v8, %v3137_v44  ;;  %v7152_v32 = vpop.f32.mrf.mxu0  ;;  %v3142_v29 = vadd.f32 %v7013_v53, %v6943_v21  ;;  %v5472_v8 = vld [vmem:[#allocation2 + $0x168] sm:$0xf] }
 0x392   : > { %v4024_v23 = vadd.f32 %v7098_v48, %v3988_v27 }
 0x393   : > { %v3741_v16 = vpop.f32.mrf.mxu2  ;;  %v3919_v39 = vpop.f32.mrf.mxu3 }
 0x394   : > { %v3831_v40 = vadd.f32 %v7093_v31, %v3741_v16  ;;  %v4056_v42 = vmax.f32 %v4024_v23, 0.0  ;;  %v5853_v16 = vld [vmem:[#allocation2 + $0x170] sm:$0xf0] }
 0x396   : > { %v3920_v41 = vadd.f32 %v3919_v39, %v3831_v40  ;;  %v5480_v39 = vld [vmem:[#allocation2 + $0x170] sm:$0xf]  ;;  %v5473_v40 = vor.u32 %v5853_v16, %v5472_v8  ;;  %v5857_v16 = vld [vmem:[#allocation2 + $0x190] sm:$0xf0] }
 0x398   : > { %v3989_v20 = vadd.f32 %v3920_v41, %v3139_v58  ;;  %3783 = vmatmul.bf16.gmra.mxu2 %v5461_v51  ;;  %3961 = vmatmul.bf16.gmra.mxu3 %v5469_v4  ;;  %v5481_v58 = vor.u32 %v5854_v24, %v5480_v39  ;;  %v7159_v41 = vpop.f32.mrf.mxu1  ;;  %v7162_v53 = vpop.f32.mrf.mxu0 }
 0x39a   : > { %v4025_v55 = vadd.f32 %v7098_v48, %v3989_v20 }
 0x39b   : > { %v3744_v12 = vpop.f32.mrf.mxu2  ;;  %v3922_v22 = vpop.f32.mrf.mxu3 }
 0x39c   : > { %v3834_v31 = vadd.f32 %v7108_v52, %v3744_v12  ;;  %v4057_v2 = vmax.f32 %v4025_v55, 0.0  ;;  %v5498_v12 = vld [vmem:[#allocation2 + $0x1a4] sm:$0xf0] }
 0x39e   : > { %v4085_v61 = vpack.c.bf16 %v4057_v2, %v4056_v42  ;;  %v3923_v47 = vadd.f32 %v3922_v22, %v3834_v31  ;;  %v5501_v22 = vor.u32 %v5858_v9, %v5498_v12  ;;  %v3147_v2 = vadd.f32 %v7028_v56, %v6953_v25  ;;  %v5860_v9 = vld [vmem:[#allocation2 + $0x1a8] sm:$0xf0] }
 0x39f   : > { %v3152_v12 = vadd.f32 %v7044_v36, %v6968_v14 }
 0x3a0   : > { %4189 = vmatmul.bf16.gmra.mxu1 %v4085_v61  ;;  %v3990_v43 = vadd.f32 %v3923_v47, %v3142_v29  ;;  %3887 = vmatmul.bf16.gmra.mxu0 %v5501_v22  ;;  %v7168_v61 = vpop.f32.mrf.mxu1  ;;  %v5484_v47 = vld [vmem:[#allocation2 + $0x180] sm:$0xf]  ;;  %v3850_v39 = vpop.f32.mrf.mxu0 }
 0x3a2   : > { %v4026_v51 = vadd.f32 %v7098_v48, %v3990_v43  ;;  %v3149_v43 = vadd.f32 %v7037_v45, %v6962_v30 }
 0x3a3   : > { %v3746_v44 = vpop.f32.mrf.mxu2  ;;  %v3924_v34 = vpop.f32.mrf.mxu3 }
 0x3a4   : > { %v3836_v52 = vadd.f32 %v7117_v60, %v3746_v44  ;;  %v4058_v60 = vmax.f32 %v4026_v51, 0.0  ;;  %v5856_v44 = vld [vmem:[#allocation2 + $0x188] sm:$0xf0] }
 0x3a6   : > { %v3925_v27 = vadd.f32 %v3924_v34, %v3836_v52  ;;  %v5492_v34 = vld [vmem:[#allocation2 + $0x188] sm:$0xf] }
 0x3a8   : > { %v3991_v21 = vadd.f32 %v3925_v27, %v3144_v0  ;;  %3788 = vmatmul.bf16.gmra.mxu2 %v5473_v40  ;;  %3966 = vmatmul.bf16.gmra.mxu3 %v5481_v58  ;;  %v5485_v0 = vor.u32 %v5856_v44, %v5484_v47  ;;  %v5493_v27 = vor.u32 %v5857_v16, %v5492_v34 }
 0x3aa   : > { %v4027_v4 = vadd.f32 %v7098_v48, %v3991_v21  ;;  %v7175_v21 = vpop.f32.mrf.mxu1 }
 0x3ab   : > { %v3749_v23 = vpop.f32.mrf.mxu2  ;;  %v3927_v20 = vpop.f32.mrf.mxu3 }
 0x3ac   : > { %v4059_v55 = vmax.f32 %v4027_v4, 0.0  ;;  %v3839_v49 = vadd.f32 %v7126_v5, %v3749_v23 }
 0x3ae   : > { %v4086_v42 = vpack.c.bf16 %v4059_v55, %v4058_v60  ;;  %v3928_v31 = vadd.f32 %v3927_v20, %v3839_v49  ;;  %v3853_v20 = vpop.f32.mrf.mxu0  ;;  %v5496_v60 = vld [vmem:[#allocation2 + $0x198] sm:$0xf]  ;;  %v5859_v55 = vld [vmem:[#allocation2 + $0x1a0] sm:$0xf0]  ;;  %v5504_v49 = vld [vmem:[#allocation2 + $0x1a0] sm:$0xf] }
 0x3af   : > { %v5497_v47 = vor.u32 %v5859_v55, %v5496_v60 }
 0x3b0   : > { %4194 = vmatmul.bf16.gmra.mxu1 %v4086_v42  ;;  %v3992_v5 = vadd.f32 %v3928_v31, %v3147_v2 }
 0x3b2   : > { %v4028_v25 = vadd.f32 %v7098_v48, %v3992_v5 }
 0x3b3   : > { %v3751_v29 = vpop.f32.mrf.mxu2  ;;  %v3929_v8 = vpop.f32.mrf.mxu3 }
 0x3b4   : > { %v3841_v24 = vadd.f32 %v7135_v7, %v3751_v29  ;;  %v4060_v4 = vmax.f32 %v4028_v25, 0.0  ;;  %v5505_v29 = vor.u32 %v5860_v9, %v5504_v49 }
 0x3b6   : > { %v3930_v52 = vadd.f32 %v3929_v8, %v3841_v24  ;;  %v7183_v8 = vpop.f32.mrf.mxu1  ;;  %v3855_v34 = vpop.f32.mrf.mxu0 }
 0x3b8   : > { %v3993_v56 = vadd.f32 %v3930_v52, %v3149_v43  ;;  %3793 = vmatmul.bf16.gmra.mxu2 %v5485_v0  ;;  %3971 = vmatmul.bf16.gmra.mxu3 %v5493_v27 }
 0x3ba   : > { %v4029_v40 = vadd.f32 %v7098_v48, %v3993_v56 }
 0x3bb   : > { %v3754_v58 = vpop.f32.mrf.mxu2  ;;  %v3932_v51 = vpop.f32.mrf.mxu3 }
 0x3bc   : > { %v4061_v23 = vmax.f32 %v4029_v40, 0.0  ;;  %v3844_v7 = vadd.f32 %v7145_v13, %v3754_v58  ;;  %v3154_v13 = vadd.f32 %v7051_v1, %v6974_v17  ;;  %v3157_v1 = vadd.f32 %v7062_v57, %v6978_v37 }
 0x3be   : > { %v4087_v30 = vpack.c.bf16 %v4061_v23, %v4060_v4  ;;  %v3933_v45 = vadd.f32 %v3932_v51, %v3844_v7  ;;  %v7188_v27 = vpop.f32.mrf.mxu1  ;;  %v3858_v25 = vpop.f32.mrf.mxu0  ;;  %v3159_v4 = vadd.f32 %v7068_v15, %v6987_v50  ;;  %v3162_v50 = vadd.f32 %v7075_v6, %v6993_v11  ;;  %v7210_v11 = vld [vmem:[%s7385_s8] ss:$0 sm:$0xff] }
 0x3c0   : > { %4199 = vmatmul.bf16.gmra.mxu1 %v4087_v30  ;;  %v3994_v31 = vadd.f32 %v3933_v45, %v3152_v12 }
 0x3c2   : > { %v4030_v16 = vadd.f32 %v7098_v48, %v3994_v31 }
 0x3c3   : > { %v3756_v22 = vpop.f32.mrf.mxu2  ;;  %v3934_v42 = vpop.f32.mrf.mxu3 }
 0x3c4   : > { %v3846_v2 = vadd.f32 %v7152_v32, %v3756_v22  ;;  %v4062_v43 = vmax.f32 %v4030_v16, 0.0  ;;  %v510_v16 = vld [vmem:[%s6202_s18] sm:$0xff]  }
 0x3c6   : > { %v3935_v44 = vadd.f32 %v3934_v42, %v3846_v2  ;;  %v7195_v30 = vpop.f32.mrf.mxu1  ;;  %v3860_v49 = vpop.f32.mrf.mxu0 }
 0x3c8   : > { %v3995_v5 = vadd.f32 %v3935_v44, %v3154_v13  ;;  %3798 = vmatmul.bf16.gmra.mxu2 %v5497_v47  ;;  %3976 = vmatmul.bf16.gmra.mxu3 %v5505_v29  ;;  %v3164_v47 = vadd.f32 %v7082_v54, %v6999_v3  ;;  %v4255_v54 = vunpack.c.l.bf16 %v510_v16 }
 0x3ca   : > { %v4031_v14 = vadd.f32 %v7098_v48, %v3995_v5 }
 0x3cb   : > { %v3759_v36 = vpop.f32.mrf.mxu2  ;;  %v3937_v24 = vpop.f32.mrf.mxu3 }
 0x3cc   : > { %v4063_v32 = vmax.f32 %v4031_v14, 0.0  ;;  %v3849_v52 = vadd.f32 %v7162_v53, %v3759_v36 }
 0x3ce   : > { %v4088_v0 = vpack.c.bf16 %v4063_v32, %v4062_v43  ;;  %v3938_v17 = vadd.f32 %v3937_v24, %v3849_v52  ;;  %v7200_v2 = vpop.f32.mrf.mxu1  ;;  %v3863_v29 = vpop.f32.mrf.mxu0 }
 0x3d0   : > { %4204 = vmatmul.bf16.gmra.mxu1 %v4088_v0  ;;  %v3996_v58 = vadd.f32 %v3938_v17, %v3157_v1  ;;  %v3167_v1 = vadd.f32 %v7091_v26, %v7003_v35 }
 0x3d2   : > { %v4032_v7 = vadd.f32 %v7098_v48, %v3996_v58 }
 0x3d3   : > { %v3761_v56 = vpop.f32.mrf.mxu2  ;;  %v3939_v40 = vpop.f32.mrf.mxu3 }
 0x3d4   : > { %v3851_v51 = vadd.f32 %v3850_v39, %v3761_v56  ;;  %v4064_v37 = vmax.f32 %v4032_v7, 0.0  ;;  %v3169_v7 = vadd.f32 %v7105_v63, %v7010_v28 }
 0x3d6   : > { %v3940_v23 = vadd.f32 %v3939_v40, %v3851_v51  ;;  %v3865_v52 = vpop.f32.mrf.mxu0 }
 0x3d8   : > { %v3997_v53 = vadd.f32 %v3940_v23, %v3159_v4  ;;  %v4256_v4 = vunpack.c.h.bf16 %v510_v16 }
 0x3da   : > { %v4033_v45 = vadd.f32 %v7098_v48, %v3997_v53 }
 0x3db   : > { %v3764_v60 = vpop.f32.mrf.mxu2  ;;  %v3942_v55 = vpop.f32.mrf.mxu3 }
 0x3dc   : > { %v4065_v57 = vmax.f32 %v4033_v45, 0.0  ;;  %v3854_v9 = vadd.f32 %v3853_v20, %v3764_v60 }
 0x3de   : > { %v4089_v12 = vpack.c.bf16 %v4065_v57, %v4064_v37  ;;  %v3943_v39 = vadd.f32 %v3942_v55, %v3854_v9  ;;  %v512_v55 = vld [vmem:[%s6202_s18 + $0x8] sm:$0xff]   ;;  %v3868_v37 = vpop.f32.mrf.mxu0 }
 0x3df   : > { %v4257_v28 = vunpack.c.l.bf16 %v512_v55 }
 0x3e0   : > { %4209 = vmatmul.bf16.gmra.mxu1 %v4089_v12  ;;  %v3998_v42 = vadd.f32 %v3943_v39, %v3162_v50 }
 0x3e2   : > { %v4034_v20 = vadd.f32 %v7098_v48, %v3998_v42 }
 0x3e3   : > { %v3766_v15 = vpop.f32.mrf.mxu2  ;;  %v3944_v22 = vpop.f32.mrf.mxu3 }
 0x3e4   : > { %v3856_v31 = vadd.f32 %v3855_v34, %v3766_v15  ;;  %v4066_v14 = vmax.f32 %v4034_v20, 0.0 }
 0x3e6   : > { %v3945_v13 = vadd.f32 %v3944_v22, %v3856_v31 }
 0x3e8   : > { %v3999_v44 = vadd.f32 %v3945_v13, %v3164_v47  ;;  %v3172_v13 = vadd.f32 %v7115_v19, %v7016_v46 }
 0x3ea   : > { %v4035_v5 = vadd.f32 %v7098_v48, %v3999_v44 }
 0x3eb   : > { %v3769_v6 = vpop.f32.mrf.mxu2  ;;  %v3947_v34 = vpop.f32.mrf.mxu3 }
 0x3ec   : > { %v4067_v36 = vmax.f32 %v4035_v5, 0.0  ;;  %v3859_v3 = vadd.f32 %v3858_v25, %v3769_v6  ;;  %v3870_v5 = vpop.f32.mrf.mxu0 }
 0x3ed   : > { %v4175_v24 = vpop.f32.mrf.mxu1 }
 0x3ee   : > { %v4176_v43 = vadd.f32 %v7210_v11, %v4175_v24  ;;  %v4090_v32 = vpack.c.bf16 %v4067_v36, %v4066_v14  ;;  %v3948_v0 = vadd.f32 %v3947_v34, %v3859_v3  ;;  %v3174_v36 = vadd.f32 %v7122_v59, %v7022_v62 }
 0x3f0   : > { %v4287_v17 = vadd.f32 %v4255_v54, %v4176_v43  ;;  %4214 = vmatmul.bf16.gmra.mxu1 %v4090_v32  ;;  %v4000_v51 = vadd.f32 %v3948_v0, %v3167_v1  ;;  %v514_v43 = vld [vmem:[%s6202_s18 + $0x10] sm:$0xff]  }
 0x3f2   : > { %v4319_v56 = vmax.f32 %v4287_v17, 0.0  ;;  %v4036_v35 = vadd.f32 %v7098_v48, %v4000_v51 }
 0x3f3   : > { %v3771_v40 = vpop.f32.mrf.mxu2  ;;  %v3949_v58 = vpop.f32.mrf.mxu3 }
 0x3f4   : > { %4351 = vst [vmem:[%s7218_s23] sm:$0xff] %v4319_v56  ;;  %v3861_v25 = vadd.f32 %v3860_v49, %v3771_v40  ;;  %v4068_v39 = vmax.f32 %v4036_v35, 0.0  ;;  %v3873_v59 = vpop.f32.mrf.mxu0 }
 0x3f5   : > { %v4177_v23 = vpop.f32.mrf.mxu1 }
 0x3f6   : > { %v3950_v53 = vadd.f32 %v3949_v58, %v3861_v25  ;;  %v4178_v45 = vadd.f32 %v7210_v11, %v4177_v23  ;;  %v4259_v58 = vunpack.c.l.bf16 %v514_v43 }
 0x3f8   : > { %v4001_v26 = vadd.f32 %v3950_v53, %v3169_v7  ;;  %v4288_v60 = vadd.f32 %v4256_v4, %v4178_v45  ;;  %v3177_v7 = vadd.f32 %v7132_v10, %v7026_v18 }
 0x3fa   : > { %v4037_v57 = vadd.f32 %v7098_v48, %v4001_v26  ;;  %v4320_v9 = vmax.f32 %v4288_v60, 0.0 }
 0x3fb   : > { %v3774_v12 = vpop.f32.mrf.mxu2  ;;  %v3952_v49 = vpop.f32.mrf.mxu3 }
 0x3fc   : > { %v4069_v50 = vmax.f32 %v4037_v57, 0.0  ;;  %4352 = vst [vmem:[%s7218_s23 + $0x8] sm:$0xff] %v4320_v9  ;;  %v3864_v15 = vadd.f32 %v3863_v29, %v3774_v12  ;;  %v4258_v29 = vunpack.c.h.bf16 %v512_v55  ;;  %v4260_v55 = vunpack.c.h.bf16 %v514_v43  ;;  %v7442_v57 = vld [vmem:[#allocation15_spill] sm:$0xff] }
 0x3fd   : > { %v4180_v63 = vpop.f32.mrf.mxu1  ;;  %v3179_v9 = vadd.f32 %v7140_v33, %v7442_v57 }
 0x3fe   : > { %v4181_v22 = vadd.f32 %v7210_v11, %v4180_v63  ;;  %v4091_v42 = vpack.c.bf16 %v4069_v50, %v4068_v39  ;;  %v3953_v31 = vadd.f32 %v3952_v49, %v3864_v15  ;;  %v3875_v39 = vpop.f32.mrf.mxu0  ;;  %v516_v15 = vld [vmem:[%s6202_s18 + $0x18] sm:$0xff]  }
 0x3ff   : > { %v4261_v33 = vunpack.c.l.bf16 %v516_v15 }
 0x400   : > { %v4289_v47 = vadd.f32 %v4257_v28, %v4181_v22  ;;  %4219 = vmatmul.bf16.gmra.mxu1 %v4091_v42  ;;  %v4002_v6 = vadd.f32 %v3953_v31, %v3172_v13 }
 0x402   : > { %v4321_v20 = vmax.f32 %v4289_v47, 0.0  ;;  %v4038_v24 = vadd.f32 %v7098_v48, %v4002_v6 }
 0x403   : > { %v3776_v44 = vpop.f32.mrf.mxu2  ;;  %v3954_v16 = vpop.f32.mrf.mxu3 }
 0x404   : > { %4353 = vst [vmem:[%s7218_s23 + $0x10] sm:$0xff] %v4321_v20  ;;  %v3866_v34 = vadd.f32 %v3865_v52, %v3776_v44  ;;  %v4070_v52 = vmax.f32 %v4038_v24, 0.0 }
 0x405   : > { %v4182_v14 = vpop.f32.mrf.mxu1 }
 0x406   : > { %v3955_v3 = vadd.f32 %v3954_v16, %v3866_v34  ;;  %v4183_v54 = vadd.f32 %v7210_v11, %v4182_v14  ;;  %v7443_v34 = vld [vmem:[#allocation6_spill] sm:$0xff]  ;;  %v3878_v14 = vpop.f32.mrf.mxu0 }
 0x408   : > { %v4003_v46 = vadd.f32 %v3955_v3, %v3174_v36  ;;  %v4290_v19 = vadd.f32 %v4258_v29, %v4183_v54  ;;  %v3182_v29 = vadd.f32 %v7150_v38, %v7443_v34 }
 0x40a   : > { %v4039_v32 = vadd.f32 %v7098_v48, %v4003_v46  ;;  %v4322_v0 = vmax.f32 %v4290_v19, 0.0  ;;  %v4262_v19 = vunpack.c.h.bf16 %v516_v15 }
 0x40b   : > { %v3779_v17 = vpop.f32.mrf.mxu2  ;;  %v3957_v1 = vpop.f32.mrf.mxu3 }
 0x40c   : > { %v4071_v56 = vmax.f32 %v4039_v32, 0.0  ;;  %4354 = vst [vmem:[%s7218_s23 + $0x18] sm:$0xff] %v4322_v0  ;;  %v3869_v40 = vadd.f32 %v3868_v37, %v3779_v17  ;;  %v7444_v32 = vld [vmem:[#allocation7_spill] sm:$0xff] }
 0x40d   : > { %v4185_v62 = vpop.f32.mrf.mxu1  ;;  %v3184_v0 = vadd.f32 %v7159_v41, %v7444_v32 }
 0x40e   : > { %v4186_v51 = vadd.f32 %v7210_v11, %v4185_v62  ;;  %v4092_v25 = vpack.c.bf16 %v4071_v56, %v4070_v52  ;;  %v3958_v4 = vadd.f32 %v3957_v1, %v3869_v40  ;;  %v518_v40 = vld [vmem:[%s6202_s18 + $0x20] sm:$0xff]   ;;  %v3880_v41 = vpop.f32.mrf.mxu0 }
 0x410   : > { %v4291_v23 = vadd.f32 %v4259_v58, %v4186_v51  ;;  %4224 = vmatmul.bf16.gmra.mxu1 %v4092_v25  ;;  %v4004_v26 = vadd.f32 %v3958_v4, %v3177_v7  ;;  %v4263_v7 = vunpack.c.l.bf16 %v518_v40 }
 0x412   : > { %v4323_v53 = vmax.f32 %v4291_v23, 0.0  ;;  %v4040_v50 = vadd.f32 %v7098_v48, %v4004_v26 }
 0x413   : > { %v3781_v45 = vpop.f32.mrf.mxu2  ;;  %v3959_v35 = vpop.f32.mrf.mxu3 }
 0x414   : > { %4355 = vst [vmem:[%s7218_s23 + $0x20] sm:$0xff] %v4323_v53  ;;  %v3871_v60 = vadd.f32 %v3870_v5, %v3781_v45  ;;  %v4072_v31 = vmax.f32 %v4040_v50, 0.0  ;;  %v4264_v50 = vunpack.c.h.bf16 %v518_v40 }
 0x415   : > { %v4187_v37 = vpop.f32.mrf.mxu1 }
 0x416   : > { %v3960_v12 = vadd.f32 %v3959_v35, %v3871_v60  ;;  %v4188_v49 = vadd.f32 %v7210_v11, %v4187_v37 }
 0x418   : > { %v4005_v18 = vadd.f32 %v3960_v12, %v3179_v9  ;;  %v4292_v10 = vadd.f32 %v4260_v55, %v4188_v49  ;;  %v7445_v55 = vld [vmem:[#allocation8_spill] sm:$0xff] }
 0x419   : > { %v3187_v37 = vadd.f32 %v7168_v61, %v7445_v55 }
 0x41a   : > { %v4041_v28 = vadd.f32 %v7098_v48, %v4005_v18  ;;  %v4324_v63 = vmax.f32 %v4292_v10, 0.0  ;;  %v7446_v10 = vld [vmem:[#allocation23_spill] sm:$0xff] }
 0x41b   : > { %v3784_v22 = vpop.f32.mrf.mxu2  ;;  %v3962_v42 = vpop.f32.mrf.mxu3  ;;  %v3189_v15 = vadd.f32 %v7175_v21, %v7446_v10 }
 0x41c   : > { %v4073_v47 = vmax.f32 %v4041_v28, 0.0  ;;  %4356 = vst [vmem:[%s7218_s23 + $0x28] sm:$0xff] %v4324_v63  ;;  %v3874_v13 = vadd.f32 %v3873_v59, %v3784_v22  ;;  %v3883_v22 = vpop.f32.mrf.mxu0 }
 0x41d   : > { %v4190_v20 = vpop.f32.mrf.mxu1 }
 0x41e   : > { %v4191_v44 = vadd.f32 %v7210_v11, %v4190_v20  ;;  %v4093_v16 = vpack.c.bf16 %v4073_v47, %v4072_v31  ;;  %v3963_v5 = vadd.f32 %v3962_v42, %v3874_v13  ;;  %v520_v47 = vld [vmem:[%s6202_s18 + $0x28] sm:$0xff]  }
 0x41f   : > { %v4265_v21 = vunpack.c.l.bf16 %v520_v47 }
 0x420   : > { %v4293_v6 = vadd.f32 %v4261_v33, %v4191_v44  ;;  %4229 = vmatmul.bf16.gmra.mxu1 %v4093_v16  ;;  %v4006_v24 = vadd.f32 %v3963_v5, %v3182_v29 }
 0x422   : > { %v4325_v36 = vmax.f32 %v4293_v6, 0.0  ;;  %v4042_v52 = vadd.f32 %v7098_v48, %v4006_v24  ;;  %v7447_v24 = vld [vmem:[#allocation9_spill] sm:$0xff] }
 0x423   : > { %v3786_v3 = vpop.f32.mrf.mxu2  ;;  %v3964_v54 = vpop.f32.mrf.mxu3 }
 0x424   : > { %4357 = vst [vmem:[%s7218_s23 + $0x30] sm:$0xff] %v4325_v36  ;;  %v3876_v46 = vadd.f32 %v3875_v39, %v3786_v3  ;;  %v4074_v25 = vmax.f32 %v4042_v52, 0.0 }
 0x425   : > { %v4192_v43 = vpop.f32.mrf.mxu1 }
 0x426   : > { %v3965_v17 = vadd.f32 %v3964_v54, %v3876_v46  ;;  %v4193_v1 = vadd.f32 %v7210_v11, %v4192_v43  ;;  %v3885_v54 = vpop.f32.mrf.mxu0  ;;  %v3192_v46 = vadd.f32 %v7183_v8, %v7447_v24  ;;  %v526_v24 = vld [vmem:[%s6202_s18 + $0x40] sm:$0xff]  }
 0x428   : > { %v4007_v38 = vadd.f32 %v3965_v17, %v3184_v0  ;;  %v4294_v56 = vadd.f32 %v4262_v19, %v4193_v1  ;;  %v4266_v1 = vunpack.c.h.bf16 %v520_v47 }
 0x42a   : > { %v4043_v58 = vadd.f32 %v7098_v48, %v4007_v38  ;;  %v4326_v62 = vmax.f32 %v4294_v56, 0.0  ;;  %v7448_v38 = vld [vmem:[#allocation10_spill] sm:$0xff] }
 0x42b   : > { %v3789_v59 = vpop.f32.mrf.mxu2  ;;  %v3967_v51 = vpop.f32.mrf.mxu3  ;;  %v3194_v56 = vadd.f32 %v7188_v27, %v7448_v38 }
 0x42c   : > { %v4075_v4 = vmax.f32 %v4043_v58, 0.0  ;;  %4358 = vst [vmem:[%s7218_s23 + $0x38] sm:$0xff] %v4326_v62  ;;  %v3879_v23 = vadd.f32 %v3878_v14, %v3789_v59 }
 0x42d   : > { %v4195_v53 = vpop.f32.mrf.mxu1 }
 0x42e   : > { %v4196_v45 = vadd.f32 %v7210_v11, %v4195_v53  ;;  %v4094_v35 = vpack.c.bf16 %v4075_v4, %v4074_v25  ;;  %v3968_v26 = vadd.f32 %v3967_v51, %v3879_v23  ;;  %v3888_v51 = vpop.f32.mrf.mxu0  ;;  %v522_v25 = vld [vmem:[%s6202_s18 + $0x30] sm:$0xff]  }
 0x42f   : > { %v4267_v27 = vunpack.c.l.bf16 %v522_v25 }
 0x430   : > { %v4295_v60 = vadd.f32 %v4263_v7, %v4196_v45  ;;  %4234 = vmatmul.bf16.gmra.mxu1 %v4094_v35  ;;  %v4008_v49 = vadd.f32 %v3968_v26, %v3187_v37 }
 0x432   : > { %v4327_v57 = vmax.f32 %v4295_v60, 0.0  ;;  %v4044_v42 = vadd.f32 %v7098_v48, %v4008_v49 }
 0x433   : > { %v3791_v9 = vpop.f32.mrf.mxu2  ;;  %v3969_v12 = vpop.f32.mrf.mxu3 }
 0x434   : > { %4359 = vst [vmem:[%s7218_s23 + $0x40] sm:$0xff] %v4327_v57  ;;  %v3881_v39 = vadd.f32 %v3880_v41, %v3791_v9  ;;  %v4076_v16 = vmax.f32 %v4044_v42, 0.0  ;;  %v7449_v9 = vld [vmem:[#allocation11_spill] sm:$0xff] }
 0x435   : > { %v4197_v18 = vpop.f32.mrf.mxu1 }
 0x436   : > { %v3970_v28 = vadd.f32 %v3969_v12, %v3881_v39  ;;  %v4198_v63 = vadd.f32 %v7210_v11, %v4197_v18  ;;  %v3197_v12 = vadd.f32 %v7195_v30, %v7449_v9  ;;  %v3890_v39 = vpop.f32.mrf.mxu0 }
 0x438   : > { %v4009_v61 = vadd.f32 %v3970_v28, %v3189_v15  ;;  %v4296_v31 = vadd.f32 %v4264_v50, %v4198_v63  ;;  %v4268_v15 = vunpack.c.h.bf16 %v522_v25 }
 0x43a   : > { %v4045_v13 = vadd.f32 %v7098_v48, %v4009_v61  ;;  %v4328_v33 = vmax.f32 %v4296_v31, 0.0 }
 0x43b   : > { %v3794_v20 = vpop.f32.mrf.mxu2  ;;  %v3972_v44 = vpop.f32.mrf.mxu3 }
 0x43c   : > { %v4077_v5 = vmax.f32 %v4045_v13, 0.0  ;;  %4360 = vst [vmem:[%s7218_s23 + $0x48] sm:$0xff] %v4328_v33  ;;  %v3884_v6 = vadd.f32 %v3883_v22, %v3794_v20  ;;  %v7450_v22 = vld [vmem:[#allocation13_spill] sm:$0xff]  ;;  %v524_v33 = vld [vmem:[%s6202_s18 + $0x38] sm:$0xff]  }
 0x43d   : > { %v4200_v34 = vpop.f32.mrf.mxu1  ;;  %v3199_v42 = vadd.f32 %v7200_v2, %v7450_v22 }
 0x43e   : > { %v4201_v29 = vadd.f32 %v7210_v11, %v4200_v34  ;;  %v4095_v14 = vpack.c.bf16 %v4077_v5, %v4076_v16  ;;  %v3973_v36 = vadd.f32 %v3972_v44, %v3884_v6  ;;  %v4269_v6 = vunpack.c.l.bf16 %v524_v33 }
 0x440   : > { %v4297_v3 = vadd.f32 %v4265_v21, %v4201_v29  ;;  %4239 = vmatmul.bf16.gmra.mxu1 %v4095_v14  ;;  %v4010_v0 = vadd.f32 %v3973_v36, %v3192_v46  ;;  %v4270_v36 = vunpack.c.h.bf16 %v524_v33 }
 0x442   : > { %v4329_v19 = vmax.f32 %v4297_v3, 0.0  ;;  %v4046_v62 = vadd.f32 %v7098_v48, %v4010_v0 }
 0x443   : > { %v3796_v43 = vpop.f32.mrf.mxu2  ;;  %v3974_v32 = vpop.f32.mrf.mxu3 }
 0x444   : > { %4361 = vst [vmem:[%s7218_s23 + $0x50] sm:$0xff] %v4329_v19  ;;  %v3886_v17 = vadd.f32 %v3885_v54, %v3796_v43  ;;  %v4078_v53 = vmax.f32 %v4046_v62, 0.0  ;;  %v4271_v19 = vunpack.c.l.bf16 %v526_v24 }
 0x445   : > { %v4202_v52 = vpop.f32.mrf.mxu1 }
 0x446   : > { %v3975_v40 = vadd.f32 %v3974_v32, %v3886_v17  ;;  %v4203_v58 = vadd.f32 %v7210_v11, %v4202_v52 }
 0x448   : > { %v4011_v59 = vadd.f32 %v3975_v40, %v3194_v56  ;;  %v4298_v8 = vadd.f32 %v4266_v1, %v4203_v58  ;;  %v4272_v1 = vunpack.c.h.bf16 %v526_v24  ;;  %v528_v40 = vld [vmem:[%s6202_s18 + $0x48] sm:$0xff]  }
 0x449   : > { %v4273_v62 = vunpack.c.l.bf16 %v528_v40 }
 0x44a   : > { %v4047_v4 = vadd.f32 %v7098_v48, %v4011_v59  ;;  %v4330_v23 = vmax.f32 %v4298_v8, 0.0 }
 0x44b   : > { %v3799_v7 = vpop.f32.mrf.mxu2  ;;  %v3977_v41 = vpop.f32.mrf.mxu3 }
 0x44c   : > { %v4079_v45 = vmax.f32 %v4047_v4, 0.0  ;;  %4362 = vst [vmem:[%s7218_s23 + $0x58] sm:$0xff] %v4330_v23  ;;  %v3889_v35 = vadd.f32 %v3888_v51, %v3799_v7  ;;  %v4274_v4 = vunpack.c.h.bf16 %v528_v40 }
 0x44d   : > { %v4205_v26 = vpop.f32.mrf.mxu1 }
 0x44e   : > { %v4206_v60 = vadd.f32 %v7210_v11, %v4205_v26  ;;  %v4096_v55 = vpack.c.bf16 %v4079_v45, %v4078_v53  ;;  %v3978_v37 = vadd.f32 %v3977_v41, %v3889_v35  ;;  %v530_v53 = vld [vmem:[%s6202_s18 + $0x50] sm:$0xff]  }
 0x44f   : > { %v4275_v35 = vunpack.c.l.bf16 %v530_v53 }
 0x450   : > { %v4299_v57 = vadd.f32 %v4267_v27, %v4206_v60  ;;  %4244 = vmatmul.bf16.gmra.mxu1 %v4096_v55  ;;  %v4012_v18 = vadd.f32 %v3978_v37, %v3197_v12  ;;  %v4276_v37 = vunpack.c.h.bf16 %v530_v53 }
 0x452   : > { %v4331_v49 = vmax.f32 %v4299_v57, 0.0  ;;  %v4048_v47 = vadd.f32 %v7098_v48, %v4012_v18 }
 0x453   : > { %v3801_v50 = vpop.f32.mrf.mxu2  ;;  %v3979_v28 = vpop.f32.mrf.mxu3 }
 0x454   : > { %4363 = vst [vmem:[%s7218_s23 + $0x60] sm:$0xff] %v4331_v49  ;;  %v3891_v10 = vadd.f32 %v3890_v39, %v3801_v50  ;;  %v4080_v16 = vmax.f32 %v4048_v47, 0.0  ;;  %v532_v49 = vld [vmem:[%s6202_s18 + $0x58] sm:$0xff]  }
 0x455   : > { %v4207_v63 = vpop.f32.mrf.mxu1  ;;  %v4277_v50 = vunpack.c.l.bf16 %v532_v49 }
 0x456   : > { %v3980_v61 = vadd.f32 %v3979_v28, %v3891_v10  ;;  %v4208_v31 = vadd.f32 %v7210_v11, %v4207_v63  ;;  %v4278_v63 = vunpack.c.h.bf16 %v532_v49 }
 0x458   : > { %v4013_v30 = vadd.f32 %v3980_v61, %v3199_v42  ;;  %v4300_v13 = vadd.f32 %v4268_v15, %v4208_v31  ;;  %v534_v31 = vld [vmem:[%s6202_s18 + $0x60] sm:$0xff]  }
 0x45a   : > { %v4049_v20 = vadd.f32 %v7098_v48, %v4013_v30  ;;  %v4332_v44 = vmax.f32 %v4300_v13, 0.0  ;;  %v4279_v30 = vunpack.c.l.bf16 %v534_v31 }
 0x45c   : > { %v4081_v5 = vmax.f32 %v4049_v20, 0.0  ;;  %4364 = vst [vmem:[%s7218_s23 + $0x68] sm:$0xff] %v4332_v44 }
 0x45d   : > { %v4210_v21 = vpop.f32.mrf.mxu1 }
 0x45e   : > { %v4211_v2 = vadd.f32 %v7210_v11, %v4210_v21  ;;  %v4097_v34 = vpack.c.bf16 %v4081_v5, %v4080_v16  ;;  %v4280_v16 = vunpack.c.h.bf16 %v534_v31 }
 0x460   : > { %v4301_v29 = vadd.f32 %v4269_v6, %v4211_v2  ;;  %4249 = vmatmul.bf16.gmra.mxu1 %v4097_v34  ;;  %v536_v2 = vld [vmem:[%s6202_s18 + $0x68] sm:$0xff]  }
 0x462   : > { %v4333_v14 = vmax.f32 %v4301_v29, 0.0  ;;  %v4281_v29 = vunpack.c.l.bf16 %v536_v2 }
 0x464   : > { %4365 = vst [vmem:[%s7218_s23 + $0x70] sm:$0xff] %v4333_v14 }
 0x465   : > { %v4212_v3 = vpop.f32.mrf.mxu1 }
 0x466   : > { %v4213_v48 = vadd.f32 %v7210_v11, %v4212_v3 }
 0x468   : > { %v4302_v54 = vadd.f32 %v4270_v36, %v4213_v48 }
 0x46a   : > { %v4334_v46 = vmax.f32 %v4302_v54, 0.0  ;;  %v4282_v54 = vunpack.c.h.bf16 %v536_v2 }
 0x46c   : > { %4366 = vst [vmem:[%s7218_s23 + $0x78] sm:$0xff] %v4334_v46 }
 0x46d   : > { %v4215_v43 = vpop.f32.mrf.mxu1 }
 0x46e   : > { %v4216_v32 = vadd.f32 %v7210_v11, %v4215_v43  ;;  %v538_v43 = vld [vmem:[%s6202_s18 + $0x70] sm:$0xff]  }
 0x470   : > { %v4303_v0 = vadd.f32 %v4271_v19, %v4216_v32 }
 0x472   : > { %v4335_v17 = vmax.f32 %v4303_v0, 0.0  ;;  %v4283_v0 = vunpack.c.l.bf16 %v538_v43 }
 0x474   : > { %4367 = vst [vmem:[%s7218_s23 + $0x80] sm:$0xff] %v4335_v17 }
 0x475   : > { %v4217_v52 = vpop.f32.mrf.mxu1 }
 0x476   : > { %v4218_v38 = vadd.f32 %v7210_v11, %v4217_v52 }
 0x478   : > { %v4304_v56 = vadd.f32 %v4272_v1, %v4218_v38 }
 0x47a   : > { %v4336_v58 = vmax.f32 %v4304_v56, 0.0  ;;  %v4284_v56 = vunpack.c.h.bf16 %v538_v43 }
 0x47c   : > { %4368 = vst [vmem:[%s7218_s23 + $0x88] sm:$0xff] %v4336_v58 }
 0x47d   : > { %v4220_v59 = vpop.f32.mrf.mxu1 }
 0x47e   : > { %v4221_v8 = vadd.f32 %v7210_v11, %v4220_v59  ;;  %v540_v59 = vld [vmem:[%s6202_s18 + $0x78] sm:$0xff]   ;;  %s4399_s18 = sshll.u32 %s7218_s23, 4  ;;  %s4400_s18 = int_to_ptr.vmem [resolvable:$true] %s4399_s18 }
 0x480   : > { %v4305_v51 = vadd.f32 %v4273_v62, %v4221_v8 }
 0x482   : > { %v4337_v25 = vmax.f32 %v4305_v51, 0.0  ;;  %v4285_v51 = vunpack.c.l.bf16 %v540_v59 }
 0x484   : > { %4369 = vst [vmem:[%s7218_s23 + $0x90] sm:$0xff] %v4337_v25 }
 0x485   : > { %v4222_v23 = vpop.f32.mrf.mxu1 }
 0x486   : > { %v4223_v7 = vadd.f32 %v7210_v11, %v4222_v23 }
 0x488   : > { %v4306_v41 = vadd.f32 %v4274_v4, %v4223_v7 }
 0x48a   : > { %v4338_v45 = vmax.f32 %v4306_v41, 0.0  ;;  %v4286_v41 = vunpack.c.h.bf16 %v540_v59 }
 0x48c   : > { %4370 = vst [vmem:[%s7218_s23 + $0x98] sm:$0xff] %v4338_v45 }
 0x48d   : > { %v4225_v27 = vpop.f32.mrf.mxu1 }
 0x48e   : > { %v4226_v26 = vadd.f32 %v7210_v11, %v4225_v27 }
 0x490   : > { %v4307_v60 = vadd.f32 %v4275_v35, %v4226_v26 }
 0x492   : > { %v4339_v55 = vmax.f32 %v4307_v60, 0.0 }
 0x494   : > { %4371 = vst [vmem:[%s7218_s23 + $0xa0] sm:$0xff] %v4339_v55 }
 0x495   : > { %v4227_v57 = vpop.f32.mrf.mxu1 }
 0x496   : > { %v4228_v9 = vadd.f32 %v7210_v11, %v4227_v57 }
 0x498   : > { %v4308_v12 = vadd.f32 %v4276_v37, %v4228_v9 }
 0x49a   : > { %v4340_v39 = vmax.f32 %v4308_v12, 0.0 }
 0x49c   : > { %4372 = vst [vmem:[%s7218_s23 + $0xa8] sm:$0xff] %v4340_v39 }
 0x49d   : > { %v4230_v18 = vpop.f32.mrf.mxu1 }
 0x49e   : > { %v4231_v10 = vadd.f32 %v7210_v11, %v4230_v18 }
 0x4a0   : > { %v4309_v15 = vadd.f32 %v4277_v50, %v4231_v10 }
 0x4a2   : > { %v4341_v28 = vmax.f32 %v4309_v15, 0.0 }
 0x4a4   : > { %4373 = vst [vmem:[%s7218_s23 + $0xb0] sm:$0xff] %v4341_v28 }
 0x4a5   : > { %v4232_v22 = vpop.f32.mrf.mxu1 }
 0x4a6   : > { %v4233_v42 = vadd.f32 %v7210_v11, %v4232_v22 }
 0x4a8   : > { %v4310_v61 = vadd.f32 %v4278_v63, %v4233_v42 }
 0x4aa   : > { %v4342_v47 = vmax.f32 %v4310_v61, 0.0 }
 0x4ac   : > { %4374 = vst [vmem:[%s7218_s23 + $0xb8] sm:$0xff] %v4342_v47 }
 0x4ad   : > { %v4235_v13 = vpop.f32.mrf.mxu1 }
 0x4ae   : > { %v4236_v33 = vadd.f32 %v7210_v11, %v4235_v13 }
 0x4b0   : > { %v4311_v20 = vadd.f32 %v4279_v30, %v4236_v33 }
 0x4b2   : > { %v4343_v44 = vmax.f32 %v4311_v20, 0.0 }
 0x4b4   : > { %4375 = vst [vmem:[%s7218_s23 + $0xc0] sm:$0xff] %v4343_v44 }
 0x4b5   : > { %v4237_v5 = vpop.f32.mrf.mxu1 }
 0x4b6   : > { %v4238_v6 = vadd.f32 %v7210_v11, %v4237_v5 }
 0x4b8   : > { %v4312_v21 = vadd.f32 %v4280_v16, %v4238_v6 }
 0x4ba   : > { %v4344_v34 = vmax.f32 %v4312_v21, 0.0 }
 0x4bc   : > { %4376 = vst [vmem:[%s7218_s23 + $0xc8] sm:$0xff] %v4344_v34 }
 0x4bd   : > { %v4240_v14 = vpop.f32.mrf.mxu1 }
 0x4be   : > { %v4241_v36 = vadd.f32 %v7210_v11, %v4240_v14 }
 0x4c0   : > { %v4313_v3 = vadd.f32 %v4281_v29, %v4241_v36 }
 0x4c2   : > { %v4345_v48 = vmax.f32 %v4313_v3, 0.0 }
 0x4c4   : > { %4377 = vst [vmem:[%s7218_s23 + $0xd0] sm:$0xff] %v4345_v48 }
 0x4c5   : > { %v4242_v24 = vpop.f32.mrf.mxu1 }
 0x4c6   : > { %v4243_v46 = vadd.f32 %v7210_v11, %v4242_v24 }
 0x4c8   : > { %v4314_v19 = vadd.f32 %v4282_v54, %v4243_v46 }
 0x4ca   : > { %v4346_v32 = vmax.f32 %v4314_v19, 0.0 }
 0x4cc   : > { %4378 = vst [vmem:[%s7218_s23 + $0xd8] sm:$0xff] %v4346_v32 }
 0x4cd   : > { %v4245_v17 = vpop.f32.mrf.mxu1 }
 0x4ce   : > { %v4246_v1 = vadd.f32 %v7210_v11, %v4245_v17 }
 0x4d0   : > { %v4315_v52 = vadd.f32 %v4283_v0, %v4246_v1 }
 0x4d2   : > { %v4347_v38 = vmax.f32 %v4315_v52, 0.0 }
 0x4d4   : > { %4379 = vst [vmem:[%s7218_s23 + $0xe0] sm:$0xff] %v4347_v38 }
 0x4d5   : > { %v4247_v40 = vpop.f32.mrf.mxu1 }
 0x4d6   : > { %v4248_v58 = vadd.f32 %v7210_v11, %v4247_v40 }
 0x4d8   : > { %v4316_v62 = vadd.f32 %v4284_v56, %v4248_v58 }
 0x4da   : > { %v4348_v8 = vmax.f32 %v4316_v62, 0.0 }
 0x4dc   : > { %4380 = vst [vmem:[%s7218_s23 + $0xe8] sm:$0xff] %v4348_v8 }
 0x4dd   : > { %v4250_v25 = vpop.f32.mrf.mxu1 }
 0x4de   : > { %v4251_v4 = vadd.f32 %v7210_v11, %v4250_v25 }
 0x4e0   : > { %v4317_v23 = vadd.f32 %v4285_v51, %v4251_v4 }
 0x4e2   : > { %v4349_v7 = vmax.f32 %v4317_v23, 0.0 }
 0x4e4   : > { %4381 = vst [vmem:[%s7218_s23 + $0xf0] sm:$0xff] %v4349_v7 }
 0x4e5   : > { %v4252_v53 = vpop.f32.mrf.mxu1 }
 0x4e6   : > { %v4253_v45 = vadd.f32 %v7210_v11, %v4252_v53 }
 0x4e8   : > { %v4318_v35 = vadd.f32 %v4286_v41, %v4253_v45 }
 0x4ea   : > { %v4350_v27 = vmax.f32 %v4318_v35, 0.0 }
 0x4ec   : > { %4382 = vst [vmem:[%s7218_s23 + $0xf8] sm:$0xff] %v4350_v27 }
 0x4ed   : > { %6009 = shalt.err (!%p6006_p5)
}
 0x4ee   : > { %s6063_s16 = smov 128   ;;  %s6064_s23 = smov 8  }
 0x4ef   : > { %5919 = dma.vmem_to_hbm [thread:$0]  (%p6155_p4), %s4400_s18, 4096, %s4402_s28, %s4384_s12, %s6063_s16, %s6063_s16, %s6064_s23  }
 0x4f0 PF: > { %p5925_p6 = scmp.ge.s32.totalorder %s6060_s14, 2  ;;  %s4416_s25 = sand.u32 1, %s6040_s30  }
 0x4f1   : > { %s4417_s26 = scalar_lea.sflag [#allocation4], %s4416_s25 }
 0x4f2   : > { %p5922_p7 = pnand %p5925_p6, %p6162_p8 }
 0x4f4   : > { %p5923_p9 = pneg %p5922_p7 }
 0x4f6   : > { %6035 = dma.done.wait (%p5923_p9), %s4417_s26, 4096  }
 0x4f7   : > { %6037 = vsyncadd (%p5923_p9), %s4417_s26, 4294963200  ;;  %s22_s14 = sadd.s32 1, %s6060_s14   ;;  %s7451_s30 = smov %s6044_s10 }
 0x4f8   : > { %p19_p10 = scmp.ge.s32.totalorder %s22_s14, 4   ;;  %s7452_s10 = smov %s6048_s11 }
 0x4f9   : > { %s7453_s11 = smov %s6168_s22  ;;  %s7454_s12 = smov %s6056_s13 }
 0x4fa   : > { %s7455_s13 = smov %s7457_s17  ;;  %21 = sbr.rel (!%p19_p10) target bundleno = 7 (0x7), region = 106 }
 0x4ff   :  { %4423 = vsyncpa [#allocation4], 1 }
 0x500   :  { %4425 = vsyncpa [#allocation4 + $0x1], 1 }

</bundles_post_ra>
